<compile_context>
chip_gen: v7x
topology: tpu7x:2x2x1
jax: 0.10.0
libtpu: 0.0.40
codegen_flags: <defaults>
</compile_context>

<pallas_src>
import jax
import jax.numpy as jnp
import numpy as np
from jax.experimental import pallas as pl
from jax.experimental.pallas import tpu as pltpu

H, W = 800, 2                                   # forced by Linear(16*400*2, 4)
C_OUT = 16
KH, KW = 5, 3
PAD = 2
H_CONV, W_CONV = H + 2 * PAD - KH + 1, W + 2 * PAD - KW + 1   # (800, 4)
H_POOL, W_POOL = H_CONV // 2, W_CONV // 2                     # (400, 2)
TAPS = KH * KW                                                # 15
N_POS = 2 * W_CONV                                            # 8 conv positions per pool-row
K_RAW = N_POS * TAPS                                          # 120
K_GEMM = 128                                                  # K padded -> no masked lane edge
N_GEMM = N_POS * C_OUT                                        # 128 (lane-dense)
FEAT = C_OUT * H_POOL * W_POOL                                # 12800
N_CLASSES = 4


def _fused_cnn_kernel(p_ref, w_ref, b_ref, fcw_ref, sel_ref, fcb_ref, o_ref):
    # p_ref   : (B, 400, 128) bf16  im2col patches, lane = hi*60 + w_conv*15 + tap (padded to 128)
    # w_ref   : (128, 128)    bf16  block-diagonal conv weight (8 blocks of 15x16, zero-padded rows)
    # b_ref   : (1, 128)      f32   conv bias tiled over the 8 positions
    # fcw_ref : (400, 128)    f32   permuted FC weight, lane = cls*32 + wp*16 + oc
    # sel_ref : (128, 4)      f32   class-segment selector (collapses 32-lane groups)
    # fcb_ref : (1, 4)        f32   FC bias
    # o_ref   : (B, 4)        f32   logits for this block of samples
    b_tile = p_ref.shape[0]
    # conv for all B samples as one lane-dense GEMM: (B*400,128)@(128,128)
    p = p_ref[...].reshape(b_tile * H_POOL, K_GEMM)
    c = jnp.dot(p, w_ref[...], preferred_element_type=jnp.float32)
    c = jnp.maximum(c + b_ref[...], 0.0)                              # bias + ReLU, (B*400,128)
    # 2x2 max-pool; position p = hi*4 + w_conv, so window wp=0 -> {0,1,4,5}, wp=1 -> {2,3,6,7}
    pw0 = jnp.maximum(jnp.maximum(c[:, 0:16],  c[:, 16:32]),
                      jnp.maximum(c[:, 64:80], c[:, 80:96]))          # (B*400,16)
    pw1 = jnp.maximum(jnp.maximum(c[:, 32:48],  c[:, 48:64]),
                      jnp.maximum(c[:, 96:112], c[:, 112:128]))       # (B*400,16)
    # replicate per class so the FC becomes elementwise against fcw_ref
    pooled = jnp.concatenate([pw0, pw1] * N_CLASSES, axis=1)          # (B*400,128)
    # fused Linear: product with permuted FC weight, per-sample reduction over
    # the 400 pool-rows, then collapse each 32-lane class segment.
    prod = pooled.reshape(b_tile, H_POOL, N_GEMM) * fcw_ref[...][None, :, :]
    colsum = jnp.sum(prod, axis=1)                                    # (B,128)
    logits = jnp.dot(colsum, sel_ref[...], preferred_element_type=jnp.float32)
    o_ref[...] = (logits + fcb_ref[...]).astype(o_ref.dtype)


def cnn_forward(x, conv_w, conv_b, fc_w, fc_b, *, b_tile=None):
    n = x.shape[0]
    if b_tile is None:
        # 8 samples per grid step for large batches; for small batches keep the
        # grid length >= 2 so both v7x TensorCores get work.
        b_tile = 8 if n >= 16 else max(1, n // 2)
    n_blocks = (n + b_tile - 1) // b_tile
    n_pad = n_blocks * b_tile

    # ---- glue: zero-pad + im2col in the NATURAL reshape order (no transpose) ----
    xpad = jnp.pad(x[:, 0], ((0, 0), (PAD, PAD), (PAD, PAD))).astype(jnp.bfloat16)   # (n,804,6)
    taps = jnp.stack([xpad[:, kh:kh + H_CONV, kw:kw + W_CONV]
                      for kh in range(KH) for kw in range(KW)], axis=-1)             # (n,800,4,15)
    patches = taps.reshape(n, H_POOL, K_RAW)                                         # (n,400,120)
    patches = jnp.pad(patches, ((0, n_pad - n), (0, 0), (0, K_GEMM - K_RAW)))        # (n_pad,400,128)

    # ---- block-diagonal conv weight: 8 positions x (15 taps -> 16 channels) ----
    wc_t = conv_w.reshape(C_OUT, TAPS).T.astype(jnp.float32)                         # (15,16)
    w_block = jnp.kron(jnp.eye(N_POS, dtype=jnp.float32), wc_t)                      # (120,128)
    w_block = jnp.pad(w_block, ((0, K_GEMM - K_RAW), (0, 0))).astype(jnp.bfloat16)   # (128,128)
    b_tiled = jnp.tile(conv_b.astype(jnp.float32), N_POS).reshape(1, N_GEMM)

    # ---- FC weight permuted once to (pool-row, cls*32 + wp*16 + oc) layout ----
    # PyTorch flatten index f = oc*800 + hp*2 + wp.
    fcw_perm = (fc_w.astype(jnp.float32)
                .reshape(N_CLASSES, C_OUT, H_POOL, W_POOL)                           # (cls,oc,hp,wp)
                .transpose(2, 0, 3, 1)                                               # (hp,cls,wp,oc)
                .reshape(H_POOL, N_GEMM))
    sel = jnp.asarray(np.repeat(np.eye(N_CLASSES, dtype=np.float32),
                                2 * C_OUT, axis=0))                                  # (128,4)
    fcb = fc_b.astype(jnp.float32).reshape(1, N_CLASSES)

    cost = pl.CostEstimate(
        flops=int(n_pad) * (2 * H_POOL * K_GEMM * N_GEMM + 10 * H_POOL * N_GEMM),
        transcendentals=0,
        bytes_accessed=int(n_pad) * (H_POOL * K_GEMM * 2 + N_CLASSES * 4)
        + (K_GEMM * N_GEMM * 2 + H_POOL * N_GEMM * 4
           + N_GEMM * 4 + N_GEMM * N_CLASSES * 4 + N_CLASSES * 4),
    )

    out = pl.pallas_call(
        _fused_cnn_kernel,
        grid=(n_blocks,),
        in_specs=[
            pl.BlockSpec((b_tile, H_POOL, K_GEMM), lambda i: (i, 0, 0)),
            pl.BlockSpec((K_GEMM, N_GEMM), lambda i: (0, 0)),
            pl.BlockSpec((1, N_GEMM), lambda i: (0, 0)),
            pl.BlockSpec((H_POOL, N_GEMM), lambda i: (0, 0)),
            pl.BlockSpec((N_GEMM, N_CLASSES), lambda i: (0, 0)),
            pl.BlockSpec((1, N_CLASSES), lambda i: (0, 0)),
        ],
        out_specs=pl.BlockSpec((None, b_tile, N_CLASSES), lambda i: (i, 0, 0)),
        out_shape=jax.ShapeDtypeStruct((n_blocks, b_tile, N_CLASSES), jnp.float32),
        compiler_params=pltpu.CompilerParams(
            dimension_semantics=("parallel",),
            vmem_limit_bytes=32 * 1024 * 1024),
        cost_estimate=cost,
    )(patches, w_block, b_tiled, fcw_perm, sel, fcb)
    return out.reshape(n_pad, N_CLASSES)[:n]


def jax_reference(x, conv_w, conv_b, fc_w, fc_b):
    conv = jax.lax.conv_general_dilated(
        x, conv_w, window_strides=(1, 1), padding=((PAD, PAD), (PAD, PAD)),
        dimension_numbers=("NCHW", "OIHW", "NCHW"),
        precision=jax.lax.Precision.HIGHEST)
    conv = conv + conv_b.reshape(1, C_OUT, 1, 1)
    act = jnp.maximum(conv, 0.0)
    pool = jax.lax.reduce_window(act, -jnp.inf, jax.lax.max,
                                 (1, 1, 2, 2), (1, 1, 2, 2), "VALID")
    flat = pool.reshape(x.shape[0], -1)
    return jnp.dot(flat, fc_w.T, precision=jax.lax.Precision.HIGHEST) + fc_b


if __name__ == "__main__":
    key = jax.random.PRNGKey(0)
    kx, k1, k2, k3, k4 = jax.random.split(key, 5)
    conv_w = jax.random.normal(k1, (C_OUT, 1, KH, KW), jnp.float32) * 0.1
    conv_b = jax.random.normal(k2, (C_OUT,), jnp.float32) * 0.1
    fc_w = jax.random.normal(k3, (N_CLASSES, FEAT), jnp.float32) * 0.02
    fc_b = jax.random.normal(k4, (N_CLASSES,), jnp.float32) * 0.02

    fwd = jax.jit(cnn_forward)
    # batch=2 exercises the small-batch path (b_tile=1, 2 grid steps);
    # batch=16 exercises the batched path (b_tile=8, 2 grid steps).
    for n in (2, 16):
        xb = jax.random.normal(jax.random.fold_in(kx, n), (n, 1, H, W), jnp.float32)
        out = jax.block_until_ready(fwd(xb, conv_w, conv_b, fc_w, fc_b))
        assert out.shape == (n, N_CLASSES)
        ref = jax_reference(xb, conv_w, conv_b, fc_w, fc_b)
        np.testing.assert_allclose(np.asarray(out), np.asarray(ref),
                                   rtol=5e-2, atol=5e-2)
    print("KERNEL_OK")
</pallas_src>

<mosaic_0001>
module attributes {stable_mosaic.version = 11 : i64} {
  func.func @_fused_cnn_kernel(%arg0: i32, %arg1: memref<1x400x128xbf16, #tpu.memory_space<vmem>>, %arg2: memref<128x128xbf16, #tpu.memory_space<vmem>>, %arg3: memref<1x128xf32, #tpu.memory_space<vmem>>, %arg4: memref<400x128xf32, #tpu.memory_space<vmem>>, %arg5: memref<128x4xf32, #tpu.memory_space<vmem>>, %arg6: memref<1x4xf32, #tpu.memory_space<vmem>>, %arg7: memref<1x1x4xf32, #tpu.memory_space<vmem>>) attributes {dimension_semantics = [#tpu.dimension_semantics<parallel>], iteration_bounds = array<i64: 2>, scalar_prefetch = 0 : i64, scratch_operands = 0 : i64, tpu.core_type = #tpu.core_type<tc>, window_params = [{transform_indices = @transform_0, window_bounds = array<i64: 1, 400, 128>}, {pipeline_mode = #tpu.pipeline_mode<synchronous>, transform_indices = @transform_1, window_bounds = array<i64: 128, 128>}, {pipeline_mode = #tpu.pipeline_mode<synchronous>, transform_indices = @transform_2, window_bounds = array<i64: 1, 128>}, {pipeline_mode = #tpu.pipeline_mode<synchronous>, transform_indices = @transform_3, window_bounds = array<i64: 400, 128>}, {pipeline_mode = #tpu.pipeline_mode<synchronous>, transform_indices = @transform_4, window_bounds = array<i64: 128, 4>}, {pipeline_mode = #tpu.pipeline_mode<synchronous>, transform_indices = @transform_5, window_bounds = array<i64: 1, 4>}, {transform_indices = @transform_6, window_bounds = array<i64: 1, 1, 4>}]} {
    %c0 = arith.constant 0 : index
    %c0_0 = arith.constant 0 : index
    %c0_1 = arith.constant 0 : index
    %0 = vector.load %arg1[%c0, %c0_0, %c0_1] : memref<1x400x128xbf16, #tpu.memory_space<vmem>>, vector<1x400x128xbf16>
    %1 = vector.shape_cast %0 : vector<1x400x128xbf16> to vector<400x128xbf16>
    %c0_2 = arith.constant 0 : index
    %c0_3 = arith.constant 0 : index
    %2 = vector.load %arg2[%c0_2, %c0_3] : memref<128x128xbf16, #tpu.memory_space<vmem>>, vector<128x128xbf16>
    %cst = arith.constant dense<0.000000e+00> : vector<400x128xf32>
    %3 = tpu.matmul %1, %2, %cst {dimension_numbers = #tpu.dot_dimension_numbers<[1], [0], [0], [1], [0, 0, 1, 1], [], []>} : vector<400x128xbf16>, vector<128x128xbf16>, vector<400x128xf32> -> vector<400x128xf32>
    %c0_4 = arith.constant 0 : index
    %c0_5 = arith.constant 0 : index
    %4 = vector.load %arg3[%c0_4, %c0_5] : memref<1x128xf32, #tpu.memory_space<vmem>>, vector<1x128xf32>
    %5 = vector.broadcast %4 : vector<1x128xf32> to vector<400x128xf32>
    %6 = arith.addf %3, %5 : vector<400x128xf32>
    %cst_6 = arith.constant 0.000000e+00 : f32
    %7 = vector.broadcast %cst_6 : f32 to vector<400x128xf32>
    %8 = arith.maximumf %6, %7 : vector<400x128xf32>
    %9 = vector.extract_strided_slice %8 {offsets = [0, 0], sizes = [400, 16], strides = [1, 1]} : vector<400x128xf32> to vector<400x16xf32>
    %10 = vector.extract_strided_slice %8 {offsets = [0, 16], sizes = [400, 16], strides = [1, 1]} : vector<400x128xf32> to vector<400x16xf32>
    %11 = arith.maximumf %9, %10 : vector<400x16xf32>
    %12 = vector.extract_strided_slice %8 {offsets = [0, 64], sizes = [400, 16], strides = [1, 1]} : vector<400x128xf32> to vector<400x16xf32>
    %13 = vector.extract_strided_slice %8 {offsets = [0, 80], sizes = [400, 16], strides = [1, 1]} : vector<400x128xf32> to vector<400x16xf32>
    %14 = arith.maximumf %12, %13 : vector<400x16xf32>
    %15 = arith.maximumf %11, %14 : vector<400x16xf32>
    %16 = vector.extract_strided_slice %8 {offsets = [0, 32], sizes = [400, 16], strides = [1, 1]} : vector<400x128xf32> to vector<400x16xf32>
    %17 = vector.extract_strided_slice %8 {offsets = [0, 48], sizes = [400, 16], strides = [1, 1]} : vector<400x128xf32> to vector<400x16xf32>
    %18 = arith.maximumf %16, %17 : vector<400x16xf32>
    %19 = vector.extract_strided_slice %8 {offsets = [0, 96], sizes = [400, 16], strides = [1, 1]} : vector<400x128xf32> to vector<400x16xf32>
    %20 = vector.extract_strided_slice %8 {offsets = [0, 112], sizes = [400, 16], strides = [1, 1]} : vector<400x128xf32> to vector<400x16xf32>
    %21 = arith.maximumf %19, %20 : vector<400x16xf32>
    %22 = arith.maximumf %18, %21 : vector<400x16xf32>
    %23 = tpu.concatenate %15, %22, %15, %22, %15, %22, %15, %22 in 1 : vector<400x16xf32>, vector<400x16xf32>, vector<400x16xf32>, vector<400x16xf32>, vector<400x16xf32>, vector<400x16xf32>, vector<400x16xf32>, vector<400x16xf32> -> vector<400x128xf32>
    %24 = vector.shape_cast %23 : vector<400x128xf32> to vector<1x400x128xf32>
    %c0_7 = arith.constant 0 : index
    %c0_8 = arith.constant 0 : index
    %25 = vector.load %arg4[%c0_7, %c0_8] : memref<400x128xf32, #tpu.memory_space<vmem>>, vector<400x128xf32>
    %26 = vector.shape_cast %25 : vector<400x128xf32> to vector<1x400x128xf32>
    %27 = arith.mulf %24, %26 : vector<1x400x128xf32>
    %cst_9 = arith.constant dense<0.000000e+00> : vector<1x128xf32>
    %28 = vector.multi_reduction <add>, %27, %cst_9 [1] : vector<1x400x128xf32> to vector<1x128xf32>
    %c0_10 = arith.constant 0 : index
    %c0_11 = arith.constant 0 : index
    %29 = vector.load %arg5[%c0_10, %c0_11] : memref<128x4xf32, #tpu.memory_space<vmem>>, vector<128x4xf32>
    %cst_12 = arith.constant dense<0.000000e+00> : vector<1x4xf32>
    %30 = tpu.matmul %28, %29, %cst_12 {dimension_numbers = #tpu.dot_dimension_numbers<[1], [0], [0], [1], [0, 0, 1, 1], [], []>} : vector<1x128xf32>, vector<128x4xf32>, vector<1x4xf32> -> vector<1x4xf32>
    %c0_13 = arith.constant 0 : index
    %c0_14 = arith.constant 0 : index
    %31 = vector.load %arg6[%c0_13, %c0_14] : memref<1x4xf32, #tpu.memory_space<vmem>>, vector<1x4xf32>
    %32 = arith.addf %30, %31 : vector<1x4xf32>
    %c0_15 = arith.constant 0 : index
    %c0_16 = arith.constant 0 : index
    %c0_17 = arith.constant 0 : index
    %33 = vector.load %arg7[%c0_15, %c0_16, %c0_17] : memref<1x1x4xf32, #tpu.memory_space<vmem>>, vector<1x1x4xf32>
    %34 = vector.shape_cast %33 : vector<1x1x4xf32> to vector<1x4xf32>
    %35 = vector.shape_cast %32 : vector<1x4xf32> to vector<1x1x4xf32>
    tpu.vector_store %arg7[%c0_15, %c0_16, %c0_17], %35 {strides = array<i32>} : memref<1x1x4xf32, #tpu.memory_space<vmem>>, vector<1x1x4xf32>,
    return
  }
  func.func @transform_0(%arg0: i32) -> (i32, i32, i32) {
    %c0_i32 = arith.constant 0 : i32
    %c0_i32_0 = arith.constant 0 : i32
    %c0_i32_1 = arith.constant 0 : i32
    return %arg0, %c0_i32, %c0_i32_0 : i32, i32, i32
  }
  func.func @transform_1(%arg0: i32) -> (i32, i32) {
    %c0_i32 = arith.constant 0 : i32
    %c0_i32_0 = arith.constant 0 : i32
    %c0_i32_1 = arith.constant 0 : i32
    return %c0_i32, %c0_i32_0 : i32, i32
  }
  func.func @transform_2(%arg0: i32) -> (i32, i32) {
    %c0_i32 = arith.constant 0 : i32
    %c0_i32_0 = arith.constant 0 : i32
    %c0_i32_1 = arith.constant 0 : i32
    return %c0_i32, %c0_i32_0 : i32, i32
  }
  func.func @transform_3(%arg0: i32) -> (i32, i32) {
    %c0_i32 = arith.constant 0 : i32
    %c0_i32_0 = arith.constant 0 : i32
    %c0_i32_1 = arith.constant 0 : i32
    return %c0_i32, %c0_i32_0 : i32, i32
  }
  func.func @transform_4(%arg0: i32) -> (i32, i32) {
    %c0_i32 = arith.constant 0 : i32
    %c0_i32_0 = arith.constant 0 : i32
    %c0_i32_1 = arith.constant 0 : i32
    return %c0_i32, %c0_i32_0 : i32, i32
  }
  func.func @transform_5(%arg0: i32) -> (i32, i32) {
    %c0_i32 = arith.constant 0 : i32
    %c0_i32_0 = arith.constant 0 : i32
    %c0_i32_1 = arith.constant 0 : i32
    return %c0_i32, %c0_i32_0 : i32, i32
  }
  func.func @transform_6(%arg0: i32) -> (i32, i32, i32) {
    %c0_i32 = arith.constant 0 : i32
    %c0_i32_0 = arith.constant 0 : i32
    %c0_i32_1 = arith.constant 0 : i32
    return %arg0, %c0_i32, %c0_i32_0 : i32, i32, i32
  }
}

</mosaic_0001>

<bundles_post_ra>
// kernel: tile.8
= control target key start
LH: loop header
LB: loop body
LE: loop exit
PB: predicated region body
PF: predicated region fallthrough
CT: control target
= control target key end

     0   :  { %s22_s0 = inlined_call_operand.vmem [shape: f32[16], index: 0, kind: input, shape index: {}]   ;;  %s23_s1 = inlined_call_operand.vmem [shape: f32[8,16], index: 1, kind: output, shape index: {}]  }
   0x1   :  { %v4_v0 = vld [vmem:[%s22_s0] ss:$0 sm:$0xff] }
   0x2   :  { %5 = vst [vmem:[%s23_s1] sm:$0xff] %v4_v0 }

// kernel: tile.9
= control target key start
LH: loop header
LB: loop body
LE: loop exit
PB: predicated region body
PF: predicated region fallthrough
CT: control target
= control target key end

     0   :  { %s67_s10 = smov 112   ;;  %s68_s11 = smov 80   ;;  %vm3_vm0 = vcmask 130048   ;;  %vm9_vm1 = vcmask 1048448   ;;  %vm15_vm2 = vcmask 917248   ;;  %vm21_vm3 = vcmask 786048   ;;  %s111_s0 = inlined_call_operand.vmem [shape: f32[8,16], index: 0, kind: input, shape index: {}]   ;;  %s112_s1 = inlined_call_operand.vmem [shape: f32[1,128], index: 1, kind: output, shape index: {}]  }
   0x1   :  { %v53_v0 = vld [vmem:[%s111_s0 + $0x7] sm:$0x1]   ;;  %v55_v1 = vld [vmem:[%s111_s0 + $0x5] sm:$0x1]   ;;  %v54_v2 = vld [vmem:[%s111_s0 + $0x6] sm:$0x1]  }
   0x2   :  { %7 = vrot.lane.b32.xlu0 %v53_v0, %s67_s10  ;;  %19 = vrot.lane.b32.xlu1 %v55_v1, %s68_s11  ;;  %v56_v3 = vld [vmem:[%s111_s0 + $0x4] sm:$0x1]   ;;  %v2_v4 = vld [vmem:[%s111_s0] sm:$0x1]   ;;  %s69_s18 = smov 96   ;;  %s70_s19 = smov 64  }
   0x3   :  { %4 = vst.msk [vmem:[#allocation0] sm:$0x1] %vm3_vm0, %v2_v4   ;;  %v57_v5 = vld [vmem:[%s111_s0 + $0x3] sm:$0x1]   ;;  %v58_v6 = vld [vmem:[%s111_s0 + $0x2] sm:$0x1]  }
   0x4   :  { %s71_s24 = smov 48   ;;  %s72_s25 = smov 32   ;;  %v59_v7 = vld [vmem:[%s111_s0 + $0x1] sm:$0x1]   ;;  %vm27_vm4 = vcmask 654848   ;;  %vm33_vm5 = vcmask 523648  }
   0x5   :  { %s73_s0 = smov 16   ;;  %vm39_vm6 = vcmask 392448   ;;  %vm45_vm7 = vcmask 261248  }
   0x6   :  { %13 = vrot.lane.b32.xlu0 %v54_v2, %s69_s18  ;;  %25 = vrot.lane.b32.xlu1 %v56_v3, %s70_s19 }
   0xa   :  { %31 = vrot.lane.b32.xlu0 %v57_v5, %s71_s24  ;;  %37 = vrot.lane.b32.xlu1 %v58_v6, %s72_s25 }
   0xe   :  { %43 = vrot.lane.b32.xlu0 %v59_v7, %s73_s0 }
  0x74   :  { %v8_v8 = vpop.permute.xlu0 %7   ;;  %v20_v9 = vpop.permute.xlu1 %19  }
  0x75   :  { %10 = vst.msk [vmem:[#allocation0] sm:$0x1] %vm9_vm1, %v8_v8  }
  0x78   :  { %v14_v10 = vpop.permute.xlu0 %13   ;;  %v26_v11 = vpop.permute.xlu1 %25  }
  0x79   :  { %16 = vst.msk [vmem:[#allocation0] sm:$0x1] %vm15_vm2, %v14_v10  }
  0x7a   :  { %22 = vst.msk [vmem:[#allocation0] sm:$0x1] %vm21_vm3, %v20_v9  }
  0x7b   :  { %28 = vst.msk [vmem:[#allocation0] sm:$0x1] %vm27_vm4, %v26_v11  }
  0x7c   :  { %v32_v12 = vpop.permute.xlu0 %31   ;;  %v38_v13 = vpop.permute.xlu1 %37  }
  0x7d   :  { %34 = vst.msk [vmem:[#allocation0] sm:$0x1] %vm33_vm5, %v32_v12  }
  0x7e   :  { %40 = vst.msk [vmem:[#allocation0] sm:$0x1] %vm39_vm6, %v38_v13  }
  0x80   :  { %v44_v14 = vpop.permute.xlu0 %43  }
  0x81   :  { %46 = vst.msk [vmem:[#allocation0] sm:$0x1] %vm45_vm7, %v44_v14  }
  0x88   :  { %v50_v15 = vld [vmem:[#allocation0] sm:$0x1] }
  0x89   :  { %52 = vst [vmem:[%s112_s1] sm:$0x1] %v50_v15 }

// kernel: cnn_forward.1
= control target key start
LH: loop header
LB: loop body
LE: loop exit
PB: predicated region body
PF: predicated region fallthrough
CT: control target
= control target key end

     0   :  { %11 = vsyncpa [#allocation3], 0  ;;  %s6794_s0 = inlined_call_operand.vmem [shape: bf16[2,400,128], index: 0, kind: input, shape index: {}]   ;;  %s6795_s1 = inlined_call_operand.vmem [shape: bf16[128,128], index: 1, kind: input, shape index: {}]   ;;  %s6796_s2 = inlined_call_operand.vmem [shape: f32[1,128], index: 2, kind: input, shape index: {}]   ;;  %s6797_s3 = inlined_call_operand.vmem [shape: f32[400,128], index: 3, kind: input, shape index: {}]   ;;  %s6798_s4 = inlined_call_operand.vmem [shape: f32[128,4], index: 4, kind: input, shape index: {}]   ;;  %s6799_s5 = inlined_call_operand.vmem [shape: f32[1,4], index: 5, kind: input, shape index: {}]   ;;  %s6800_s6 = inlined_call_operand.hbm [shape: f32[2,1,4], index: 6, kind: output, shape index: {}]  }
   0x1   :  { %13 = vsyncpa [#allocation3 + $0x1], 0  ;;  %s3549_s21 = smov 0   ;;  %s3551_s22 = smov 0  }
   0x2   :  { %s3553_s23 = smov 0   ;;  %s3555_s24 = smov 0  }
   0x3 LB: > { %s3570_s25 = sadd.s32 4294967295, %s3501_s24   ;;  %s3073_s26 = sadd.s32 4294967294, %s3501_s24   ;;  %s3501_s24 = sphi %s3555_s24, %s7450_s24   ;;  %s3497_s23 = sphi %s3553_s23, %s7449_s23   ;;  %s3493_s22 = sphi %s3551_s22, %s7448_s22   ;;  %s3489_s21 = sphi %s3549_s21, %s7447_s21  }
   0x4   : > { %s3574_s27 = sadd.s32 1, %s3501_s24   ;;  %s157_s28 = sadd.s32 1, %s3497_s23 }
   0x5   : > { %s154_s29 = ssub.s32 %s3501_s24, %s3574_s27  ;;  %p167_p0 = scmp.ne.s32.totalorder %s3497_s23, %s3493_s22 }
   0x6   : > { %p155_p1 = scmp.eq.s32.totalorder %s154_s29, 0  ;;  %p168_p2 = scmp.eq.s32.totalorder %s3570_s25, 1 }
   0x7   : > { %p173_p3 = scmp.ne.s32.totalorder %s3493_s22, %s3489_s21  ;;  %p174_p4 = scmp.eq.s32.totalorder %s3073_s26, 1 }
   0x8   : > { %s3585_s30 = scalar_select %p155_p1, %s3497_s23, %s157_s28  }
   0x9   : > { %p3587_p5 = por %p168_p2, %p167_p0  ;;  %p3591_p6 = por %p174_p4, %p173_p3 }
   0xa   : > { %p3076_p7 = scmp.ge.s32.totalorder %s3501_s24, 1  ;;  %p215_p8 = scmp.lt.s32.totalorder %s3501_s24, 3 }
   0xc   : > { %p216_p9 = pnand %p3076_p7, %p215_p8 }
   0xe   : > { %219 = sbr.rel (%p216_p9) target bundleno = 1564 (0x61c), region = 44 }
  0x15   : > { %v3406_v0 = vld [vmem:[%s6795_s1] sm:$0xff]   ;;  %v3503_v1 = vmov 0.0   ;;  %v3407_v2 = vld [vmem:[%s6795_s1 + $0x8] sm:$0xff]   ;;  %p244_p10 = scmp.lt.s32.totalorder %s3570_s25, 1  ;;  %vm3504_vm0 = vmmov 0   ;;  %v3408_v3 = vld [vmem:[%s6795_s1 + $0x10] sm:$0xff]  }
  0x16   : > { %3165 = vmatprep.subr.bf16.mxu0 %v3503_v1  ;;  %3340 = vmatprep.subr.bf16.mxu1 %v3503_v1  ;;  %v3409_v4 = vld [vmem:[%s6795_s1 + $0x18] sm:$0xff]   ;;  %v3410_v5 = vld [vmem:[%s6795_s1 + $0x20] sm:$0xff]   ;;  %v3411_v6 = vld [vmem:[%s6795_s1 + $0x28] sm:$0xff]   ;;  %s3505_s17 = smov 112   ;;  %s3506_s18 = smov 64   ;;  %vm2404_vm1 = vcmask 130048  }
  0x17   : > { %3166 = vmatpush3.bf16.msra.mxu0 %v3406_v0  ;;  %3348 = vmatpush3.bf16.msra.mxu1 %v3406_v0  ;;  %s245_s13 = scalar_select %p244_p10, %s3570_s25, 1  ;;  %v3412_v7 = vld [vmem:[%s6795_s1 + $0x30] sm:$0xff]   ;;  %v3413_v8 = vld [vmem:[%s6795_s1 + $0x38] sm:$0xff]   ;;  %v3724_v34 = vld [vmem:[%s6796_s2] ss:$0 sm:$0xff]  ;;  %vm2455_vm2 = vcmask 261120  }
  0x18   : > { %3167 = vmatprep.subr.bf16.mxu0 %v3503_v1  ;;  %3341 = vmatprep.subr.bf16.mxu1 %v3503_v1  ;;  %s3508_s20 = smov 32   ;;  %s3509_s26 = smov 16   ;;  %vm2506_vm3 = vcmask 392192   ;;  %vm2557_vm4 = vcmask 523264   ;;  %vm2608_vm5 = vcmask 654336   ;;  %vm2659_vm6 = vcmask 785408  }
  0x19   : > { %3181 = vmatprep.mubr.msk.bf16.mxu0 %vm3504_vm0, %v3503_v1  ;;  %3233 = vmatprep.mubr.msk.bf16.mxu1 %vm3504_vm0, %v3503_v1  ;;  %s3356_s16 = smul.u32 200, %s245_s13  ;;  %s3510_s28 = smov 48   ;;  %vm2710_vm7 = vcmask 916480   ;;  %vm3003_vm8 = vcmask 24576  }
  0x1a   : > { %s3511_s29 = smov 96   ;;  %s3112_s11 = sshll.u32 %s3570_s25, 4 }
  0x1b   : > { %3168 = vmatpush3.bf16.msra.mxu0 %v3407_v2  ;;  %3349 = vmatpush3.bf16.msra.mxu1 %v3407_v2  ;;  %s3621_s19 = scalar_lea.vmem %s6794_s0, %s3356_s16  ;;  %s6752_s16 = scalar_lea.hbm %s6800_s6, %s3112_s11 }
  0x1c   : > { %3169 = vmatprep.subr.bf16.mxu0 %v3503_v1  ;;  %3342 = vmatprep.subr.bf16.mxu1 %v3503_v1  ;;  %v3414_v9 = vld [vmem:[%s3621_s19] sm:$0xff]   ;;  %v3415_v10 = vld [vmem:[%s3621_s19 + $0x68] sm:$0xff]   ;;  %v3417_v12 = vld [vmem:[%s3621_s19 + $0x70] sm:$0xff]   ;;  %s3513_s25 = smov [#allocation2]  }
  0x1d   : > { %v3416_v11 = vld [vmem:[%s3621_s19 + $0x8] sm:$0xff]   ;;  %v3418_v13 = vld [vmem:[%s3621_s19 + $0x10] sm:$0xff]   ;;  %v3419_v14 = vld [vmem:[%s3621_s19 + $0x78] sm:$0xff]  }
  0x1e   : > { %v3420_v15 = vld [vmem:[%s3621_s19 + $0x18] sm:$0xff]   ;;  %v3421_v16 = vld [vmem:[%s3621_s19 + $0x80] sm:$0xff]   ;;  %v3423_v18 = vld [vmem:[%s3621_s19 + $0x88] sm:$0xff]  }
  0x1f   : > { %3170 = vmatpush3.bf16.msra.mxu0 %v3408_v3  ;;  %3350 = vmatpush3.bf16.msra.mxu1 %v3408_v3  ;;  %v3422_v17 = vld [vmem:[%s3621_s19 + $0x20] sm:$0xff]   ;;  %v3424_v19 = vld [vmem:[%s3621_s19 + $0x28] sm:$0xff]   ;;  %v3425_v20 = vld [vmem:[%s3621_s19 + $0x90] sm:$0xff]  }
  0x20   : > { %3171 = vmatprep.subr.bf16.mxu0 %v3503_v1  ;;  %3343 = vmatprep.subr.bf16.mxu1 %v3503_v1  ;;  %v3426_v21 = vld [vmem:[%s3621_s19 + $0x30] sm:$0xff]   ;;  %v3427_v22 = vld [vmem:[%s3621_s19 + $0x98] sm:$0xff]   ;;  %v3429_v24 = vld [vmem:[%s3621_s19 + $0xa0] sm:$0xff]  }
  0x21   : > { %v3428_v23 = vld [vmem:[%s3621_s19 + $0x38] sm:$0xff]   ;;  %v3430_v25 = vld [vmem:[%s3621_s19 + $0x40] sm:$0xff]   ;;  %v3431_v26 = vld [vmem:[%s3621_s19 + $0xa8] sm:$0xff]  }
  0x22   : > { %v3432_v27 = vld [vmem:[%s3621_s19 + $0x48] sm:$0xff]   ;;  %v3433_v28 = vld [vmem:[%s3621_s19 + $0xb0] sm:$0xff]   ;;  %v3435_v30 = vld [vmem:[%s3621_s19 + $0xb8] sm:$0xff]  }
  0x23   : > { %3172 = vmatpush3.bf16.msra.mxu0 %v3409_v4  ;;  %3351 = vmatpush3.bf16.msra.mxu1 %v3409_v4  ;;  %v3434_v29 = vld [vmem:[%s3621_s19 + $0x50] sm:$0xff]   ;;  %v3436_v31 = vld [vmem:[%s3621_s19 + $0x58] sm:$0xff]   ;;  %v3437_v32 = vld [vmem:[%s3621_s19 + $0xc0] sm:$0xff]  }
  0x24   : > { %3173 = vmatprep.subr.bf16.mxu0 %v3503_v1  ;;  %3344 = vmatprep.subr.bf16.mxu1 %v3503_v1  ;;  %v3438_v33 = vld [vmem:[%s3621_s19 + $0x60] sm:$0xff]   ;;  %s3507_s19 = smov 80  }
  0x27   : > { %3174 = vmatpush3.bf16.msra.mxu0 %v3410_v5  ;;  %3352 = vmatpush3.bf16.msra.mxu1 %v3410_v5 }
  0x28   : > { %3175 = vmatprep.subr.bf16.mxu0 %v3503_v1  ;;  %3345 = vmatprep.subr.bf16.mxu1 %v3503_v1 }
  0x2b   : > { %3176 = vmatpush3.bf16.msra.mxu0 %v3411_v6  ;;  %3353 = vmatpush3.bf16.msra.mxu1 %v3411_v6 }
  0x2c   : > { %3177 = vmatprep.subr.bf16.mxu0 %v3503_v1  ;;  %3346 = vmatprep.subr.bf16.mxu1 %v3503_v1 }
  0x2f   : > { %3178 = vmatpush3.bf16.msra.mxu0 %v3412_v7  ;;  %3354 = vmatpush3.bf16.msra.mxu1 %v3412_v7 }
  0x30   : > { %3179 = vmatprep.subr.bf16.mxu0 %v3503_v1  ;;  %3347 = vmatprep.subr.bf16.mxu1 %v3503_v1 }
  0x33   : > { %3180 = vmatpush3.bf16.msra.mxu0 %v3413_v8  ;;  %3355 = vmatpush3.bf16.msra.mxu1 %v3413_v8 }
  0x36   : > { %3182 = vmatmul.mubr.bf16.vlgmr.msra.gmra.mrb[0].mxu0 %v3414_v9  ;;  %3234 = vmatmul.mubr.bf16.vlgmr.msra.gmra.mrb[0].mxu1 %v3415_v10 }
  0x37   : > { %3185 = vmatprep.mubr.msk.bf16.mxu0 %vm3504_vm0, %v3503_v1  ;;  %3237 = vmatprep.mubr.msk.bf16.mxu1 %vm3504_vm0, %v3503_v1 }
  0x3e   : > { %3186 = vmatmul.mubr.bf16.gmra.mrb[4].mxu0 %v3416_v11  ;;  %3238 = vmatmul.mubr.bf16.gmra.mrb[4].mxu1 %v3417_v12 }
  0x3f   : > { %3189 = vmatprep.mubr.msk.bf16.mxu0 %vm3504_vm0, %v3503_v1  ;;  %3241 = vmatprep.mubr.msk.bf16.mxu1 %vm3504_vm0, %v3503_v1 }
  0x46   : > { %3190 = vmatmul.mubr.bf16.gmra.mrb[8].mxu0 %v3418_v13  ;;  %3242 = vmatmul.mubr.bf16.gmra.mrb[8].mxu1 %v3419_v14 }
  0x47   : > { %3193 = vmatprep.mubr.msk.bf16.mxu0 %vm3504_vm0, %v3503_v1  ;;  %3245 = vmatprep.mubr.msk.bf16.mxu1 %vm3504_vm0, %v3503_v1 }
  0x4e   : > { %3194 = vmatmul.mubr.bf16.gmra.mrb[12].mxu0 %v3420_v15  ;;  %3246 = vmatmul.mubr.bf16.gmra.mrb[12].mxu1 %v3421_v16 }
  0x4f   : > { %3197 = vmatprep.mubr.msk.bf16.mxu0 %vm3504_vm0, %v3503_v1  ;;  %3249 = vmatprep.mubr.msk.bf16.mxu1 %vm3504_vm0, %v3503_v1 }
  0x56   : > { %3198 = vmatmul.mubr.bf16.gmra.mrb[16].mxu0 %v3422_v17  ;;  %3250 = vmatmul.mubr.bf16.gmra.mrb[16].mxu1 %v3423_v18 }
  0x57   : > { %3201 = vmatprep.mubr.msk.bf16.mxu0 %vm3504_vm0, %v3503_v1  ;;  %3253 = vmatprep.mubr.msk.bf16.mxu1 %vm3504_vm0, %v3503_v1 }
  0x5e   : > { %3202 = vmatmul.mubr.bf16.gmra.mrb[20].mxu0 %v3424_v19  ;;  %3254 = vmatmul.mubr.bf16.gmra.mrb[20].mxu1 %v3425_v20 }
  0x5f   : > { %3205 = vmatprep.mubr.msk.bf16.mxu0 %vm3504_vm0, %v3503_v1  ;;  %3257 = vmatprep.mubr.msk.bf16.mxu1 %vm3504_vm0, %v3503_v1 }
  0x66   : > { %3206 = vmatmul.mubr.bf16.gmra.mrb[24].mxu0 %v3426_v21  ;;  %3258 = vmatmul.mubr.bf16.gmra.mrb[24].mxu1 %v3427_v22 }
  0x67   : > { %3209 = vmatprep.mubr.msk.bf16.mxu0 %vm3504_vm0, %v3503_v1  ;;  %3261 = vmatprep.mubr.msk.bf16.mxu1 %vm3504_vm0, %v3503_v1 }
  0x6e   : > { %3210 = vmatmul.mubr.bf16.gmra.mrb[28].mxu0 %v3428_v23  ;;  %3262 = vmatmul.mubr.bf16.gmra.mrb[28].mxu1 %v3429_v24 }
  0x6f   : > { %3213 = vmatprep.mubr.msk.bf16.mxu0 %vm3504_vm0, %v3503_v1  ;;  %3265 = vmatprep.mubr.msk.bf16.mxu1 %vm3504_vm0, %v3503_v1 }
  0x76   : > { %3214 = vmatmul.mubr.bf16.gmra.mrb[32].mxu0 %v3430_v25  ;;  %3266 = vmatmul.mubr.bf16.gmra.mrb[32].mxu1 %v3431_v26 }
  0x77   : > { %3217 = vmatprep.mubr.msk.bf16.mxu0 %vm3504_vm0, %v3503_v1  ;;  %3269 = vmatprep.mubr.msk.bf16.mxu1 %vm3504_vm0, %v3503_v1 }
  0x7e   : > { %3218 = vmatmul.mubr.bf16.gmra.mrb[36].mxu0 %v3432_v27  ;;  %3270 = vmatmul.mubr.bf16.gmra.mrb[36].mxu1 %v3433_v28 }
  0x7f   : > { %3221 = vmatprep.mubr.msk.bf16.mxu0 %vm3504_vm0, %v3503_v1  ;;  %3273 = vmatprep.mubr.msk.bf16.mxu1 %vm3504_vm0, %v3503_v1 }
  0x86   : > { %3222 = vmatmul.mubr.bf16.gmra.mrb[40].mxu0 %v3434_v29  ;;  %3274 = vmatmul.mubr.bf16.gmra.mrb[40].mxu1 %v3435_v30 }
  0x87   : > { %3225 = vmatprep.mubr.msk.bf16.mxu0 %vm3504_vm0, %v3503_v1  ;;  %3277 = vmatprep.mubr.msk.bf16.mxu1 %vm3504_vm0, %v3503_v1 }
  0x8e   : > { %3226 = vmatmul.mubr.bf16.gmra.mrb[44].mxu0 %v3436_v31  ;;  %3278 = vmatmul.mubr.bf16.gmra.mrb[44].mxu1 %v3437_v32 }
  0x8f   : > { %3229 = vmatprep.mubr.msk.bf16.mxu0 %vm3504_vm0, %v3503_v1  ;;  %3313 = vmatprep.mubr.msk.f32.mxu1 %vm3504_vm0, %v3503_v1 }
  0x96   : > { %3230 = vmatmul.mubr.bf16.gmra.mrb[48].mxu0 %v3438_v33 }
 0x109   : > { %v555_v35 = vpop.f32.mrb[0].mxu0  ;;  %v659_v36 = vpop.f32.mrb[0].mxu1 }
 0x10a   : > { %v3727_v37 = vadd.f32 %v3724_v34, %v555_v35  ;;  %v3730_v38 = vadd.f32 %v3724_v34, %v659_v36  ;;  %v3183_v39 = vpop.f32.mrb[1].mxu0  ;;  %v3235_v40 = vpop.f32.mrb[1].mxu1 }
 0x10b   : > { %v558_v41 = vpop.f32.mrb[2].mxu0  ;;  %v662_v42 = vpop.f32.mrb[2].mxu1 }
 0x10c   : > { %v754_v43 = vmax.f32 %v3727_v37, 0.0  ;;  %v3734_v44 = vadd.f32 %v3724_v34, %v662_v42  ;;  %v3184_v45 = vpop.f32.mrb[3].mxu0  ;;  %v3236_v46 = vpop.f32.mrb[3].mxu1  ;;  %v780_v47 = vmax.f32 %v3730_v38, 0.0  ;;  %v3742_v49 = vadd.f32 %v3724_v34, %v558_v41 }
 0x10e   : > { %v6838_v48 = vmax.f32 %v3734_v44, 0.0  ;;  %854 = vrot.lane.b32.xlu0 %v754_v43, %s3505_s17  ;;  %v755_v58 = vmax.f32 %v3742_v49, 0.0 }
 0x110   : > { %908 = vrot.lane.b32.xlu1 %v6838_v48, %s3505_s17 }
 0x111   : > { %v563_v50 = vpop.f32.mrb[4].mxu0  ;;  %v667_v51 = vpop.f32.mrb[4].mxu1 }
 0x112   : > { %v3748_v52 = vadd.f32 %v3724_v34, %v563_v50  ;;  %906 = vrot.lane.b32.xlu0 %v780_v47, %s3505_s17  ;;  %v3187_v53 = vpop.f32.mrb[5].mxu0  ;;  %v3754_v54 = vadd.f32 %v3724_v34, %v667_v51  ;;  %v3239_v55 = vpop.f32.mrb[5].mxu1 }
 0x113   : > { %v566_v56 = vpop.f32.mrb[6].mxu0  ;;  %v670_v57 = vpop.f32.mrb[6].mxu1 }
 0x114   : > { %v756_v59 = vmax.f32 %v3748_v52, 0.0  ;;  %v3759_v60 = vadd.f32 %v3724_v34, %v566_v56  ;;  %v3188_v61 = vpop.f32.mrb[7].mxu0  ;;  %v3240_v62 = vpop.f32.mrb[7].mxu1  ;;  %v6836_v0 = vmax.f32 %v3754_v54, 0.0  ;;  %v3770_v1 = vadd.f32 %v3724_v34, %v670_v57 }
 0x115   : > { %v6929_v49 = vmax.f32 %v3754_v54, 0.0 }
 0x116   : > { %v6835_v63 = vmax.f32 %v3759_v60, 0.0  ;;  %856 = vrot.lane.b32.xlu0 %v755_v58, %s3505_s17  ;;  %858 = vrot.lane.b32.xlu1 %v756_v59, %s3505_s17  ;;  %v6830_v5 = vmax.f32 %v3770_v1, 0.0 }
 0x119   : > { %v571_v2 = vpop.f32.mrb[8].mxu0  ;;  %v675_v3 = vpop.f32.mrb[8].mxu1 }
 0x11a   : > { %v3773_v4 = vadd.f32 %v3724_v34, %v571_v2  ;;  %910 = vrot.lane.b32.xlu0 %v6836_v0, %s3505_s17  ;;  %860 = vrot.lane.b32.xlu1 %v6835_v63, %s3505_s17  ;;  %v3191_v6 = vpop.f32.mrb[9].mxu0  ;;  %v3783_v7 = vadd.f32 %v3724_v34, %v675_v3  ;;  %v3243_v8 = vpop.f32.mrb[9].mxu1 }
 0x11b   : > { %v574_v9 = vpop.f32.mrb[10].mxu0  ;;  %v678_v10 = vpop.f32.mrb[10].mxu1 }
 0x11c   : > { %v6834_v11 = vmax.f32 %v3773_v4, 0.0  ;;  %v3787_v12 = vadd.f32 %v3724_v34, %v574_v9  ;;  %v3192_v13 = vpop.f32.mrb[11].mxu0  ;;  %v3244_v14 = vpop.f32.mrb[11].mxu1  ;;  %v6828_v16 = vmax.f32 %v3783_v7, 0.0  ;;  %v3798_v17 = vadd.f32 %v3724_v34, %v678_v10 }
 0x11e   : > { %v6827_v15 = vmax.f32 %v3787_v12, 0.0  ;;  %912 = vrot.lane.b32.xlu1 %v6830_v5, %s3505_s17  ;;  %862 = vrot.lane.b32.xlu0 %v6834_v11, %s3505_s17  ;;  %v6822_v21 = vmax.f32 %v3798_v17, 0.0 }
 0x121   : > { %v579_v18 = vpop.f32.mrb[12].mxu0  ;;  %v683_v19 = vpop.f32.mrb[12].mxu1 }
 0x122   : > { %v3801_v20 = vadd.f32 %v3724_v34, %v579_v18  ;;  %914 = vrot.lane.b32.xlu0 %v6828_v16, %s3505_s17  ;;  %864 = vrot.lane.b32.xlu1 %v6827_v15, %s3505_s17  ;;  %v3195_v22 = vpop.f32.mrb[13].mxu0  ;;  %v3811_v23 = vadd.f32 %v3724_v34, %v683_v19  ;;  %v3247_v24 = vpop.f32.mrb[13].mxu1 }
 0x123   : > { %v582_v25 = vpop.f32.mrb[14].mxu0  ;;  %v686_v26 = vpop.f32.mrb[14].mxu1 }
 0x124   : > { %v6826_v27 = vmax.f32 %v3801_v20, 0.0  ;;  %v3815_v28 = vadd.f32 %v3724_v34, %v582_v25  ;;  %v3196_v29 = vpop.f32.mrb[15].mxu0  ;;  %v3248_v30 = vpop.f32.mrb[15].mxu1  ;;  %v6820_v32 = vmax.f32 %v3811_v23, 0.0  ;;  %v3826_v33 = vadd.f32 %v3724_v34, %v686_v26 }
 0x126   : > { %v6819_v31 = vmax.f32 %v3815_v28, 0.0  ;;  %916 = vrot.lane.b32.xlu1 %v6822_v21, %s3505_s17  ;;  %866 = vrot.lane.b32.xlu0 %v6826_v27, %s3505_s17  ;;  %v6814_v40 = vmax.f32 %v3826_v33, 0.0 }
 0x129   : > { %v587_v35 = vpop.f32.mrb[16].mxu0  ;;  %v691_v36 = vpop.f32.mrb[16].mxu1 }
 0x12a   : > { %v3829_v39 = vadd.f32 %v3724_v34, %v587_v35  ;;  %918 = vrot.lane.b32.xlu0 %v6820_v32, %s3505_s17  ;;  %868 = vrot.lane.b32.xlu1 %v6819_v31, %s3505_s17  ;;  %v3199_v41 = vpop.f32.mrb[17].mxu0  ;;  %v3839_v42 = vadd.f32 %v3724_v34, %v691_v36  ;;  %v3251_v45 = vpop.f32.mrb[17].mxu1 }
 0x12b   : > { %v590_v46 = vpop.f32.mrb[18].mxu0  ;;  %v694_v50 = vpop.f32.mrb[18].mxu1 }
 0x12c   : > { %v6818_v51 = vmax.f32 %v3829_v39, 0.0  ;;  %v3843_v53 = vadd.f32 %v3724_v34, %v590_v46  ;;  %v3200_v55 = vpop.f32.mrb[19].mxu0  ;;  %v3252_v56 = vpop.f32.mrb[19].mxu1  ;;  %v6812_v61 = vmax.f32 %v3839_v42, 0.0  ;;  %v3854_v62 = vadd.f32 %v3724_v34, %v694_v50 }
 0x12e   : > { %v6811_v57 = vmax.f32 %v3843_v53, 0.0  ;;  %920 = vrot.lane.b32.xlu1 %v6814_v40, %s3505_s17  ;;  %870 = vrot.lane.b32.xlu0 %v6818_v51, %s3505_s17  ;;  %v6806_v8 = vmax.f32 %v3854_v62, 0.0 }
 0x131   : > { %v595_v2 = vpop.f32.mrb[20].mxu0  ;;  %v699_v3 = vpop.f32.mrb[20].mxu1 }
 0x132   : > { %v3857_v6 = vadd.f32 %v3724_v34, %v595_v2  ;;  %922 = vrot.lane.b32.xlu0 %v6812_v61, %s3505_s17  ;;  %872 = vrot.lane.b32.xlu1 %v6811_v57, %s3505_s17  ;;  %v3203_v9 = vpop.f32.mrb[21].mxu0  ;;  %v3867_v10 = vadd.f32 %v3724_v34, %v699_v3  ;;  %v3255_v13 = vpop.f32.mrb[21].mxu1 }
 0x133   : > { %v598_v14 = vpop.f32.mrb[22].mxu0  ;;  %v702_v18 = vpop.f32.mrb[22].mxu1 }
 0x134   : > { %v6810_v19 = vmax.f32 %v3857_v6, 0.0  ;;  %v3871_v22 = vadd.f32 %v3724_v34, %v598_v14  ;;  %v3204_v24 = vpop.f32.mrb[23].mxu0  ;;  %v3256_v25 = vpop.f32.mrb[23].mxu1  ;;  %v6804_v29 = vmax.f32 %v3867_v10, 0.0  ;;  %v3882_v30 = vadd.f32 %v3724_v34, %v702_v18 }
 0x136   : > { %v6803_v26 = vmax.f32 %v3871_v22, 0.0  ;;  %924 = vrot.lane.b32.xlu1 %v6806_v8, %s3505_s17  ;;  %874 = vrot.lane.b32.xlu0 %v6810_v19, %s3505_s17  ;;  %v6801_v45 = vmax.f32 %v3882_v30, 0.0 }
 0x139   : > { %v603_v35 = vpop.f32.mrb[24].mxu0  ;;  %v707_v36 = vpop.f32.mrb[24].mxu1 }
 0x13a   : > { %v3885_v41 = vadd.f32 %v3724_v34, %v603_v35  ;;  %926 = vrot.lane.b32.xlu0 %v6804_v29, %s3505_s17  ;;  %876 = vrot.lane.b32.xlu1 %v6803_v26, %s3505_s17  ;;  %v3207_v46 = vpop.f32.mrb[25].mxu0  ;;  %v3895_v50 = vadd.f32 %v3724_v34, %v707_v36  ;;  %v3259_v55 = vpop.f32.mrb[25].mxu1 }
 0x13b   : > { %v606_v56 = vpop.f32.mrb[26].mxu0  ;;  %v710_v2 = vpop.f32.mrb[26].mxu1 }
 0x13c   : > { %v6802_v3 = vmax.f32 %v3885_v41, 0.0  ;;  %v3899_v9 = vadd.f32 %v3724_v34, %v606_v56  ;;  %v3208_v13 = vpop.f32.mrb[27].mxu0  ;;  %v3260_v14 = vpop.f32.mrb[27].mxu1  ;;  %v6805_v24 = vmax.f32 %v3895_v50, 0.0  ;;  %v3910_v25 = vadd.f32 %v3724_v34, %v710_v2 }
 0x13e   : > { %v6809_v18 = vmax.f32 %v3899_v9, 0.0  ;;  %928 = vrot.lane.b32.xlu1 %v6801_v45, %s3505_s17  ;;  %878 = vrot.lane.b32.xlu0 %v6802_v3, %s3505_s17  ;;  %v6807_v55 = vmax.f32 %v3910_v25, 0.0 }
 0x141   : > { %v611_v35 = vpop.f32.mrb[28].mxu0  ;;  %v715_v36 = vpop.f32.mrb[28].mxu1 }
 0x142   : > { %v3913_v46 = vadd.f32 %v3724_v34, %v611_v35  ;;  %930 = vrot.lane.b32.xlu0 %v6805_v24, %s3505_s17  ;;  %880 = vrot.lane.b32.xlu1 %v6809_v18, %s3505_s17  ;;  %v3211_v56 = vpop.f32.mrb[29].mxu0  ;;  %v3923_v13 = vadd.f32 %v3724_v34, %v715_v36  ;;  %v3263_v2 = vpop.f32.mrb[29].mxu1 }
 0x143   : > { %v614_v14 = vpop.f32.mrb[30].mxu0  ;;  %v718_v45 = vpop.f32.mrb[30].mxu1 }
 0x144   : > { %v6808_v35 = vmax.f32 %v3913_v46, 0.0  ;;  %v3927_v3 = vadd.f32 %v3724_v34, %v614_v14  ;;  %v3212_v26 = vpop.f32.mrb[31].mxu0  ;;  %v3264_v29 = vpop.f32.mrb[31].mxu1  ;;  %v6813_v8 = vmax.f32 %v3923_v13, 0.0  ;;  %v3938_v36 = vadd.f32 %v3724_v34, %v718_v45 }
 0x146   : > { %v6817_v24 = vmax.f32 %v3927_v3, 0.0  ;;  %932 = vrot.lane.b32.xlu1 %v6807_v55, %s3505_s17  ;;  %882 = vrot.lane.b32.xlu0 %v6808_v35, %s3505_s17  ;;  %v6815_v29 = vmax.f32 %v3938_v36, 0.0 }
 0x149   : > { %v619_v56 = vpop.f32.mrb[32].mxu0  ;;  %v723_v2 = vpop.f32.mrb[32].mxu1 }
 0x14a   : > { %v3941_v26 = vadd.f32 %v3724_v34, %v619_v56  ;;  %934 = vrot.lane.b32.xlu0 %v6813_v8, %s3505_s17  ;;  %884 = vrot.lane.b32.xlu1 %v6817_v24, %s3505_s17  ;;  %v3215_v14 = vpop.f32.mrb[33].mxu0  ;;  %v3951_v55 = vadd.f32 %v3724_v34, %v723_v2  ;;  %v3267_v45 = vpop.f32.mrb[33].mxu1 }
 0x14b   : > { %v622_v35 = vpop.f32.mrb[34].mxu0  ;;  %v726_v18 = vpop.f32.mrb[34].mxu1 }
 0x14c   : > { %v6816_v56 = vmax.f32 %v3941_v26, 0.0  ;;  %v3955_v19 = vadd.f32 %v3724_v34, %v622_v35  ;;  %v3216_v57 = vpop.f32.mrb[35].mxu0  ;;  %v3268_v61 = vpop.f32.mrb[35].mxu1  ;;  %v6821_v40 = vmax.f32 %v3951_v55, 0.0  ;;  %v3966_v2 = vadd.f32 %v3724_v34, %v726_v18 }
 0x14e   : > { %v6825_v8 = vmax.f32 %v3955_v19, 0.0  ;;  %936 = vrot.lane.b32.xlu1 %v6815_v29, %s3505_s17  ;;  %886 = vrot.lane.b32.xlu0 %v6816_v56, %s3505_s17  ;;  %v6823_v61 = vmax.f32 %v3966_v2, 0.0 }
 0x151   : > { %v627_v14 = vpop.f32.mrb[36].mxu0  ;;  %v731_v35 = vpop.f32.mrb[36].mxu1 }
 0x152   : > { %v3969_v57 = vadd.f32 %v3724_v34, %v627_v14  ;;  %938 = vrot.lane.b32.xlu0 %v6821_v40, %s3505_s17  ;;  %888 = vrot.lane.b32.xlu1 %v6825_v8, %s3505_s17  ;;  %v3219_v45 = vpop.f32.mrb[37].mxu0  ;;  %v3979_v29 = vadd.f32 %v3724_v34, %v731_v35  ;;  %v3271_v18 = vpop.f32.mrb[37].mxu1 }
 0x153   : > { %v630_v56 = vpop.f32.mrb[38].mxu0  ;;  %v734_v24 = vpop.f32.mrb[38].mxu1 }
 0x154   : > { %v6824_v14 = vmax.f32 %v3969_v57, 0.0  ;;  %v3983_v51 = vadd.f32 %v3724_v34, %v630_v56  ;;  %v3220_v31 = vpop.f32.mrb[39].mxu0  ;;  %v3272_v32 = vpop.f32.mrb[39].mxu1  ;;  %v6829_v21 = vmax.f32 %v3979_v29, 0.0  ;;  %v3994_v35 = vadd.f32 %v3724_v34, %v734_v24 }
 0x156   : > { %v6833_v40 = vmax.f32 %v3983_v51, 0.0  ;;  %940 = vrot.lane.b32.xlu1 %v6823_v61, %s3505_s17  ;;  %890 = vrot.lane.b32.xlu0 %v6824_v14, %s3505_s17  ;;  %v6831_v32 = vmax.f32 %v3994_v35, 0.0 }
 0x159   : > { %v635_v45 = vpop.f32.mrb[40].mxu0  ;;  %v739_v56 = vpop.f32.mrb[40].mxu1 }
 0x15a   : > { %v3997_v31 = vadd.f32 %v3724_v34, %v635_v45  ;;  %942 = vrot.lane.b32.xlu0 %v6829_v21, %s3505_s17  ;;  %892 = vrot.lane.b32.xlu1 %v6833_v40, %s3505_s17  ;;  %v3223_v18 = vpop.f32.mrb[41].mxu0  ;;  %v4007_v61 = vadd.f32 %v3724_v34, %v739_v56  ;;  %v3275_v24 = vpop.f32.mrb[41].mxu1 }
 0x15b   : > { %v638_v14 = vpop.f32.mrb[42].mxu0  ;;  %v742_v8 = vpop.f32.mrb[42].mxu1 }
 0x15c   : > { %v6832_v45 = vmax.f32 %v3997_v31, 0.0  ;;  %v4011_v27 = vadd.f32 %v3724_v34, %v638_v14  ;;  %v3224_v15 = vpop.f32.mrb[43].mxu0  ;;  %v3276_v16 = vpop.f32.mrb[43].mxu1  ;;  %v6837_v5 = vmax.f32 %v4007_v61, 0.0  ;;  %v4022_v56 = vadd.f32 %v3724_v34, %v742_v8 }
 0x15e   : > { %v775_v21 = vmax.f32 %v4011_v27, 0.0  ;;  %944 = vrot.lane.b32.xlu1 %v6831_v32, %s3505_s17  ;;  %894 = vrot.lane.b32.xlu0 %v6832_v45, %s3505_s17  ;;  %v6839_v16 = vmax.f32 %v4022_v56, 0.0 }
 0x161   : > { %v643_v18 = vpop.f32.mrb[44].mxu0  ;;  %v747_v14 = vpop.f32.mrb[44].mxu1 }
 0x162   : > { %v4025_v15 = vadd.f32 %v3724_v34, %v643_v18  ;;  %946 = vrot.lane.b32.xlu0 %v6837_v5, %s3505_s17  ;;  %896 = vrot.lane.b32.xlu1 %v775_v21, %s3505_s17  ;;  %v3227_v24 = vpop.f32.mrb[45].mxu0  ;;  %v4035_v32 = vadd.f32 %v3724_v34, %v747_v14  ;;  %v3279_v8 = vpop.f32.mrb[45].mxu1 }
 0x163   : > { %v646_v45 = vpop.f32.mrb[46].mxu0  ;;  %v750_v40 = vpop.f32.mrb[46].mxu1 }
 0x164   : > { %v6840_v18 = vmax.f32 %v4025_v15, 0.0  ;;  %v4039_v11 = vadd.f32 %v3724_v34, %v646_v45  ;;  %v3228_v63 = vpop.f32.mrb[47].mxu0  ;;  %v3280_v0 = vpop.f32.mrb[47].mxu1  ;;  %v802_v48 = vmax.f32 %v4035_v32, 0.0  ;;  %v4050_v14 = vadd.f32 %v3724_v34, %v750_v40 }
 0x166   : > { %v777_v5 = vmax.f32 %v4039_v11, 0.0  ;;  %948 = vrot.lane.b32.xlu1 %v6839_v16, %s3505_s17  ;;  %898 = vrot.lane.b32.xlu0 %v6840_v18, %s3505_s17  ;;  %v6841_v63 = vmax.f32 %v4050_v14, 0.0 }
 0x169   : > { %v651_v24 = vpop.f32.mrb[48].mxu0 }
 0x16a   : > { %v4053_v45 = vadd.f32 %v3724_v34, %v651_v24  ;;  %950 = vrot.lane.b32.xlu0 %v802_v48, %s3505_s17  ;;  %900 = vrot.lane.b32.xlu1 %v777_v5, %s3505_s17  ;;  %v3231_v0 = vpop.f32.mrb[49].mxu0 }
 0x16b   : > { %v654_v8 = vpop.f32.mrb[50].mxu0 }
 0x16c   : > { %v6842_v16 = vmax.f32 %v4053_v45, 0.0  ;;  %v4064_v40 = vadd.f32 %v3724_v34, %v654_v8  ;;  %v3232_v18 = vpop.f32.mrb[51].mxu0 }
 0x16e   : > { %v6843_v24 = vmax.f32 %v4064_v40, 0.0  ;;  %952 = vrot.lane.b32.xlu1 %v6841_v63, %s3505_s17  ;;  %902 = vrot.lane.b32.xlu0 %v6842_v16, %s3505_s17 }
 0x172   : > { %904 = vrot.lane.b32.xlu1 %v6843_v24, %s3505_s17 }
 0x180   : > { %v855_v0 = vpop.permute.xlu0 %854 }
 0x181   : > { %v4078_v34 = vmax.f32 %v754_v43, %v855_v0  ;;  %v6928_v0 = vmax.f32 %v3734_v44, 0.0  ;;  %v6931_v44 = vmax.f32 %v3773_v4, 0.0 }
 0x182   : > { %v909_v18 = vpop.permute.xlu1 %908 }
 0x183   : > { %1104 = vrot.lane.b32.xlu0 %v4078_v34, %s3506_s18 }
 0x184   : > { %v907_v8 = vpop.permute.xlu0 %906 }
 0x185   : > { %v4084_v63 = vmax.f32 %v780_v47, %v907_v8  ;;  %v4102_v8 = vmax.f32 %v6928_v0, %v909_v18  ;;  %v6932_v0 = vmax.f32 %v3770_v1, 0.0  ;;  %v6935_v1 = vmax.f32 %v3801_v20, 0.0 }
 0x187   : > { %1156 = vrot.lane.b32.xlu0 %v4084_v63, %s3506_s18 }
 0x188   : > { %v857_v16 = vpop.permute.xlu0 %856  ;;  %v859_v24 = vpop.permute.xlu1 %858 }
 0x189   : > { %v4090_v37 = vmax.f32 %v755_v58, %v857_v16  ;;  %v4094_v43 = vmax.f32 %v756_v59, %v859_v24  ;;  %v6930_v16 = vmax.f32 %v3759_v60, 0.0  ;;  %v6933_v60 = vmax.f32 %v3783_v7, 0.0 }
 0x18b   : > { %1108 = vrot.lane.b32.xlu0 %v4094_v43, %s3506_s18  ;;  %1106 = vrot.lane.b32.xlu1 %v4090_v37, %s3506_s18 }
 0x18c   : > { %v911_v38 = vpop.permute.xlu0 %910  ;;  %v861_v47 = vpop.permute.xlu1 %860 }
 0x18d   : > { %v4106_v58 = vmax.f32 %v6929_v49, %v911_v38  ;;  %v4114_v24 = vmax.f32 %v6930_v16, %v861_v47  ;;  %v6934_v16 = vmax.f32 %v3787_v12, 0.0  ;;  %v6937_v12 = vmax.f32 %v3811_v23, 0.0 }
 0x18f   : > { %1160 = vrot.lane.b32.xlu0 %v4106_v58, %s3506_s18  ;;  %1158 = vrot.lane.b32.xlu1 %v4102_v8, %s3506_s18 }
 0x190   : > { %v913_v52 = vpop.permute.xlu1 %912  ;;  %v863_v59 = vpop.permute.xlu0 %862 }
 0x191   : > { %v4118_v18 = vmax.f32 %v6931_v44, %v863_v59  ;;  %v4126_v49 = vmax.f32 %v6932_v0, %v913_v52  ;;  %v6936_v0 = vmax.f32 %v3798_v17, 0.0  ;;  %v6939_v17 = vmax.f32 %v3829_v39, 0.0 }
 0x193   : > { %1112 = vrot.lane.b32.xlu0 %v4118_v18, %s3506_s18  ;;  %1110 = vrot.lane.b32.xlu1 %v4114_v24, %s3506_s18 }
 0x194   : > { %v915_v54 = vpop.permute.xlu0 %914  ;;  %v865_v38 = vpop.permute.xlu1 %864 }
 0x195   : > { %v4130_v47 = vmax.f32 %v6933_v60, %v915_v54  ;;  %v4138_v44 = vmax.f32 %v6934_v16, %v865_v38  ;;  %v6938_v16 = vmax.f32 %v3815_v28, 0.0  ;;  %v6941_v28 = vmax.f32 %v3839_v42, 0.0 }
 0x197   : > { %1164 = vrot.lane.b32.xlu0 %v4130_v47, %s3506_s18  ;;  %1162 = vrot.lane.b32.xlu1 %v4126_v49, %s3506_s18 }
 0x198   : > { %v917_v4 = vpop.permute.xlu1 %916  ;;  %v867_v59 = vpop.permute.xlu0 %866 }
 0x199   : > { %v4142_v52 = vmax.f32 %v6935_v1, %v867_v59  ;;  %v4150_v60 = vmax.f32 %v6936_v0, %v917_v4  ;;  %v6940_v0 = vmax.f32 %v3826_v33, 0.0  ;;  %v6943_v33 = vmax.f32 %v3857_v6, 0.0 }
 0x19b   : > { %1116 = vrot.lane.b32.xlu0 %v4142_v52, %s3506_s18  ;;  %1114 = vrot.lane.b32.xlu1 %v4138_v44, %s3506_s18 }
 0x19c   : > { %v919_v7 = vpop.permute.xlu0 %918  ;;  %v869_v54 = vpop.permute.xlu1 %868 }
 0x19d   : > { %v4154_v38 = vmax.f32 %v6937_v12, %v919_v7  ;;  %v4162_v1 = vmax.f32 %v6938_v16, %v869_v54  ;;  %v6942_v16 = vmax.f32 %v3843_v53, 0.0  ;;  %v6945_v53 = vmax.f32 %v3867_v10, 0.0 }
 0x19f   : > { %1168 = vrot.lane.b32.xlu0 %v4154_v38, %s3506_s18  ;;  %1166 = vrot.lane.b32.xlu1 %v4150_v60, %s3506_s18 }
 0x1a0   : > { %v921_v20 = vpop.permute.xlu1 %920  ;;  %v871_v59 = vpop.permute.xlu0 %870 }
 0x1a1   : > { %v4166_v4 = vmax.f32 %v6939_v17, %v871_v59  ;;  %v4174_v12 = vmax.f32 %v6940_v0, %v921_v20  ;;  %v6944_v0 = vmax.f32 %v3854_v62, 0.0  ;;  %v6947_v62 = vmax.f32 %v3885_v41, 0.0 }
 0x1a3   : > { %1120 = vrot.lane.b32.xlu0 %v4166_v4, %s3506_s18  ;;  %1118 = vrot.lane.b32.xlu1 %v4162_v1, %s3506_s18 }
 0x1a4   : > { %v923_v23 = vpop.permute.xlu0 %922  ;;  %v873_v7 = vpop.permute.xlu1 %872 }
 0x1a5   : > { %v4178_v54 = vmax.f32 %v6941_v28, %v923_v23  ;;  %v4186_v17 = vmax.f32 %v6942_v16, %v873_v7  ;;  %v6946_v16 = vmax.f32 %v3871_v22, 0.0  ;;  %v6949_v22 = vmax.f32 %v3895_v50, 0.0 }
 0x1a7   : > { %1172 = vrot.lane.b32.xlu0 %v4178_v54, %s3506_s18  ;;  %1170 = vrot.lane.b32.xlu1 %v4174_v12, %s3506_s18 }
 0x1a8   : > { %v925_v39 = vpop.permute.xlu1 %924  ;;  %v875_v59 = vpop.permute.xlu0 %874 }
 0x1a9   : > { %v4190_v20 = vmax.f32 %v6943_v33, %v875_v59  ;;  %v4198_v28 = vmax.f32 %v6944_v0, %v925_v39  ;;  %v6948_v0 = vmax.f32 %v3882_v30, 0.0  ;;  %v6951_v30 = vmax.f32 %v3913_v46, 0.0 }
 0x1ab   : > { %1124 = vrot.lane.b32.xlu0 %v4190_v20, %s3506_s18  ;;  %1122 = vrot.lane.b32.xlu1 %v4186_v17, %s3506_s18 }
 0x1ac   : > { %v927_v42 = vpop.permute.xlu0 %926  ;;  %v877_v23 = vpop.permute.xlu1 %876 }
 0x1ad   : > { %v4202_v7 = vmax.f32 %v6945_v53, %v927_v42  ;;  %v4210_v33 = vmax.f32 %v6946_v16, %v877_v23  ;;  %v6950_v16 = vmax.f32 %v3899_v9, 0.0  ;;  %v6953_v9 = vmax.f32 %v3923_v13, 0.0 }
 0x1af   : > { %1176 = vrot.lane.b32.xlu0 %v4202_v7, %s3506_s18  ;;  %1174 = vrot.lane.b32.xlu1 %v4198_v28, %s3506_s18 }
 0x1b0   : > { %v929_v6 = vpop.permute.xlu1 %928  ;;  %v879_v59 = vpop.permute.xlu0 %878 }
 0x1b1   : > { %v4214_v39 = vmax.f32 %v6947_v62, %v879_v59  ;;  %v4222_v53 = vmax.f32 %v6948_v0, %v929_v6  ;;  %v6952_v0 = vmax.f32 %v3910_v25, 0.0  ;;  %v6955_v25 = vmax.f32 %v3941_v26, 0.0 }
 0x1b3   : > { %1128 = vrot.lane.b32.xlu0 %v4214_v39, %s3506_s18  ;;  %1126 = vrot.lane.b32.xlu1 %v4210_v33, %s3506_s18 }
 0x1b4   : > { %v931_v10 = vpop.permute.xlu0 %930  ;;  %v881_v42 = vpop.permute.xlu1 %880 }
 0x1b5   : > { %v4226_v23 = vmax.f32 %v6949_v22, %v931_v10  ;;  %v4234_v62 = vmax.f32 %v6950_v16, %v881_v42  ;;  %v6954_v16 = vmax.f32 %v3927_v3, 0.0  ;;  %v6957_v3 = vmax.f32 %v3951_v55, 0.0 }
 0x1b7   : > { %1180 = vrot.lane.b32.xlu0 %v4226_v23, %s3506_s18  ;;  %1178 = vrot.lane.b32.xlu1 %v4222_v53, %s3506_s18 }
 0x1b8   : > { %v933_v41 = vpop.permute.xlu1 %932  ;;  %v883_v59 = vpop.permute.xlu0 %882 }
 0x1b9   : > { %v4238_v6 = vmax.f32 %v6951_v30, %v883_v59  ;;  %v4246_v22 = vmax.f32 %v6952_v0, %v933_v41  ;;  %v6956_v0 = vmax.f32 %v3938_v36, 0.0  ;;  %v6959_v36 = vmax.f32 %v3969_v57, 0.0 }
 0x1bb   : > { %1132 = vrot.lane.b32.xlu0 %v4238_v6, %s3506_s18  ;;  %1130 = vrot.lane.b32.xlu1 %v4234_v62, %s3506_s18 }
 0x1bc   : > { %v935_v50 = vpop.permute.xlu0 %934  ;;  %v885_v10 = vpop.permute.xlu1 %884 }
 0x1bd   : > { %v4250_v42 = vmax.f32 %v6953_v9, %v935_v50  ;;  %v4258_v30 = vmax.f32 %v6954_v16, %v885_v10  ;;  %v6958_v16 = vmax.f32 %v3955_v19, 0.0  ;;  %v6961_v19 = vmax.f32 %v3979_v29, 0.0 }
 0x1bf   : > { %1184 = vrot.lane.b32.xlu0 %v4250_v42, %s3506_s18  ;;  %1182 = vrot.lane.b32.xlu1 %v4246_v22, %s3506_s18 }
 0x1c0   : > { %v937_v46 = vpop.permute.xlu1 %936  ;;  %v887_v59 = vpop.permute.xlu0 %886 }
 0x1c1   : > { %v4262_v41 = vmax.f32 %v6955_v25, %v887_v59  ;;  %v4270_v9 = vmax.f32 %v6956_v0, %v937_v46  ;;  %v6960_v0 = vmax.f32 %v3966_v2, 0.0  ;;  %v6964_v2 = vmax.f32 %v3997_v31, 0.0 }
 0x1c3   : > { %1136 = vrot.lane.b32.xlu0 %v4262_v41, %s3506_s18  ;;  %1134 = vrot.lane.b32.xlu1 %v4258_v30, %s3506_s18 }
 0x1c4   : > { %v939_v13 = vpop.permute.xlu0 %938  ;;  %v889_v50 = vpop.permute.xlu1 %888 }
 0x1c5   : > { %v4274_v10 = vmax.f32 %v6957_v3, %v939_v13  ;;  %v4282_v25 = vmax.f32 %v6958_v16, %v889_v50  ;;  %v6962_v16 = vmax.f32 %v3983_v51, 0.0  ;;  %v6968_v51 = vmax.f32 %v4007_v61, 0.0 }
 0x1c7   : > { %1188 = vrot.lane.b32.xlu0 %v4274_v10, %s3506_s18  ;;  %1186 = vrot.lane.b32.xlu1 %v4270_v9, %s3506_s18 }
 0x1c8   : > { %v941_v26 = vpop.permute.xlu1 %940  ;;  %v891_v59 = vpop.permute.xlu0 %890 }
 0x1c9   : > { %v4286_v46 = vmax.f32 %v6959_v36, %v891_v59  ;;  %v4294_v3 = vmax.f32 %v6960_v0, %v941_v26  ;;  %v6966_v0 = vmax.f32 %v3994_v35, 0.0  ;;  %v6971_v35 = vmax.f32 %v4025_v15, 0.0 }
 0x1cb   : > { %1140 = vrot.lane.b32.xlu0 %v4286_v46, %s3506_s18  ;;  %1138 = vrot.lane.b32.xlu1 %v4282_v25, %s3506_s18 }
 0x1cc   : > { %v943_v55 = vpop.permute.xlu0 %942  ;;  %v893_v13 = vpop.permute.xlu1 %892 }
 0x1cd   : > { %v4298_v50 = vmax.f32 %v6961_v19, %v943_v55  ;;  %v4306_v36 = vmax.f32 %v6962_v16, %v893_v13 }
 0x1cf   : > { %1192 = vrot.lane.b32.xlu0 %v4298_v50, %s3506_s18  ;;  %1190 = vrot.lane.b32.xlu1 %v4294_v3, %s3506_s18  ;;  %6963 = vst [vmem:[#allocation5_spill] sm:$0xff] %v4306_v36 }
 0x1d0   : > { %v945_v57 = vpop.permute.xlu1 %944  ;;  %v895_v59 = vpop.permute.xlu0 %894 }
 0x1d1   : > { %v4310_v26 = vmax.f32 %v6964_v2, %v895_v59  ;;  %v4318_v19 = vmax.f32 %v6966_v0, %v945_v57 }
 0x1d3   : > { %6965 = vst [vmem:[#allocation6_spill] sm:$0xff] %v4310_v26  ;;  %1144 = vrot.lane.b32.xlu0 %v4310_v26, %s3506_s18  ;;  %1142 = vrot.lane.b32.xlu1 %v4306_v36, %s3506_s18  ;;  %6967 = vst [vmem:[#allocation7_spill] sm:$0xff] %v4318_v19 }
 0x1d4   : > { %v947_v29 = vpop.permute.xlu0 %946  ;;  %v897_v55 = vpop.permute.xlu1 %896 }
 0x1d5   : > { %v4322_v13 = vmax.f32 %v6968_v51, %v947_v29  ;;  %v4330_v16 = vmax.f32 %v775_v21, %v897_v55  ;;  %v6973_v29 = vmax.f32 %v4022_v56, 0.0  ;;  %v6977_v56 = vmax.f32 %v4053_v45, 0.0 }
 0x1d7   : > { %6969 = vst [vmem:[#allocation8_spill] sm:$0xff] %v4322_v13  ;;  %1196 = vrot.lane.b32.xlu0 %v4322_v13, %s3506_s18  ;;  %1194 = vrot.lane.b32.xlu1 %v4318_v19, %s3506_s18  ;;  %6970 = vst [vmem:[#allocation9_spill] sm:$0xff] %v4330_v16 }
 0x1d8   : > { %v949_v31 = vpop.permute.xlu1 %948  ;;  %v899_v59 = vpop.permute.xlu0 %898 }
 0x1d9   : > { %v4334_v57 = vmax.f32 %v6971_v35, %v899_v59  ;;  %v4342_v0 = vmax.f32 %v6973_v29, %v949_v31 }
 0x1db   : > { %6972 = vst [vmem:[#allocation10_spill] sm:$0xff] %v4334_v57  ;;  %1148 = vrot.lane.b32.xlu0 %v4334_v57, %s3506_s18  ;;  %1146 = vrot.lane.b32.xlu1 %v4330_v16, %s3506_s18  ;;  %6974 = vst [vmem:[#allocation11_spill] sm:$0xff] %v4342_v0 }
 0x1dc   : > { %v951_v61 = vpop.permute.xlu0 %950  ;;  %v901_v2 = vpop.permute.xlu1 %900 }
 0x1dd   : > { %v4346_v21 = vmax.f32 %v802_v48, %v951_v61  ;;  %v4354_v55 = vmax.f32 %v777_v5, %v901_v2  ;;  %v6979_v48 = vmax.f32 %v4050_v14, 0.0  ;;  %v6981_v5 = vmax.f32 %v4064_v40, 0.0 }
 0x1df   : > { %6975 = vst [vmem:[#allocation12_spill] sm:$0xff] %v4346_v21  ;;  %1200 = vrot.lane.b32.xlu0 %v4346_v21, %s3506_s18  ;;  %1198 = vrot.lane.b32.xlu1 %v4342_v0, %s3506_s18  ;;  %6976 = vst [vmem:[#allocation13_spill] sm:$0xff] %v4354_v55 }
 0x1e0   : > { %v953_v27 = vpop.permute.xlu1 %952  ;;  %v903_v15 = vpop.permute.xlu0 %902 }
 0x1e1   : > { %v4358_v51 = vmax.f32 %v6977_v56, %v903_v15  ;;  %v4366_v32 = vmax.f32 %v6979_v48, %v953_v27 }
 0x1e3   : > { %6978 = vst [vmem:[#allocation14_spill] sm:$0xff] %v4358_v51  ;;  %1152 = vrot.lane.b32.xlu0 %v4358_v51, %s3506_s18  ;;  %1150 = vrot.lane.b32.xlu1 %v4354_v55, %s3506_s18  ;;  %6980 = vst [vmem:[#allocation15_spill] sm:$0xff] %v4366_v32 }
 0x1e4   : > { %v905_v31 = vpop.permute.xlu1 %904 }
 0x1e5   : > { %v4372_v11 = vmax.f32 %v6981_v5, %v905_v31 }
 0x1e7   : > { %1202 = vrot.lane.b32.xlu1 %v4366_v32, %s3506_s18  ;;  %6982 = vst [vmem:[#allocation16_spill] sm:$0xff] %v4372_v11 }
 0x1eb   : > { %1154 = vrot.lane.b32.xlu1 %v4372_v11, %s3506_s18 }
 0x1f5   : > { %v1105_v45 = vpop.permute.xlu0 %1104 }
 0x1f6   : > { %v4377_v59 = vmax.f32 %v4078_v34, %v1105_v45 }
 0x1f8   : > { %6983 = vst [vmem:[#allocation17_spill] sm:$0xff] %v4377_v59  ;;  %1354 = vrot.lane.b32.xlu0 %v4377_v59, %s3505_s17  ;;  %2254 = vrot.lane.b32.xlu1 %v4377_v59, %s3507_s19 }
 0x1f9   : > { %v1157_v14 = vpop.permute.xlu0 %1156 }
 0x1fa   : > { %v4384_v35 = vmax.f32 %v4084_v63, %v1157_v14 }
 0x1fc   : > { %6984 = vst [vmem:[#allocation18_spill] sm:$0xff] %v4384_v35  ;;  %1406 = vrot.lane.b32.xlu0 %v4384_v35, %s3505_s17 }
 0x1fd   : > { %v1109_v40 = vpop.permute.xlu0 %1108  ;;  %v1107_v61 = vpop.permute.xlu1 %1106 }
 0x1fe   : > { %v4389_v2 = vmax.f32 %v4090_v37, %v1107_v61  ;;  %v4451_v11 = vmax.f32 %v4094_v43, %v1109_v40 }
 0x200   : > { %6985 = vst [vmem:[#allocation19_spill] sm:$0xff] %v4389_v2  ;;  %1504 = vrot.lane.b32.xlu0 %v4377_v59, %s3508_s20  ;;  %1356 = vrot.lane.b32.xlu1 %v4389_v2, %s3505_s17  ;;  %6987 = vst [vmem:[#allocation21_spill] sm:$0xff] %v4451_v11 }
 0x201   : > { %v1161_v34 = vpop.permute.xlu0 %1160  ;;  %v1159_v29 = vpop.permute.xlu1 %1158 }
 0x202   : > { %v4396_v63 = vmax.f32 %v4102_v8, %v1159_v29  ;;  %v4462_v32 = vmax.f32 %v4106_v58, %v1161_v34 }
 0x204   : > { %6986 = vst [vmem:[#allocation20_spill] sm:$0xff] %v4396_v63  ;;  %1556 = vrot.lane.b32.xlu0 %v4384_v35, %s3508_s20  ;;  %1408 = vrot.lane.b32.xlu1 %v4396_v63, %s3505_s17  ;;  %6988 = vst [vmem:[#allocation22_spill] sm:$0xff] %v4462_v32 }
 0x205   : > { %v4402_v37 = vpop.permute.xlu0 %1112  ;;  %v1111_v27 = vpop.permute.xlu1 %1110 }
 0x206   : > { %v4481_v34 = vmax.f32 %v4114_v24, %v1111_v27 }
 0x208   : > { %1654 = vrot.lane.b32.xlu0 %v4377_v59, %s3509_s26  ;;  %1506 = vrot.lane.b32.xlu1 %v4389_v2, %s3508_s20  ;;  %6989 = vst [vmem:[#allocation23_spill] sm:$0xff] %v4481_v34 }
 0x209   : > { %v4408_v15 = vpop.permute.xlu0 %1164  ;;  %v1163_v8 = vpop.permute.xlu1 %1162 }
 0x20a   : > { %v4492_v57 = vmax.f32 %v4126_v49, %v1163_v8 }
 0x20c   : > { %1706 = vrot.lane.b32.xlu0 %v4384_v35, %s3509_s26  ;;  %1558 = vrot.lane.b32.xlu1 %v4396_v63, %s3508_s20  ;;  %6990 = vst [vmem:[#allocation24_spill] sm:$0xff] %v4492_v57 }
 0x20d   : > { %v4414_v56 = vpop.permute.xlu0 %1116  ;;  %v4416_v48 = vpop.permute.xlu1 %1114 }
 0x210   : > { %1804 = vrot.lane.b32.xlu0 %v4377_v59, %s3506_s18  ;;  %1656 = vrot.lane.b32.xlu1 %v4389_v2, %s3509_s26 }
 0x211   : > { %v4422_v31 = vpop.permute.xlu0 %1168  ;;  %v4424_v5 = vpop.permute.xlu1 %1166 }
 0x214   : > { %1954 = vrot.lane.b32.xlu0 %v4377_v59, %s3510_s28  ;;  %1708 = vrot.lane.b32.xlu1 %v4396_v63, %s3509_s26 }
 0x215   : > { %v4430_v45 = vpop.permute.xlu0 %1120  ;;  %v4432_v14 = vpop.permute.xlu1 %1118 }
 0x218   : > { %2104 = vrot.lane.b32.xlu0 %v4377_v59, %s3511_s29  ;;  %1806 = vrot.lane.b32.xlu1 %v4389_v2, %s3506_s18 }
 0x219   : > { %v4438_v61 = vpop.permute.xlu0 %1172  ;;  %v4440_v29 = vpop.permute.xlu1 %1170 }
 0x21c   : > { %2256 = vrot.lane.b32.xlu0 %v4389_v2, %s3507_s19  ;;  %1956 = vrot.lane.b32.xlu1 %v4389_v2, %s3510_s28 }
 0x21d   : > { %v4446_v63 = vpop.permute.xlu0 %1124  ;;  %v4448_v35 = vpop.permute.xlu1 %1122 }
 0x220   : > { %1358 = vrot.lane.b32.xlu0 %v4451_v11, %s3505_s17  ;;  %2106 = vrot.lane.b32.xlu1 %v4389_v2, %s3511_s29 }
 0x221   : > { %v4457_v59 = vpop.permute.xlu0 %1176  ;;  %v4459_v51 = vpop.permute.xlu1 %1174 }
 0x224   : > { %1410 = vrot.lane.b32.xlu0 %v4462_v32, %s3505_s17  ;;  %2108 = vrot.lane.b32.xlu1 %v4451_v11, %s3511_s29 }
 0x225   : > { %v4468_v43 = vpop.permute.xlu0 %1128  ;;  %v4470_v40 = vpop.permute.xlu1 %1126 }
 0x228   : > { %1508 = vrot.lane.b32.xlu0 %v4451_v11, %s3508_s20  ;;  %2258 = vrot.lane.b32.xlu1 %v4451_v11, %s3507_s19 }
 0x229   : > { %v4476_v2 = vpop.permute.xlu0 %1180  ;;  %v4478_v58 = vpop.permute.xlu1 %1178 }
 0x22c   : > { %1560 = vrot.lane.b32.xlu0 %v4462_v32, %s3508_s20  ;;  %1360 = vrot.lane.b32.xlu1 %v4481_v34, %s3505_s17 }
 0x22d   : > { %v4487_v55 = vpop.permute.xlu0 %1132  ;;  %v4489_v21 = vpop.permute.xlu1 %1130 }
 0x230   : > { %1658 = vrot.lane.b32.xlu0 %v4451_v11, %s3509_s26  ;;  %1412 = vrot.lane.b32.xlu1 %v4492_v57, %s3505_s17 }
 0x231   : > { %v4498_v24 = vpop.permute.xlu0 %1184  ;;  %v4500_v27 = vpop.permute.xlu1 %1182 }
 0x234   : > { %1710 = vrot.lane.b32.xlu0 %v4462_v32, %s3509_s26  ;;  %1510 = vrot.lane.b32.xlu1 %v4481_v34, %s3508_s20 }
 0x235   : > { %v4506_v0 = vpop.permute.xlu1 %1134  ;;  %v4508_v49 = vpop.permute.xlu0 %1136 }
 0x238   : > { %1808 = vrot.lane.b32.xlu0 %v4451_v11, %s3506_s18  ;;  %1562 = vrot.lane.b32.xlu1 %v4492_v57, %s3508_s20 }
 0x239   : > { %v4514_v8 = vpop.permute.xlu1 %1186  ;;  %v4516_v16 = vpop.permute.xlu0 %1188 }
 0x23c   : > { %1958 = vrot.lane.b32.xlu0 %v4451_v11, %s3510_s28  ;;  %1660 = vrot.lane.b32.xlu1 %v4481_v34, %s3509_s26  ;;  %v4538_v11 = vmax.f32 %v4118_v18, %v4402_v37  ;;  %v4556_v18 = vmax.f32 %v4130_v47, %v4408_v15  ;;  %v4578_v47 = vmax.f32 %v4150_v60, %v4424_v5 }
 0x23d   : > { %v4522_v32 = vpop.permute.xlu1 %1138  ;;  %v4530_v26 = vpop.permute.xlu0 %1140 }
 0x23e   : > { %6991 = vst [vmem:[#allocation25_spill] sm:$0xff] %v4538_v11  ;;  %6994 = vst [vmem:[#allocation28_spill] sm:$0xff] %v4556_v18 }
 0x23f   : > { %6996 = vst [vmem:[#allocation30_spill] sm:$0xff] %v4578_v47 }
 0x240   : > { %1960 = vrot.lane.b32.xlu0 %v4481_v34, %s3510_s28  ;;  %1712 = vrot.lane.b32.xlu1 %v4492_v57, %s3509_s26 }
 0x241   : > { %v4528_v13 = vpop.permute.xlu1 %1190  ;;  %v4542_v36 = vpop.permute.xlu0 %1192 }
 0x244   : > { %2110 = vrot.lane.b32.xlu0 %v4481_v34, %s3511_s29  ;;  %1810 = vrot.lane.b32.xlu1 %v4481_v34, %s3506_s18 }
 0x245   : > { %v4540_v19 = vpop.permute.xlu1 %1142  ;;  %v4558_v37 = vpop.permute.xlu0 %1144 }
 0x246   : > { %6992 = vst [vmem:[#allocation26_spill] sm:$0xff] %v4540_v19 }
 0x248   : > { %2260 = vrot.lane.b32.xlu0 %v4481_v34, %s3507_s19  ;;  %1962 = vrot.lane.b32.xlu1 %v4538_v11, %s3510_s28  ;;  %v4566_v34 = vmax.f32 %v4138_v44, %v4416_v48 }
 0x249   : > { %v4548_v57 = vpop.permute.xlu1 %1194  ;;  %v4570_v19 = vpop.permute.xlu0 %1196 }
 0x24a   : > { %6993 = vst [vmem:[#allocation27_spill] sm:$0xff] %v4548_v57  ;;  %6995 = vst [vmem:[#allocation29_spill] sm:$0xff] %v4566_v34 }
 0x24c   : > { %1362 = vrot.lane.b32.xlu0 %v4538_v11, %s3505_s17  ;;  %2112 = vrot.lane.b32.xlu1 %v4538_v11, %s3511_s29 }
 0x24d   : > { %v4568_v57 = vpop.permute.xlu1 %1146  ;;  %v4586_v44 = vpop.permute.xlu0 %1148 }
 0x24e   : > { %6997 = vst [vmem:[#allocation31_spill] sm:$0xff] %v4586_v44 }
 0x250   : > { %1414 = vrot.lane.b32.xlu0 %v4556_v18, %s3505_s17  ;;  %2262 = vrot.lane.b32.xlu1 %v4538_v11, %s3507_s19 }
 0x251   : > { %v4580_v15 = vpop.permute.xlu1 %1198  ;;  %v4594_v60 = vpop.permute.xlu0 %1200 }
 0x254   : > { %1512 = vrot.lane.b32.xlu0 %v4538_v11, %s3508_s20  ;;  %1364 = vrot.lane.b32.xlu1 %v4566_v34, %s3505_s17 }
 0x255   : > { %v4592_v48 = vpop.permute.xlu1 %1150  ;;  %v4606_v44 = vpop.permute.xlu0 %1152 }
 0x256   : > { %6998 = vst [vmem:[#allocation32_spill] sm:$0xff] %v4592_v48  ;;  %7000 = vst [vmem:[#allocation34_spill] sm:$0xff] %v4606_v44 }
 0x258   : > { %1564 = vrot.lane.b32.xlu0 %v4556_v18, %s3508_s20  ;;  %1416 = vrot.lane.b32.xlu1 %v4578_v47, %s3505_s17 }
 0x259   : > { %v4600_v5 = vpop.permute.xlu1 %1202 }
 0x25a   : > { %6999 = vst [vmem:[#allocation33_spill] sm:$0xff] %v4600_v5 }
 0x25c   : > { %1662 = vrot.lane.b32.xlu0 %v4538_v11, %s3509_s26  ;;  %1514 = vrot.lane.b32.xlu1 %v4566_v34, %s3508_s20 }
 0x25d   : > { %v4616_v48 = vpop.permute.xlu1 %1154 }
 0x260   : > { %1714 = vrot.lane.b32.xlu0 %v4556_v18, %s3509_s26  ;;  %1566 = vrot.lane.b32.xlu1 %v4578_v47, %s3508_s20  ;;  %v4614_v18 = vmax.f32 %v4142_v52, %v4414_v56 }
 0x262   : > { %7001 = vst [vmem:[#allocation35_spill] sm:$0xff] %v4614_v18 }
 0x264   : > { %1812 = vrot.lane.b32.xlu0 %v4538_v11, %s3506_s18  ;;  %1664 = vrot.lane.b32.xlu1 %v4566_v34, %s3509_s26  ;;  %v4626_v11 = vmax.f32 %v4154_v38, %v4422_v31 }
 0x268   : > { %1964 = vrot.lane.b32.xlu0 %v4566_v34, %s3510_s28  ;;  %1716 = vrot.lane.b32.xlu1 %v4578_v47, %s3509_s26 }
 0x26a   : > { %v4618_v5 = vpop.permute.xlu0 %1354  ;;  %v4628_v44 = vpop.permute.xlu1 %2254 }
 0x26b   : > { %7002 = vst [vmem:[#allocation36_spill] sm:$0xff] %v4628_v44 }
 0x26c   : > { %1366 = vrot.lane.b32.xlu0 %v4614_v18, %s3505_s17  ;;  %1814 = vrot.lane.b32.xlu1 %v4566_v34, %s3506_s18 }
 0x26e   : > { %v4630_v47 = vpop.permute.xlu0 %1406 }
 0x26f   : > { %7003 = vst [vmem:[#allocation37_spill] sm:$0xff] %v4630_v47 }
 0x270   : > { %1418 = vrot.lane.b32.xlu0 %v4626_v11, %s3505_s17  ;;  %2114 = vrot.lane.b32.xlu1 %v4566_v34, %s3511_s29 }
 0x272   : > { %v4636_v52 = vpop.permute.xlu0 %1504  ;;  %v4638_v56 = vpop.permute.xlu1 %1356 }
 0x273   : > { %7004 = vst [vmem:[#allocation38_spill] sm:$0xff] %v4636_v52 }
 0x274   : > { %1516 = vrot.lane.b32.xlu0 %v4614_v18, %s3508_s20  ;;  %2264 = vrot.lane.b32.xlu1 %v4566_v34, %s3507_s19 }
 0x276   : > { %v4644_v38 = vpop.permute.xlu0 %1556  ;;  %v4646_v31 = vpop.permute.xlu1 %1408 }
 0x277   : > { %7005 = vst [vmem:[#allocation39_spill] sm:$0xff] %v4644_v38  ;;  %7006 = vst [vmem:[#allocation40_spill] sm:$0xff] %v4646_v31  ;;  %v4662_v38 = vmax.f32 %v4162_v1, %v4432_v14 }
 0x278   : > { %1568 = vrot.lane.b32.xlu0 %v4626_v11, %s3508_s20  ;;  %2116 = vrot.lane.b32.xlu1 %v4614_v18, %s3511_s29 }
 0x279   : > { %7009 = vst [vmem:[#allocation43_spill] sm:$0xff] %v4662_v38 }
 0x27a   : > { %v4652_v47 = vpop.permute.xlu0 %1654  ;;  %v4654_v44 = vpop.permute.xlu1 %1506 }
 0x27b   : > { %7007 = vst [vmem:[#allocation41_spill] sm:$0xff] %v4652_v47  ;;  %7008 = vst [vmem:[#allocation42_spill] sm:$0xff] %v4654_v44  ;;  %v4674_v47 = vmax.f32 %v4174_v12, %v4440_v29 }
 0x27c   : > { %1666 = vrot.lane.b32.xlu0 %v4614_v18, %s3509_s26  ;;  %2266 = vrot.lane.b32.xlu1 %v4614_v18, %s3507_s19 }
 0x27d   : > { %7012 = vst [vmem:[#allocation46_spill] sm:$0xff] %v4674_v47 }
 0x27e   : > { %v4664_v31 = vpop.permute.xlu0 %1706  ;;  %v4666_v34 = vpop.permute.xlu1 %1558 }
 0x27f   : > { %7010 = vst [vmem:[#allocation44_spill] sm:$0xff] %v4664_v31  ;;  %7011 = vst [vmem:[#allocation45_spill] sm:$0xff] %v4666_v34 }
 0x280   : > { %1718 = vrot.lane.b32.xlu0 %v4626_v11, %s3509_s26  ;;  %1368 = vrot.lane.b32.xlu1 %v4662_v38, %s3505_s17 }
 0x282   : > { %v4676_v44 = vpop.permute.xlu0 %1804  ;;  %v4678_v52 = vpop.permute.xlu1 %1656 }
 0x284   : > { %1816 = vrot.lane.b32.xlu0 %v4614_v18, %s3506_s18  ;;  %1420 = vrot.lane.b32.xlu1 %v4674_v47, %s3505_s17 }
 0x286   : > { %v4684_v1 = vpop.permute.xlu0 %1954  ;;  %v4686_v14 = vpop.permute.xlu1 %1708 }
 0x287   : > { %7013 = vst [vmem:[#allocation47_spill] sm:$0xff] %v4684_v1  ;;  %7014 = vst [vmem:[#allocation48_spill] sm:$0xff] %v4686_v14  ;;  %v4710_v14 = vmax.f32 %v4166_v4, %v4430_v45 }
 0x288   : > { %1966 = vrot.lane.b32.xlu0 %v4614_v18, %s3510_s28  ;;  %1518 = vrot.lane.b32.xlu1 %v4662_v38, %s3508_s20 }
 0x289   : > { %7018 = vst [vmem:[#allocation52_spill] sm:$0xff] %v4710_v14 }
 0x28a   : > { %v4692_v12 = vpop.permute.xlu0 %2104  ;;  %v4694_v29 = vpop.permute.xlu1 %1806 }
 0x28b   : > { %7015 = vst [vmem:[#allocation49_spill] sm:$0xff] %v4692_v12 }
 0x28c   : > { %1818 = vrot.lane.b32.xlu0 %v4662_v38, %s3506_s18  ;;  %1570 = vrot.lane.b32.xlu1 %v4674_v47, %s3508_s20 }
 0x28e   : > { %v4700_v34 = vpop.permute.xlu0 %2256  ;;  %v4702_v31 = vpop.permute.xlu1 %1956 }
 0x28f   : > { %7016 = vst [vmem:[#allocation50_spill] sm:$0xff] %v4700_v34  ;;  %7017 = vst [vmem:[#allocation51_spill] sm:$0xff] %v4702_v31  ;;  %v4722_v34 = vmax.f32 %v4178_v54, %v4438_v61 }
 0x290   : > { %1968 = vrot.lane.b32.xlu0 %v4662_v38, %s3510_s28  ;;  %1668 = vrot.lane.b32.xlu1 %v4662_v38, %s3509_s26 }
 0x291   : > { %7019 = vst [vmem:[#allocation53_spill] sm:$0xff] %v4722_v34 }
 0x292   : > { %v4712_v18 = vpop.permute.xlu0 %1358  ;;  %v4714_v12 = vpop.permute.xlu1 %2106 }
 0x294   : > { %1370 = vrot.lane.b32.xlu0 %v4710_v14, %s3505_s17  ;;  %1720 = vrot.lane.b32.xlu1 %v4674_v47, %s3509_s26 }
 0x296   : > { %v4724_v31 = vpop.permute.xlu0 %1410  ;;  %v4726_v1 = vpop.permute.xlu1 %2108 }
 0x297   : > { %7020 = vst [vmem:[#allocation54_spill] sm:$0xff] %v4724_v31  ;;  %7021 = vst [vmem:[#allocation55_spill] sm:$0xff] %v4726_v1 }
 0x298   : > { %1422 = vrot.lane.b32.xlu0 %v4722_v34, %s3505_s17  ;;  %2118 = vrot.lane.b32.xlu1 %v4662_v38, %s3511_s29 }
 0x29a   : > { %v4732_v4 = vpop.permute.xlu0 %1508  ;;  %v4734_v45 = vpop.permute.xlu1 %2258 }
 0x29b   : > { %7022 = vst [vmem:[#allocation56_spill] sm:$0xff] %v4734_v45 }
 0x29c   : > { %1520 = vrot.lane.b32.xlu0 %v4710_v14, %s3508_s20  ;;  %2268 = vrot.lane.b32.xlu1 %v4662_v38, %s3507_s19 }
 0x29e   : > { %v4740_v54 = vpop.permute.xlu0 %1560  ;;  %v4742_v61 = vpop.permute.xlu1 %1360 }
 0x29f   : > { %7023 = vst [vmem:[#allocation57_spill] sm:$0xff] %v4740_v54  ;;  %v4758_v54 = vmax.f32 %v4186_v17, %v4448_v35 }
 0x2a0   : > { %1572 = vrot.lane.b32.xlu0 %v4722_v34, %s3508_s20  ;;  %2120 = vrot.lane.b32.xlu1 %v4710_v14, %s3511_s29 }
 0x2a1   : > { %7026 = vst [vmem:[#allocation60_spill] sm:$0xff] %v4758_v54 }
 0x2a2   : > { %v4748_v31 = vpop.permute.xlu0 %1658  ;;  %v4750_v1 = vpop.permute.xlu1 %1412 }
 0x2a3   : > { %7024 = vst [vmem:[#allocation58_spill] sm:$0xff] %v4748_v31  ;;  %7025 = vst [vmem:[#allocation59_spill] sm:$0xff] %v4750_v1  ;;  %v4770_v1 = vmax.f32 %v4198_v28, %v4459_v51 }
 0x2a4   : > { %1670 = vrot.lane.b32.xlu0 %v4710_v14, %s3509_s26  ;;  %2270 = vrot.lane.b32.xlu1 %v4710_v14, %s3507_s19 }
 0x2a5   : > { %7028 = vst [vmem:[#allocation62_spill] sm:$0xff] %v4770_v1 }
 0x2a6   : > { %v4760_v38 = vpop.permute.xlu0 %1710  ;;  %v4762_v45 = vpop.permute.xlu1 %1510 }
 0x2a7   : > { %7027 = vst [vmem:[#allocation61_spill] sm:$0xff] %v4760_v38 }
 0x2a8   : > { %1722 = vrot.lane.b32.xlu0 %v4722_v34, %s3509_s26  ;;  %1372 = vrot.lane.b32.xlu1 %v4758_v54, %s3505_s17 }
 0x2aa   : > { %v4772_v47 = vpop.permute.xlu0 %1808  ;;  %v4774_v31 = vpop.permute.xlu1 %1562 }
 0x2ab   : > { %7029 = vst [vmem:[#allocation63_spill] sm:$0xff] %v4774_v31 }
 0x2ac   : > { %1820 = vrot.lane.b32.xlu0 %v4710_v14, %s3506_s18  ;;  %1424 = vrot.lane.b32.xlu1 %v4770_v1, %s3505_s17 }
 0x2ae   : > { %v4780_v17 = vpop.permute.xlu0 %1958  ;;  %v4782_v35 = vpop.permute.xlu1 %1660 }
 0x2af   : > { %7030 = vst [vmem:[#allocation64_spill] sm:$0xff] %v4780_v17 }
 0x2b0   : > { %1970 = vrot.lane.b32.xlu0 %v4710_v14, %s3510_s28  ;;  %1522 = vrot.lane.b32.xlu1 %v4758_v54, %s3508_s20  ;;  %v4806_v14 = vmax.f32 %v4190_v20, %v4446_v63 }
 0x2b2   : > { %v4788_v28 = vpop.permute.xlu0 %1960  ;;  %v4790_v51 = vpop.permute.xlu1 %1712 }
 0x2b3   : > { %7031 = vst [vmem:[#allocation65_spill] sm:$0xff] %v4788_v28  ;;  %7032 = vst [vmem:[#allocation66_spill] sm:$0xff] %v4790_v51 }
 0x2b4   : > { %1822 = vrot.lane.b32.xlu0 %v4758_v54, %s3506_s18  ;;  %1574 = vrot.lane.b32.xlu1 %v4770_v1, %s3508_s20 }
 0x2b6   : > { %v4796_v31 = vpop.permute.xlu0 %2110  ;;  %v4798_v38 = vpop.permute.xlu1 %1810 }
 0x2b7   : > { %7033 = vst [vmem:[#allocation67_spill] sm:$0xff] %v4796_v31  ;;  %v4818_v31 = vmax.f32 %v4202_v7, %v4457_v59  ;;  %v4838_v7 = vmax.f32 %v4210_v33, %v4470_v40 }
 0x2b8   : > { %1972 = vrot.lane.b32.xlu0 %v4758_v54, %s3510_s28  ;;  %1672 = vrot.lane.b32.xlu1 %v4758_v54, %s3509_s26 }
 0x2b9   : > { %7035 = vst [vmem:[#allocation69_spill] sm:$0xff] %v4818_v31 }
 0x2ba   : > { %v4808_v51 = vpop.permute.xlu0 %2260  ;;  %v4810_v34 = vpop.permute.xlu1 %1962 }
 0x2bb   : > { %7034 = vst [vmem:[#allocation68_spill] sm:$0xff] %v4808_v51  ;;  %v4902_v51 = vmax.f32 %v4234_v62, %v4489_v21 }
 0x2bc   : > { %1374 = vrot.lane.b32.xlu0 %v4806_v14, %s3505_s17  ;;  %1724 = vrot.lane.b32.xlu1 %v4770_v1, %s3509_s26 }
 0x2be   : > { %v4820_v28 = vpop.permute.xlu0 %1362  ;;  %v4822_v17 = vpop.permute.xlu1 %2112 }
 0x2bf   : > { %7036 = vst [vmem:[#allocation70_spill] sm:$0xff] %v4822_v17  ;;  %v4898_v17 = vmax.f32 %v4226_v23, %v4476_v2 }
 0x2c0   : > { %1426 = vrot.lane.b32.xlu0 %v4818_v31, %s3505_s17  ;;  %2122 = vrot.lane.b32.xlu1 %v4758_v54, %s3511_s29 }
 0x2c1   : > { %7045 = vst [vmem:[#allocation79_spill] sm:$0xff] %v4898_v17 }
 0x2c2   : > { %v4828_v20 = vpop.permute.xlu0 %1414  ;;  %v4830_v63 = vpop.permute.xlu1 %2262 }
 0x2c3   : > { %7037 = vst [vmem:[#allocation71_spill] sm:$0xff] %v4828_v20  ;;  %7038 = vst [vmem:[#allocation72_spill] sm:$0xff] %v4830_v63  ;;  %v4850_v20 = vmax.f32 %v4222_v53, %v4478_v58 }
 0x2c4   : > { %1524 = vrot.lane.b32.xlu0 %v4806_v14, %s3508_s20  ;;  %2272 = vrot.lane.b32.xlu1 %v4758_v54, %s3507_s19 }
 0x2c5   : > { %7039 = vst [vmem:[#allocation73_spill] sm:$0xff] %v4850_v20 }
 0x2c6   : > { %v4840_v59 = vpop.permute.xlu0 %1512  ;;  %v4842_v1 = vpop.permute.xlu1 %1364 }
 0x2c8   : > { %1576 = vrot.lane.b32.xlu0 %v4818_v31, %s3508_s20  ;;  %1376 = vrot.lane.b32.xlu1 %v4838_v7, %s3505_s17 }
 0x2ca   : > { %v4852_v63 = vpop.permute.xlu0 %1564  ;;  %v4854_v54 = vpop.permute.xlu1 %1416 }
 0x2cb   : > { %7040 = vst [vmem:[#allocation74_spill] sm:$0xff] %v4852_v63  ;;  %7041 = vst [vmem:[#allocation75_spill] sm:$0xff] %v4854_v54 }
 0x2cc   : > { %1674 = vrot.lane.b32.xlu0 %v4806_v14, %s3509_s26  ;;  %1428 = vrot.lane.b32.xlu1 %v4850_v20, %s3505_s17 }
 0x2ce   : > { %v4860_v33 = vpop.permute.xlu0 %1662  ;;  %v4862_v40 = vpop.permute.xlu1 %1514 }
 0x2d0   : > { %1726 = vrot.lane.b32.xlu0 %v4818_v31, %s3509_s26  ;;  %1526 = vrot.lane.b32.xlu1 %v4838_v7, %s3508_s20 }
 0x2d2   : > { %v4868_v53 = vpop.permute.xlu0 %1714  ;;  %v4870_v58 = vpop.permute.xlu1 %1566 }
 0x2d3   : > { %7042 = vst [vmem:[#allocation76_spill] sm:$0xff] %v4868_v53  ;;  %7043 = vst [vmem:[#allocation77_spill] sm:$0xff] %v4870_v58  ;;  %v4886_v53 = vmax.f32 %v4214_v39, %v4468_v43 }
 0x2d4   : > { %1824 = vrot.lane.b32.xlu0 %v4806_v14, %s3506_s18  ;;  %1578 = vrot.lane.b32.xlu1 %v4850_v20, %s3508_s20 }
 0x2d6   : > { %v4876_v54 = vpop.permute.xlu0 %1812  ;;  %v4878_v63 = vpop.permute.xlu1 %1664 }
 0x2d8   : > { %1974 = vrot.lane.b32.xlu0 %v4806_v14, %s3510_s28  ;;  %1676 = vrot.lane.b32.xlu1 %v4838_v7, %s3509_s26 }
 0x2da   : > { %v4888_v58 = vpop.permute.xlu0 %1964  ;;  %v4890_v31 = vpop.permute.xlu1 %1716 }
 0x2db   : > { %7044 = vst [vmem:[#allocation78_spill] sm:$0xff] %v4890_v31  ;;  %v4914_v31 = vmax.f32 %v4246_v22, %v4500_v27 }
 0x2dc   : > { %1378 = vrot.lane.b32.xlu0 %v4886_v53, %s3505_s17  ;;  %1728 = vrot.lane.b32.xlu1 %v4850_v20, %s3509_s26 }
 0x2dd   : > { %7046 = vst [vmem:[#allocation80_spill] sm:$0xff] %v4914_v31 }
 0x2de   : > { %v4904_v39 = vpop.permute.xlu0 %1366  ;;  %v4906_v43 = vpop.permute.xlu1 %1814 }
 0x2e0   : > { %1430 = vrot.lane.b32.xlu0 %v4898_v17, %s3505_s17  ;;  %1380 = vrot.lane.b32.xlu1 %v4902_v51, %s3505_s17 }
 0x2e2   : > { %v4916_v23 = vpop.permute.xlu0 %1418  ;;  %v4918_v2 = vpop.permute.xlu1 %2114 }
 0x2e3   : > { %7047 = vst [vmem:[#allocation81_spill] sm:$0xff] %v4916_v23 }
 0x2e4   : > { %1528 = vrot.lane.b32.xlu0 %v4886_v53, %s3508_s20  ;;  %1432 = vrot.lane.b32.xlu1 %v4914_v31, %s3505_s17 }
 0x2e6   : > { %v4924_v62 = vpop.permute.xlu0 %1516  ;;  %v4926_v21 = vpop.permute.xlu1 %2264 }
 0x2e7   : > { %7048 = vst [vmem:[#allocation82_spill] sm:$0xff] %v4926_v21 }
 0x2e8   : > { %1580 = vrot.lane.b32.xlu0 %v4898_v17, %s3508_s20  ;;  %1530 = vrot.lane.b32.xlu1 %v4902_v51, %s3508_s20 }
 0x2ea   : > { %v4932_v22 = vpop.permute.xlu0 %1568  ;;  %v4934_v27 = vpop.permute.xlu1 %2116 }
 0x2eb   : > { %7049 = vst [vmem:[#allocation83_spill] sm:$0xff] %v4932_v22  ;;  %7050 = vst [vmem:[#allocation84_spill] sm:$0xff] %v4934_v27  ;;  %v4950_v22 = vmax.f32 %v4238_v6, %v4487_v55 }
 0x2ec   : > { %1678 = vrot.lane.b32.xlu0 %v4886_v53, %s3509_s26  ;;  %1582 = vrot.lane.b32.xlu1 %v4914_v31, %s3508_s20 }
 0x2ee   : > { %v4940_v23 = vpop.permute.xlu0 %1666  ;;  %v4942_v20 = vpop.permute.xlu1 %2266 }
 0x2ef   : > { %7051 = vst [vmem:[#allocation85_spill] sm:$0xff] %v4942_v20  ;;  %v4966_v20 = vmax.f32 %v4258_v30, %v4506_v0 }
 0x2f0   : > { %1730 = vrot.lane.b32.xlu0 %v4898_v17, %s3509_s26  ;;  %1680 = vrot.lane.b32.xlu1 %v4902_v51, %s3509_s26  ;;  %v4962_v17 = vmax.f32 %v4250_v42, %v4498_v24 }
 0x2f2   : > { %v4952_v21 = vpop.permute.xlu0 %1718  ;;  %v4954_v27 = vpop.permute.xlu1 %1368  ;;  %7053 = vst [vmem:[#allocation87_spill] sm:$0xff] %v4962_v17 }
 0x2f3   : > { %7052 = vst [vmem:[#allocation86_spill] sm:$0xff] %v4952_v21  ;;  %v4978_v21 = vmax.f32 %v4270_v9, %v4514_v8 }
 0x2f4   : > { %1382 = vrot.lane.b32.xlu0 %v4950_v22, %s3505_s17  ;;  %1732 = vrot.lane.b32.xlu1 %v4914_v31, %s3509_s26 }
 0x2f5   : > { %7055 = vst [vmem:[#allocation89_spill] sm:$0xff] %v4978_v21 }
 0x2f6   : > { %v4968_v6 = vpop.permute.xlu0 %1816  ;;  %v4970_v55 = vpop.permute.xlu1 %1420 }
 0x2f7   : > { %7054 = vst [vmem:[#allocation88_spill] sm:$0xff] %v4970_v55 }
 0x2f8   : > { %1434 = vrot.lane.b32.xlu0 %v4962_v17, %s3505_s17  ;;  %1384 = vrot.lane.b32.xlu1 %v4966_v20, %s3505_s17 }
 0x2fa   : > { %v4980_v42 = vpop.permute.xlu0 %1966  ;;  %v4982_v24 = vpop.permute.xlu1 %1518 }
 0x2fc   : > { %1532 = vrot.lane.b32.xlu0 %v4950_v22, %s3508_s20  ;;  %1436 = vrot.lane.b32.xlu1 %v4978_v21, %s3505_s17 }
 0x2fe   : > { %v4988_v30 = vpop.permute.xlu0 %1818  ;;  %v4990_v0 = vpop.permute.xlu1 %1570 }
 0x2ff   : > { %7056 = vst [vmem:[#allocation90_spill] sm:$0xff] %v4988_v30  ;;  %7057 = vst [vmem:[#allocation91_spill] sm:$0xff] %v4990_v0  ;;  %v5014_v0 = vmax.f32 %v4262_v41, %v4508_v49 }
 0x300   : > { %1584 = vrot.lane.b32.xlu0 %v4962_v17, %s3508_s20  ;;  %1534 = vrot.lane.b32.xlu1 %v4966_v20, %s3508_s20 }
 0x301   : > { %7060 = vst [vmem:[#allocation94_spill] sm:$0xff] %v5014_v0 }
 0x302   : > { %v4996_v9 = vpop.permute.xlu0 %1968  ;;  %v4998_v8 = vpop.permute.xlu1 %1668 }
 0x303   : > { %7058 = vst [vmem:[#allocation92_spill] sm:$0xff] %v4996_v9 }
 0x304   : > { %1682 = vrot.lane.b32.xlu0 %v4950_v22, %s3509_s26  ;;  %1586 = vrot.lane.b32.xlu1 %v4978_v21, %s3508_s20 }
 0x306   : > { %v5004_v55 = vpop.permute.xlu0 %1370  ;;  %v5006_v31 = vpop.permute.xlu1 %1720 }
 0x307   : > { %7059 = vst [vmem:[#allocation93_spill] sm:$0xff] %v5006_v31  ;;  %v5026_v31 = vmax.f32 %v4274_v10, %v4516_v16 }
 0x308   : > { %1734 = vrot.lane.b32.xlu0 %v4962_v17, %s3509_s26  ;;  %1684 = vrot.lane.b32.xlu1 %v4966_v20, %s3509_s26  ;;  %v5030_v17 = vmax.f32 %v4282_v25, %v4522_v32 }
 0x309   : > { %7063 = vst [vmem:[#allocation97_spill] sm:$0xff] %v5026_v31 }
 0x30a   : > { %v5016_v9 = vpop.permute.xlu0 %1422  ;;  %v5018_v30 = vpop.permute.xlu1 %2118  ;;  %7064 = vst [vmem:[#allocation98_spill] sm:$0xff] %v5030_v17 }
 0x30b   : > { %7061 = vst [vmem:[#allocation95_spill] sm:$0xff] %v5016_v9  ;;  %7062 = vst [vmem:[#allocation96_spill] sm:$0xff] %v5018_v30  ;;  %v5042_v9 = vmax.f32 %v4294_v3, %v4528_v13 }
 0x30c   : > { %1386 = vrot.lane.b32.xlu0 %v5014_v0, %s3505_s17  ;;  %1736 = vrot.lane.b32.xlu1 %v4978_v21, %s3509_s26 }
 0x30d   : > { %7066 = vst [vmem:[#allocation100_spill] sm:$0xff] %v5042_v9 }
 0x30e   : > { %v5032_v41 = vpop.permute.xlu0 %1520  ;;  %v5034_v49 = vpop.permute.xlu1 %2268 }
 0x30f   : > { %7065 = vst [vmem:[#allocation99_spill] sm:$0xff] %v5034_v49 }
 0x310   : > { %1438 = vrot.lane.b32.xlu0 %v5026_v31, %s3505_s17  ;;  %1388 = vrot.lane.b32.xlu1 %v5030_v17, %s3505_s17 }
 0x312   : > { %v5044_v10 = vpop.permute.xlu0 %1572  ;;  %v5046_v16 = vpop.permute.xlu1 %2120 }
 0x313   : > { %7067 = vst [vmem:[#allocation101_spill] sm:$0xff] %v5044_v10  ;;  %7068 = vst [vmem:[#allocation102_spill] sm:$0xff] %v5046_v16  ;;  %v7077_v16 = vld [vmem:[#allocation5_spill] sm:$0xff] }
 0x314   : > { %1536 = vrot.lane.b32.xlu0 %v5014_v0, %s3508_s20  ;;  %1440 = vrot.lane.b32.xlu1 %v5042_v9, %s3505_s17 }
 0x316   : > { %v5052_v25 = vpop.permute.xlu0 %1670  ;;  %v5054_v32 = vpop.permute.xlu1 %2270 }
 0x317   : > { %7069 = vst [vmem:[#allocation103_spill] sm:$0xff] %v5054_v32 }
 0x318   : > { %1588 = vrot.lane.b32.xlu0 %v5026_v31, %s3508_s20  ;;  %1538 = vrot.lane.b32.xlu1 %v5030_v17, %s3508_s20 }
 0x31a   : > { %v5060_v3 = vpop.permute.xlu0 %1722  ;;  %v5062_v13 = vpop.permute.xlu1 %1372 }
 0x31b   : > { %7070 = vst [vmem:[#allocation104_spill] sm:$0xff] %v5060_v3  ;;  %v5078_v3 = vmax.f32 %v4286_v46, %v4530_v26 }
 0x31c   : > { %1686 = vrot.lane.b32.xlu0 %v5014_v0, %s3509_s26  ;;  %1590 = vrot.lane.b32.xlu1 %v5042_v9, %s3508_s20 }
 0x31d   : > { %7072 = vst [vmem:[#allocation106_spill] sm:$0xff] %v5078_v3 }
 0x31e   : > { %v5068_v10 = vpop.permute.xlu0 %1820  ;;  %v5070_v21 = vpop.permute.xlu1 %1424 }
 0x31f   : > { %7071 = vst [vmem:[#allocation105_spill] sm:$0xff] %v5070_v21  ;;  %v5090_v21 = vmax.f32 %v4298_v50, %v4542_v36 }
 0x320   : > { %1738 = vrot.lane.b32.xlu0 %v5026_v31, %s3509_s26  ;;  %1688 = vrot.lane.b32.xlu1 %v5030_v17, %s3509_s26  ;;  %v7076_v31 = vld [vmem:[#allocation26_spill] sm:$0xff] }
 0x321   : > { %7075 = vst [vmem:[#allocation109_spill] sm:$0xff] %v5090_v21  ;;  %v5094_v30 = vmax.f32 %v7077_v16, %v7076_v31 }
 0x322   : > { %v5080_v32 = vpop.permute.xlu0 %1970  ;;  %v5082_v49 = vpop.permute.xlu1 %1522 }
 0x323   : > { %7073 = vst [vmem:[#allocation107_spill] sm:$0xff] %v5080_v32  ;;  %7074 = vst [vmem:[#allocation108_spill] sm:$0xff] %v5082_v49  ;;  %v7081_v32 = vld [vmem:[#allocation27_spill] sm:$0xff] }
 0x324   : > { %1390 = vrot.lane.b32.xlu0 %v5078_v3, %s3505_s17  ;;  %1740 = vrot.lane.b32.xlu1 %v5042_v9, %s3509_s26  ;;  %7078 = vst [vmem:[#allocation26_spill] sm:$0xff] %v5094_v30  ;;  %v7082_v9 = vld [vmem:[#allocation7_spill] sm:$0xff] }
 0x325   : > { %v5106_v49 = vmax.f32 %v7082_v9, %v7081_v32 }
 0x326   : > { %v5096_v46 = vpop.permute.xlu0 %1822  ;;  %v5098_v26 = vpop.permute.xlu1 %1574 }
 0x327   : > { %7079 = vst [vmem:[#allocation5_spill] sm:$0xff] %v5096_v46  ;;  %7080 = vst [vmem:[#allocation110_spill] sm:$0xff] %v5098_v26 }
 0x328   : > { %1442 = vrot.lane.b32.xlu0 %v5090_v21, %s3505_s17  ;;  %1392 = vrot.lane.b32.xlu1 %v5094_v30, %s3505_s17  ;;  %7083 = vst [vmem:[#allocation27_spill] sm:$0xff] %v5106_v49 }
 0x32a   : > { %v5108_v50 = vpop.permute.xlu0 %1972  ;;  %v5110_v36 = vpop.permute.xlu1 %1672 }
 0x32b   : > { %7084 = vst [vmem:[#allocation7_spill] sm:$0xff] %v5108_v50 }
 0x32c   : > { %1540 = vrot.lane.b32.xlu0 %v5078_v3, %s3508_s20  ;;  %1444 = vrot.lane.b32.xlu1 %v5106_v49, %s3505_s17 }
 0x32e   : > { %v5116_v31 = vpop.permute.xlu0 %1374  ;;  %v5118_v16 = vpop.permute.xlu1 %1724 }
 0x32f   : > { %7085 = vst [vmem:[#allocation111_spill] sm:$0xff] %v5116_v31  ;;  %7086 = vst [vmem:[#allocation112_spill] sm:$0xff] %v5118_v16 }
 0x330   : > { %1592 = vrot.lane.b32.xlu0 %v5090_v21, %s3508_s20  ;;  %1542 = vrot.lane.b32.xlu1 %v5094_v30, %s3508_s20 }
 0x332   : > { %v5124_v9 = vpop.permute.xlu0 %1426  ;;  %v5126_v32 = vpop.permute.xlu1 %2122 }
 0x333   : > { %7087 = vst [vmem:[#allocation113_spill] sm:$0xff] %v5124_v9  ;;  %7088 = vst [vmem:[#allocation114_spill] sm:$0xff] %v5126_v32  ;;  %v7091_v9 = vld [vmem:[#allocation6_spill] sm:$0xff] }
 0x334   : > { %1690 = vrot.lane.b32.xlu0 %v5078_v3, %s3509_s26  ;;  %1594 = vrot.lane.b32.xlu1 %v5106_v49, %s3508_s20  ;;  %v5142_v16 = vmax.f32 %v7091_v9, %v4558_v37 }
 0x336   : > { %v5132_v26 = vpop.permute.xlu0 %1524  ;;  %v5134_v31 = vpop.permute.xlu1 %2272  ;;  %7092 = vst [vmem:[#allocation6_spill] sm:$0xff] %v5142_v16 }
 0x337   : > { %7089 = vst [vmem:[#allocation115_spill] sm:$0xff] %v5132_v26  ;;  %7090 = vst [vmem:[#allocation116_spill] sm:$0xff] %v5134_v31  ;;  %v7095_v26 = vld [vmem:[#allocation8_spill] sm:$0xff]  ;;  %v7097_v31 = vld [vmem:[#allocation9_spill] sm:$0xff] }
 0x338   : > { %1742 = vrot.lane.b32.xlu0 %v5090_v21, %s3509_s26  ;;  %1692 = vrot.lane.b32.xlu1 %v5094_v30, %s3509_s26  ;;  %v5154_v21 = vmax.f32 %v7095_v26, %v4570_v19  ;;  %v5158_v46 = vmax.f32 %v7097_v31, %v4568_v57 }
 0x33a   : > { %v5144_v32 = vpop.permute.xlu0 %1576  ;;  %v5146_v50 = vpop.permute.xlu1 %1376  ;;  %7096 = vst [vmem:[#allocation8_spill] sm:$0xff] %v5154_v21  ;;  %7098 = vst [vmem:[#allocation9_spill] sm:$0xff] %v5158_v46 }
 0x33b   : > { %7093 = vst [vmem:[#allocation117_spill] sm:$0xff] %v5144_v32  ;;  %7094 = vst [vmem:[#allocation118_spill] sm:$0xff] %v5146_v50  ;;  %v7101_v32 = vld [vmem:[#allocation11_spill] sm:$0xff]  ;;  %v7119_v50 = vld [vmem:[#allocation13_spill] sm:$0xff] }
 0x33c   : > { %1394 = vrot.lane.b32.xlu0 %v5142_v16, %s3505_s17  ;;  %1744 = vrot.lane.b32.xlu1 %v5106_v49, %s3509_s26  ;;  %v5170_v49 = vmax.f32 %v7101_v32, %v4580_v15 }
 0x33e   : > { %v5160_v37 = vpop.permute.xlu0 %1674  ;;  %v5162_v9 = vpop.permute.xlu1 %1428  ;;  %7102 = vst [vmem:[#allocation11_spill] sm:$0xff] %v5170_v49 }
 0x33f   : > { %7099 = vst [vmem:[#allocation119_spill] sm:$0xff] %v5160_v37  ;;  %7100 = vst [vmem:[#allocation120_spill] sm:$0xff] %v5162_v9 }
 0x340   : > { %1446 = vrot.lane.b32.xlu0 %v5154_v21, %s3505_s17  ;;  %1396 = vrot.lane.b32.xlu1 %v5158_v46, %s3505_s17 }
 0x342   : > { %v5172_v19 = vpop.permute.xlu0 %1726  ;;  %v5174_v26 = vpop.permute.xlu1 %1526 }
 0x343   : > { %7103 = vst [vmem:[#allocation121_spill] sm:$0xff] %v5172_v19  ;;  %7104 = vst [vmem:[#allocation122_spill] sm:$0xff] %v5174_v26 }
 0x344   : > { %1544 = vrot.lane.b32.xlu0 %v5142_v16, %s3508_s20  ;;  %1448 = vrot.lane.b32.xlu1 %v5170_v49, %s3505_s17 }
 0x346   : > { %v5180_v57 = vpop.permute.xlu0 %1824  ;;  %v5182_v31 = vpop.permute.xlu1 %1578 }
 0x347   : > { %7105 = vst [vmem:[#allocation123_spill] sm:$0xff] %v5180_v57  ;;  %7106 = vst [vmem:[#allocation124_spill] sm:$0xff] %v5182_v31  ;;  %v7111_v31 = vld [vmem:[#allocation31_spill] sm:$0xff] }
 0x348   : > { %1596 = vrot.lane.b32.xlu0 %v5154_v21, %s3508_s20  ;;  %1546 = vrot.lane.b32.xlu1 %v5158_v46, %s3508_s20 }
 0x34a   : > { %v5188_v15 = vpop.permute.xlu0 %1974  ;;  %v5190_v32 = vpop.permute.xlu1 %1676 }
 0x34b   : > { %7107 = vst [vmem:[#allocation125_spill] sm:$0xff] %v5188_v15  ;;  %7108 = vst [vmem:[#allocation126_spill] sm:$0xff] %v5190_v32  ;;  %v7112_v15 = vld [vmem:[#allocation10_spill] sm:$0xff] }
 0x34c   : > { %1694 = vrot.lane.b32.xlu0 %v5142_v16, %s3509_s26  ;;  %1598 = vrot.lane.b32.xlu1 %v5170_v49, %s3508_s20  ;;  %v5206_v26 = vmax.f32 %v7112_v15, %v7111_v31 }
 0x34e   : > { %v5196_v9 = vpop.permute.xlu0 %1378  ;;  %v5198_v19 = vpop.permute.xlu1 %1728  ;;  %7113 = vst [vmem:[#allocation31_spill] sm:$0xff] %v5206_v26 }
 0x34f   : > { %7109 = vst [vmem:[#allocation127_spill] sm:$0xff] %v5196_v9  ;;  %7110 = vst [vmem:[#allocation128_spill] sm:$0xff] %v5198_v19  ;;  %v7116_v19 = vld [vmem:[#allocation12_spill] sm:$0xff] }
 0x350   : > { %1746 = vrot.lane.b32.xlu0 %v5154_v21, %s3509_s26  ;;  %1696 = vrot.lane.b32.xlu1 %v5158_v46, %s3509_s26  ;;  %v5218_v21 = vmax.f32 %v7116_v19, %v4594_v60  ;;  %v7118_v9 = vld [vmem:[#allocation32_spill] sm:$0xff] }
 0x351   : > { %v5222_v37 = vmax.f32 %v7119_v50, %v7118_v9 }
 0x352   : > { %v5208_v32 = vpop.permute.xlu0 %1430  ;;  %v5210_v57 = vpop.permute.xlu1 %1380  ;;  %7117 = vst [vmem:[#allocation12_spill] sm:$0xff] %v5218_v21 }
 0x353   : > { %7114 = vst [vmem:[#allocation10_spill] sm:$0xff] %v5208_v32  ;;  %7115 = vst [vmem:[#allocation129_spill] sm:$0xff] %v5210_v57  ;;  %v7123_v32 = vld [vmem:[#allocation33_spill] sm:$0xff] }
 0x354   : > { %1398 = vrot.lane.b32.xlu0 %v5206_v26, %s3505_s17  ;;  %1748 = vrot.lane.b32.xlu1 %v5170_v49, %s3509_s26  ;;  %7120 = vst [vmem:[#allocation32_spill] sm:$0xff] %v5222_v37  ;;  %v7124_v49 = vld [vmem:[#allocation15_spill] sm:$0xff] }
 0x355   : > { %v5234_v57 = vmax.f32 %v7124_v49, %v7123_v32 }
 0x356   : > { %v5224_v31 = vpop.permute.xlu0 %1528  ;;  %v5226_v15 = vpop.permute.xlu1 %1432 }
 0x357   : > { %7121 = vst [vmem:[#allocation13_spill] sm:$0xff] %v5224_v31  ;;  %7122 = vst [vmem:[#allocation130_spill] sm:$0xff] %v5226_v15 }
 0x358   : > { %1450 = vrot.lane.b32.xlu0 %v5218_v21, %s3505_s17  ;;  %1400 = vrot.lane.b32.xlu1 %v5222_v37, %s3505_s17  ;;  %7125 = vst [vmem:[#allocation33_spill] sm:$0xff] %v5234_v57 }
 0x35a   : > { %v5236_v60 = vpop.permute.xlu0 %1580  ;;  %v5238_v19 = vpop.permute.xlu1 %1530 }
 0x35b   : > { %7126 = vst [vmem:[#allocation15_spill] sm:$0xff] %v5236_v60  ;;  %7127 = vst [vmem:[#allocation131_spill] sm:$0xff] %v5238_v19 }
 0x35c   : > { %1548 = vrot.lane.b32.xlu0 %v5206_v26, %s3508_s20  ;;  %1452 = vrot.lane.b32.xlu1 %v5234_v57, %s3505_s17 }
 0x35e   : > { %v5244_v50 = vpop.permute.xlu0 %1678  ;;  %v5246_v9 = vpop.permute.xlu1 %1582 }
 0x35f   : > { %7128 = vst [vmem:[#allocation132_spill] sm:$0xff] %v5244_v50  ;;  %7129 = vst [vmem:[#allocation133_spill] sm:$0xff] %v5246_v9  ;;  %v7134_v9 = vld [vmem:[#allocation34_spill] sm:$0xff] }
 0x360   : > { %1600 = vrot.lane.b32.xlu0 %v5218_v21, %s3508_s20  ;;  %1550 = vrot.lane.b32.xlu1 %v5222_v37, %s3508_s20 }
 0x362   : > { %v5252_v49 = vpop.permute.xlu0 %1730  ;;  %v5254_v32 = vpop.permute.xlu1 %1680 }
 0x363   : > { %7130 = vst [vmem:[#allocation134_spill] sm:$0xff] %v5252_v49  ;;  %7131 = vst [vmem:[#allocation135_spill] sm:$0xff] %v5254_v32  ;;  %v7135_v49 = vld [vmem:[#allocation14_spill] sm:$0xff] }
 0x364   : > { %1698 = vrot.lane.b32.xlu0 %v5206_v26, %s3509_s26  ;;  %1602 = vrot.lane.b32.xlu1 %v5234_v57, %s3508_s20  ;;  %v5270_v50 = vmax.f32 %v7135_v49, %v7134_v9 }
 0x366   : > { %v5260_v15 = vpop.permute.xlu0 %1382  ;;  %v5262_v60 = vpop.permute.xlu1 %1732  ;;  %7136 = vst [vmem:[#allocation34_spill] sm:$0xff] %v5270_v50 }
 0x367   : > { %7132 = vst [vmem:[#allocation136_spill] sm:$0xff] %v5260_v15  ;;  %7133 = vst [vmem:[#allocation137_spill] sm:$0xff] %v5262_v60  ;;  %v7138_v60 = vld [vmem:[#allocation16_spill] sm:$0xff] }
 0x368   : > { %1750 = vrot.lane.b32.xlu0 %v5218_v21, %s3509_s26  ;;  %1700 = vrot.lane.b32.xlu1 %v5222_v37, %s3509_s26  ;;  %v5282_v21 = vmax.f32 %v7138_v60, %v4616_v48 }
 0x36a   : > { %v5272_v32 = vpop.permute.xlu0 %1434  ;;  %v5274_v19 = vpop.permute.xlu1 %1384  ;;  %7139 = vst [vmem:[#allocation16_spill] sm:$0xff] %v5282_v21 }
 0x36b   : > { %7137 = vst [vmem:[#allocation14_spill] sm:$0xff] %v5272_v32 }
 0x36c   : > { %1402 = vrot.lane.b32.xlu0 %v5270_v50, %s3505_s17  ;;  %1752 = vrot.lane.b32.xlu1 %v5234_v57, %s3509_s26 }
 0x36e   : > { %v5284_v15 = vpop.permute.xlu0 %1532  ;;  %v5286_v31 = vpop.permute.xlu1 %1436 }
 0x36f   : > { %7140 = vst [vmem:[#allocation138_spill] sm:$0xff] %v5286_v31 }
 0x370   : > { %1552 = vrot.lane.b32.xlu0 %v5270_v50, %s3508_s20  ;;  %1404 = vrot.lane.b32.xlu1 %v5282_v21, %s3505_s17  ;;  %s3443_s17 = sshll.u32 %s3513_s25, 4  ;;  %s3444_s17 = int_to_ptr.vmem [resolvable:$false] %s3443_s17 }
 0x372   : > { %v5292_v9 = vpop.permute.xlu0 %1584  ;;  %v5294_v49 = vpop.permute.xlu1 %1534 }
 0x373   : > { %7141 = vst [vmem:[#allocation139_spill] sm:$0xff] %v5292_v9 }
 0x374   : > { %1702 = vrot.lane.b32.xlu0 %v5270_v50, %s3509_s26  ;;  %1554 = vrot.lane.b32.xlu1 %v5282_v21, %s3508_s20  ;;  %s3445_s20 = scalar_lea.vmem %s3444_s17, 32 }
 0x376   : > { %v5300_v48 = vpop.permute.xlu0 %1682  ;;  %v5302_v60 = vpop.permute.xlu1 %1586 }
 0x377   : > { %7142 = vst [vmem:[#allocation140_spill] sm:$0xff] %v5302_v60 }
 0x378   : > { %1826 = vrot.lane.b32.xlu0 %v4838_v7, %s3506_s18  ;;  %1704 = vrot.lane.b32.xlu1 %v5282_v21, %s3509_s26 }
 0x37a   : > { %v5308_v31 = vpop.permute.xlu0 %1734  ;;  %v5310_v9 = vpop.permute.xlu1 %1684 }
 0x37b   : > { %7143 = vst [vmem:[#allocation141_spill] sm:$0xff] %v5308_v31  ;;  %7144 = vst [vmem:[#allocation142_spill] sm:$0xff] %v5310_v9 }
 0x37c   : > { %1976 = vrot.lane.b32.xlu0 %v4838_v7, %s3510_s28  ;;  %2124 = vrot.lane.b32.xlu1 %v4806_v14, %s3511_s29 }
 0x37e   : > { %v5316_v32 = vpop.permute.xlu0 %1386  ;;  %v5318_v57 = vpop.permute.xlu1 %1736 }
 0x37f   : > { %7145 = vst [vmem:[#allocation143_spill] sm:$0xff] %v5316_v32  ;;  %7146 = vst [vmem:[#allocation144_spill] sm:$0xff] %v5318_v57 }
 0x380   : > { %1828 = vrot.lane.b32.xlu0 %v4886_v53, %s3506_s18  ;;  %2274 = vrot.lane.b32.xlu1 %v4806_v14, %s3507_s19 }
 0x382   : > { %v5324_v60 = vpop.permute.xlu0 %1438  ;;  %v5326_v31 = vpop.permute.xlu1 %1388 }
 0x383   : > { %7147 = vst [vmem:[#allocation145_spill] sm:$0xff] %v5324_v60  ;;  %7148 = vst [vmem:[#allocation146_spill] sm:$0xff] %v5326_v31 }
 0x384   : > { %1978 = vrot.lane.b32.xlu0 %v4886_v53, %s3510_s28  ;;  %2126 = vrot.lane.b32.xlu1 %v4838_v7, %s3511_s29 }
 0x386   : > { %v5332_v9 = vpop.permute.xlu0 %1536  ;;  %v5334_v32 = vpop.permute.xlu1 %1440 }
 0x387   : > { %7149 = vst [vmem:[#allocation147_spill] sm:$0xff] %v5332_v9  ;;  %7150 = vst [vmem:[#allocation148_spill] sm:$0xff] %v5334_v32 }
 0x388   : > { %1830 = vrot.lane.b32.xlu0 %v4902_v51, %s3506_s18  ;;  %2276 = vrot.lane.b32.xlu1 %v4838_v7, %s3507_s19 }
 0x38a   : > { %v5340_v57 = vpop.permute.xlu0 %1588  ;;  %v5342_v60 = vpop.permute.xlu1 %1538 }
 0x38b   : > { %7151 = vst [vmem:[#allocation149_spill] sm:$0xff] %v5340_v57  ;;  %7152 = vst [vmem:[#allocation150_spill] sm:$0xff] %v5342_v60 }
 0x38c   : > { %1980 = vrot.lane.b32.xlu0 %v4902_v51, %s3510_s28  ;;  %2128 = vrot.lane.b32.xlu1 %v4886_v53, %s3511_s29 }
 0x38e   : > { %v5348_v31 = vpop.permute.xlu0 %1686  ;;  %v5350_v9 = vpop.permute.xlu1 %1590 }
 0x38f   : > { %7153 = vst [vmem:[#allocation151_spill] sm:$0xff] %v5348_v31  ;;  %7154 = vst [vmem:[#allocation152_spill] sm:$0xff] %v5350_v9 }
 0x390   : > { %1832 = vrot.lane.b32.xlu0 %v4950_v22, %s3506_s18  ;;  %2278 = vrot.lane.b32.xlu1 %v4886_v53, %s3507_s19 }
 0x392   : > { %v5356_v32 = vpop.permute.xlu0 %1738  ;;  %v5358_v57 = vpop.permute.xlu1 %1688 }
 0x393   : > { %7155 = vst [vmem:[#allocation153_spill] sm:$0xff] %v5356_v32  ;;  %7156 = vst [vmem:[#allocation154_spill] sm:$0xff] %v5358_v57 }
 0x394   : > { %1982 = vrot.lane.b32.xlu0 %v4950_v22, %s3510_s28  ;;  %2130 = vrot.lane.b32.xlu1 %v4902_v51, %s3511_s29 }
 0x396   : > { %v5364_v60 = vpop.permute.xlu0 %1390  ;;  %v5366_v31 = vpop.permute.xlu1 %1740 }
 0x397   : > { %7157 = vst [vmem:[#allocation155_spill] sm:$0xff] %v5364_v60  ;;  %7158 = vst [vmem:[#allocation156_spill] sm:$0xff] %v5366_v31 }
 0x398   : > { %1834 = vrot.lane.b32.xlu0 %v4966_v20, %s3506_s18  ;;  %2280 = vrot.lane.b32.xlu1 %v4902_v51, %s3507_s19 }
 0x39a   : > { %v5372_v9 = vpop.permute.xlu0 %1442  ;;  %v5374_v32 = vpop.permute.xlu1 %1392 }
 0x39b   : > { %7159 = vst [vmem:[#allocation157_spill] sm:$0xff] %v5372_v9  ;;  %7160 = vst [vmem:[#allocation158_spill] sm:$0xff] %v5374_v32 }
 0x39c   : > { %1984 = vrot.lane.b32.xlu0 %v4966_v20, %s3510_s28  ;;  %2132 = vrot.lane.b32.xlu1 %v4950_v22, %s3511_s29 }
 0x39e   : > { %v5380_v57 = vpop.permute.xlu0 %1540  ;;  %v5382_v60 = vpop.permute.xlu1 %1444 }
 0x39f   : > { %7161 = vst [vmem:[#allocation159_spill] sm:$0xff] %v5380_v57  ;;  %7162 = vst [vmem:[#allocation160_spill] sm:$0xff] %v5382_v60 }
 0x3a0   : > { %1836 = vrot.lane.b32.xlu0 %v5014_v0, %s3506_s18  ;;  %2282 = vrot.lane.b32.xlu1 %v4950_v22, %s3507_s19 }
 0x3a2   : > { %v5388_v31 = vpop.permute.xlu0 %1592  ;;  %v5390_v9 = vpop.permute.xlu1 %1542 }
 0x3a3   : > { %7163 = vst [vmem:[#allocation161_spill] sm:$0xff] %v5388_v31  ;;  %7164 = vst [vmem:[#allocation162_spill] sm:$0xff] %v5390_v9 }
 0x3a4   : > { %1986 = vrot.lane.b32.xlu0 %v5014_v0, %s3510_s28  ;;  %2134 = vrot.lane.b32.xlu1 %v4966_v20, %s3511_s29 }
 0x3a6   : > { %v5396_v32 = vpop.permute.xlu0 %1690  ;;  %v5398_v57 = vpop.permute.xlu1 %1594 }
 0x3a7   : > { %7165 = vst [vmem:[#allocation163_spill] sm:$0xff] %v5396_v32  ;;  %7166 = vst [vmem:[#allocation164_spill] sm:$0xff] %v5398_v57 }
 0x3a8   : > { %1838 = vrot.lane.b32.xlu0 %v5030_v17, %s3506_s18  ;;  %2284 = vrot.lane.b32.xlu1 %v4966_v20, %s3507_s19 }
 0x3aa   : > { %v5404_v60 = vpop.permute.xlu0 %1742  ;;  %v5406_v31 = vpop.permute.xlu1 %1692 }
 0x3ab   : > { %7167 = vst [vmem:[#allocation165_spill] sm:$0xff] %v5404_v60  ;;  %7168 = vst [vmem:[#allocation166_spill] sm:$0xff] %v5406_v31 }
 0x3ac   : > { %1988 = vrot.lane.b32.xlu0 %v5030_v17, %s3510_s28  ;;  %2136 = vrot.lane.b32.xlu1 %v5014_v0, %s3511_s29 }
 0x3ae   : > { %v5412_v9 = vpop.permute.xlu0 %1394  ;;  %v5414_v32 = vpop.permute.xlu1 %1744 }
 0x3af   : > { %7169 = vst [vmem:[#allocation167_spill] sm:$0xff] %v5412_v9  ;;  %7170 = vst [vmem:[#allocation168_spill] sm:$0xff] %v5414_v32 }
 0x3b0   : > { %1840 = vrot.lane.b32.xlu0 %v5078_v3, %s3506_s18  ;;  %2286 = vrot.lane.b32.xlu1 %v5014_v0, %s3507_s19 }
 0x3b2   : > { %v5420_v57 = vpop.permute.xlu0 %1446  ;;  %v5422_v60 = vpop.permute.xlu1 %1396 }
 0x3b3   : > { %7171 = vst [vmem:[#allocation169_spill] sm:$0xff] %v5420_v57  ;;  %7172 = vst [vmem:[#allocation170_spill] sm:$0xff] %v5422_v60 }
 0x3b4   : > { %1990 = vrot.lane.b32.xlu0 %v5078_v3, %s3510_s28  ;;  %2138 = vrot.lane.b32.xlu1 %v5030_v17, %s3511_s29 }
 0x3b6   : > { %v5428_v31 = vpop.permute.xlu0 %1544  ;;  %v5430_v9 = vpop.permute.xlu1 %1448 }
 0x3b7   : > { %7173 = vst [vmem:[#allocation171_spill] sm:$0xff] %v5428_v31  ;;  %7174 = vst [vmem:[#allocation172_spill] sm:$0xff] %v5430_v9 }
 0x3b8   : > { %1842 = vrot.lane.b32.xlu0 %v5094_v30, %s3506_s18  ;;  %2288 = vrot.lane.b32.xlu1 %v5030_v17, %s3507_s19  ;;  %v7210_v17 = vld [vmem:[#allocation22_spill] sm:$0xff] }
 0x3ba   : > { %v5436_v32 = vpop.permute.xlu0 %1596  ;;  %v5438_v57 = vpop.permute.xlu1 %1546 }
 0x3bb   : > { %7175 = vst [vmem:[#allocation173_spill] sm:$0xff] %v5436_v32  ;;  %7176 = vst [vmem:[#allocation174_spill] sm:$0xff] %v5438_v57 }
 0x3bc   : > { %1992 = vrot.lane.b32.xlu0 %v5094_v30, %s3510_s28  ;;  %2140 = vrot.lane.b32.xlu1 %v5078_v3, %s3511_s29 }
 0x3be   : > { %v5444_v60 = vpop.permute.xlu0 %1694  ;;  %v5446_v31 = vpop.permute.xlu1 %1598 }
 0x3bf   : > { %7177 = vst [vmem:[#allocation175_spill] sm:$0xff] %v5444_v60  ;;  %7178 = vst [vmem:[#allocation176_spill] sm:$0xff] %v5446_v31 }
 0x3c0   : > { %1844 = vrot.lane.b32.xlu0 %v5142_v16, %s3506_s18  ;;  %2290 = vrot.lane.b32.xlu1 %v5078_v3, %s3507_s19 }
 0x3c2   : > { %v5452_v9 = vpop.permute.xlu0 %1746  ;;  %v5454_v32 = vpop.permute.xlu1 %1696 }
 0x3c3   : > { %7179 = vst [vmem:[#allocation177_spill] sm:$0xff] %v5452_v9  ;;  %7180 = vst [vmem:[#allocation178_spill] sm:$0xff] %v5454_v32 }
 0x3c4   : > { %1994 = vrot.lane.b32.xlu0 %v5142_v16, %s3510_s28  ;;  %2142 = vrot.lane.b32.xlu1 %v5094_v30, %s3511_s29 }
 0x3c6   : > { %v5460_v57 = vpop.permute.xlu0 %1398  ;;  %v5462_v60 = vpop.permute.xlu1 %1748 }
 0x3c7   : > { %7181 = vst [vmem:[#allocation179_spill] sm:$0xff] %v5460_v57  ;;  %7182 = vst [vmem:[#allocation180_spill] sm:$0xff] %v5462_v60 }
 0x3c8   : > { %1846 = vrot.lane.b32.xlu0 %v5158_v46, %s3506_s18  ;;  %2292 = vrot.lane.b32.xlu1 %v5094_v30, %s3507_s19 }
 0x3ca   : > { %v5468_v31 = vpop.permute.xlu0 %1450  ;;  %v5470_v9 = vpop.permute.xlu1 %1400 }
 0x3cb   : > { %7183 = vst [vmem:[#allocation181_spill] sm:$0xff] %v5468_v31  ;;  %7184 = vst [vmem:[#allocation182_spill] sm:$0xff] %v5470_v9 }
 0x3cc   : > { %1996 = vrot.lane.b32.xlu0 %v5158_v46, %s3510_s28  ;;  %2144 = vrot.lane.b32.xlu1 %v5142_v16, %s3511_s29 }
 0x3ce   : > { %v5476_v32 = vpop.permute.xlu0 %1548  ;;  %v5478_v57 = vpop.permute.xlu1 %1452 }
 0x3cf   : > { %7185 = vst [vmem:[#allocation183_spill] sm:$0xff] %v5476_v32  ;;  %7186 = vst [vmem:[#allocation184_spill] sm:$0xff] %v5478_v57 }
 0x3d0   : > { %1848 = vrot.lane.b32.xlu0 %v5206_v26, %s3506_s18  ;;  %2294 = vrot.lane.b32.xlu1 %v5142_v16, %s3507_s19  ;;  %v7205_v16 = vld [vmem:[#allocation20_spill] sm:$0xff] }
 0x3d2   : > { %v5484_v60 = vpop.permute.xlu0 %1600  ;;  %v5486_v31 = vpop.permute.xlu1 %1550 }
 0x3d3   : > { %7187 = vst [vmem:[#allocation185_spill] sm:$0xff] %v5484_v60  ;;  %7188 = vst [vmem:[#allocation186_spill] sm:$0xff] %v5486_v31 }
 0x3d4   : > { %1998 = vrot.lane.b32.xlu0 %v5206_v26, %s3510_s28  ;;  %2146 = vrot.lane.b32.xlu1 %v5158_v46, %s3511_s29 }
 0x3d6   : > { %v5492_v9 = vpop.permute.xlu0 %1698  ;;  %v5494_v32 = vpop.permute.xlu1 %1602 }
 0x3d7   : > { %7189 = vst [vmem:[#allocation187_spill] sm:$0xff] %v5492_v9  ;;  %7190 = vst [vmem:[#allocation188_spill] sm:$0xff] %v5494_v32 }
 0x3d8   : > { %1850 = vrot.lane.b32.xlu0 %v5222_v37, %s3506_s18  ;;  %2296 = vrot.lane.b32.xlu1 %v5158_v46, %s3507_s19 }
 0x3da   : > { %v5500_v57 = vpop.permute.xlu0 %1750  ;;  %v5502_v60 = vpop.permute.xlu1 %1700 }
 0x3db   : > { %7191 = vst [vmem:[#allocation189_spill] sm:$0xff] %v5500_v57  ;;  %7192 = vst [vmem:[#allocation190_spill] sm:$0xff] %v5502_v60 }
 0x3dc   : > { %2000 = vrot.lane.b32.xlu0 %v5222_v37, %s3510_s28  ;;  %2148 = vrot.lane.b32.xlu1 %v5206_v26, %s3511_s29 }
 0x3de   : > { %v5508_v31 = vpop.permute.xlu0 %1402  ;;  %v5510_v9 = vpop.permute.xlu1 %1752 }
 0x3df   : > { %7193 = vst [vmem:[#allocation191_spill] sm:$0xff] %v5508_v31  ;;  %7194 = vst [vmem:[#allocation192_spill] sm:$0xff] %v5510_v9 }
 0x3e0   : > { %1852 = vrot.lane.b32.xlu0 %v5270_v50, %s3506_s18  ;;  %2298 = vrot.lane.b32.xlu1 %v5206_v26, %s3507_s19 }
 0x3e2   : > { %v5516_v32 = vpop.permute.xlu0 %1552  ;;  %v5518_v57 = vpop.permute.xlu1 %1404 }
 0x3e3   : > { %7195 = vst [vmem:[#allocation193_spill] sm:$0xff] %v5516_v32  ;;  %7196 = vst [vmem:[#allocation194_spill] sm:$0xff] %v5518_v57 }
 0x3e4   : > { %2002 = vrot.lane.b32.xlu0 %v5270_v50, %s3510_s28  ;;  %2150 = vrot.lane.b32.xlu1 %v5222_v37, %s3511_s29 }
 0x3e6   : > { %v5524_v60 = vpop.permute.xlu0 %1702  ;;  %v5526_v31 = vpop.permute.xlu1 %1554 }
 0x3e7   : > { %7197 = vst [vmem:[#allocation195_spill] sm:$0xff] %v5524_v60  ;;  %7198 = vst [vmem:[#allocation196_spill] sm:$0xff] %v5526_v31  ;;  %v7200_v31 = vld [vmem:[#allocation18_spill] sm:$0xff] }
 0x3e8   : > { %1854 = vrot.lane.b32.xlu0 %v5282_v21, %s3506_s18  ;;  %2300 = vrot.lane.b32.xlu1 %v5222_v37, %s3507_s19 }
 0x3ea   : > { %v5532_v9 = vpop.permute.xlu0 %1826  ;;  %v5534_v32 = vpop.permute.xlu1 %1704 }
 0x3eb   : > { %7199 = vst [vmem:[#allocation197_spill] sm:$0xff] %v5534_v32 }
 0x3ec   : > { %2004 = vrot.lane.b32.xlu0 %v5282_v21, %s3510_s28  ;;  %2152 = vrot.lane.b32.xlu1 %v5270_v50, %s3511_s29 }
 0x3ee   : > { %v5540_v57 = vpop.permute.xlu0 %1976  ;;  %v5542_v60 = vpop.permute.xlu1 %2124 }
 0x3f0   : > { %1856 = vrot.lane.b32.xlu0 %v7200_v31, %s3506_s18  ;;  %2302 = vrot.lane.b32.xlu1 %v5270_v50, %s3507_s19 }
 0x3f2   : > { %v5548_v37 = vpop.permute.xlu0 %1828  ;;  %v5550_v26 = vpop.permute.xlu1 %2274 }
 0x3f3   : > { %7201 = vst [vmem:[#allocation18_spill] sm:$0xff] %v5548_v37  ;;  %7202 = vst [vmem:[#allocation198_spill] sm:$0xff] %v5550_v26  ;;  %v7233_v37 = vld [vmem:[#allocation38_spill] sm:$0xff] }
 0x3f4   : > { %2006 = vrot.lane.b32.xlu0 %v7200_v31, %s3510_s28  ;;  %2154 = vrot.lane.b32.xlu1 %v5282_v21, %s3511_s29  ;;  %v7234_v26 = vld [vmem:[#allocation42_spill] sm:$0xff] }
 0x3f6   : > { %v5556_v32 = vpop.permute.xlu0 %1978  ;;  %v5558_v46 = vpop.permute.xlu1 %2126 }
 0x3f7   : > { %7203 = vst [vmem:[#allocation199_spill] sm:$0xff] %v5556_v32  ;;  %7204 = vst [vmem:[#allocation200_spill] sm:$0xff] %v5558_v46 }
 0x3f8   : > { %1858 = vrot.lane.b32.xlu0 %v7205_v16, %s3506_s18  ;;  %2304 = vrot.lane.b32.xlu1 %v5282_v21, %s3507_s19 }
 0x3fa   : > { %v5564_v50 = vpop.permute.xlu0 %1830  ;;  %v5566_v30 = vpop.permute.xlu1 %2276 }
 0x3fb   : > { %7206 = vst [vmem:[#allocation201_spill] sm:$0xff] %v5564_v50  ;;  %7207 = vst [vmem:[#allocation202_spill] sm:$0xff] %v5566_v30 }
 0x3fc   : > { %2008 = vrot.lane.b32.xlu0 %v7205_v16, %s3510_s28  ;;  %2156 = vrot.lane.b32.xlu1 %v7200_v31, %s3511_s29 }
 0x3fe   : > { %v5572_v3 = vpop.permute.xlu0 %1980  ;;  %v5574_v32 = vpop.permute.xlu1 %2128 }
 0x3ff   : > { %7208 = vst [vmem:[#allocation203_spill] sm:$0xff] %v5572_v3  ;;  %7209 = vst [vmem:[#allocation204_spill] sm:$0xff] %v5574_v32  ;;  %v7215_v32 = vld [vmem:[#allocation24_spill] sm:$0xff] }
 0x400   : > { %1860 = vrot.lane.b32.xlu0 %v7210_v17, %s3506_s18  ;;  %2306 = vrot.lane.b32.xlu1 %v7200_v31, %s3507_s19 }
 0x402   : > { %v5580_v21 = vpop.permute.xlu0 %1832  ;;  %v5582_v50 = vpop.permute.xlu1 %2278 }
 0x403   : > { %7211 = vst [vmem:[#allocation205_spill] sm:$0xff] %v5580_v21  ;;  %7212 = vst [vmem:[#allocation206_spill] sm:$0xff] %v5582_v50 }
 0x404   : > { %2010 = vrot.lane.b32.xlu0 %v7210_v17, %s3510_s28  ;;  %2158 = vrot.lane.b32.xlu1 %v7205_v16, %s3511_s29 }
 0x406   : > { %v5588_v30 = vpop.permute.xlu0 %1982  ;;  %v5590_v3 = vpop.permute.xlu1 %2130 }
 0x407   : > { %7213 = vst [vmem:[#allocation207_spill] sm:$0xff] %v5588_v30  ;;  %7214 = vst [vmem:[#allocation208_spill] sm:$0xff] %v5590_v3  ;;  %v7220_v3 = vld [vmem:[#allocation28_spill] sm:$0xff] }
 0x408   : > { %1862 = vrot.lane.b32.xlu0 %v7215_v32, %s3506_s18  ;;  %2308 = vrot.lane.b32.xlu1 %v7205_v16, %s3507_s19 }
 0x40a   : > { %v5596_v46 = vpop.permute.xlu0 %1834  ;;  %v5598_v21 = vpop.permute.xlu1 %2280 }
 0x40b   : > { %7216 = vst [vmem:[#allocation209_spill] sm:$0xff] %v5596_v46  ;;  %7217 = vst [vmem:[#allocation210_spill] sm:$0xff] %v5598_v21 }
 0x40c   : > { %2012 = vrot.lane.b32.xlu0 %v7215_v32, %s3510_s28  ;;  %2160 = vrot.lane.b32.xlu1 %v7210_v17, %s3511_s29 }
 0x40e   : > { %v5604_v50 = vpop.permute.xlu0 %1984  ;;  %v5606_v30 = vpop.permute.xlu1 %2132 }
 0x40f   : > { %7218 = vst [vmem:[#allocation211_spill] sm:$0xff] %v5604_v50  ;;  %7219 = vst [vmem:[#allocation212_spill] sm:$0xff] %v5606_v30  ;;  %v7225_v30 = vld [vmem:[#allocation30_spill] sm:$0xff] }
 0x410   : > { %1864 = vrot.lane.b32.xlu0 %v7220_v3, %s3506_s18  ;;  %2310 = vrot.lane.b32.xlu1 %v7210_v17, %s3507_s19 }
 0x412   : > { %v5612_v16 = vpop.permute.xlu0 %1836  ;;  %v5614_v46 = vpop.permute.xlu1 %2282 }
 0x413   : > { %7221 = vst [vmem:[#allocation213_spill] sm:$0xff] %v5612_v16  ;;  %7222 = vst [vmem:[#allocation214_spill] sm:$0xff] %v5614_v46 }
 0x414   : > { %2014 = vrot.lane.b32.xlu0 %v7220_v3, %s3510_s28  ;;  %2162 = vrot.lane.b32.xlu1 %v7215_v32, %s3511_s29 }
 0x416   : > { %v5620_v21 = vpop.permute.xlu0 %1986  ;;  %v5622_v50 = vpop.permute.xlu1 %2134 }
 0x417   : > { %7223 = vst [vmem:[#allocation215_spill] sm:$0xff] %v5620_v21  ;;  %7224 = vst [vmem:[#allocation216_spill] sm:$0xff] %v5622_v50 }
 0x418   : > { %1866 = vrot.lane.b32.xlu0 %v7225_v30, %s3506_s18  ;;  %2312 = vrot.lane.b32.xlu1 %v7215_v32, %s3507_s19 }
 0x41a   : > { %v5628_v17 = vpop.permute.xlu0 %1838  ;;  %v5630_v16 = vpop.permute.xlu1 %2284 }
 0x41b   : > { %7226 = vst [vmem:[#allocation30_spill] sm:$0xff] %v5628_v17  ;;  %7227 = vst [vmem:[#allocation217_spill] sm:$0xff] %v5630_v16  ;;  %v7231_v16 = vld [vmem:[#allocation17_spill] sm:$0xff] }
 0x41c   : > { %2016 = vrot.lane.b32.xlu0 %v7225_v30, %s3510_s28  ;;  %2164 = vrot.lane.b32.xlu1 %v7220_v3, %s3511_s29  ;;  %v2405_v50 = vsel %vm2404_vm1, %v7231_v16, %v4618_v5 }
 0x41d   : > { %v2456_v0 = vsel %vm2455_vm2, %v2405_v50, %v7233_v37 }
 0x41e   : > { %v5636_v46 = vpop.permute.xlu0 %1988  ;;  %v5638_v21 = vpop.permute.xlu1 %2136 }
 0x41f   : > { %7228 = vst [vmem:[#allocation218_spill] sm:$0xff] %v5636_v46  ;;  %7229 = vst [vmem:[#allocation219_spill] sm:$0xff] %v5638_v21  ;;  %v7232_v46 = vld [vmem:[#allocation19_spill] sm:$0xff] }
 0x420   : > { %1868 = vrot.lane.b32.xlu0 %v4626_v11, %s3506_s18  ;;  %2314 = vrot.lane.b32.xlu1 %v7220_v3, %s3507_s19  ;;  %v2406_v21 = vsel %vm2404_vm1, %v7232_v46, %v4638_v56  ;;  %v7236_v46 = vld [vmem:[#allocation23_spill] sm:$0xff] }
 0x421   : > { %v2457_v3 = vsel %vm2455_vm2, %v2406_v21, %v7234_v26  ;;  %v2408_v16 = vsel %vm2404_vm1, %v7236_v46, %v4742_v61  ;;  %v7237_v26 = vld [vmem:[#allocation21_spill] sm:$0xff]  ;;  %v7239_v46 = vld [vmem:[#allocation51_spill] sm:$0xff] }
 0x422   : > { %v5644_v32 = vpop.permute.xlu0 %1840  ;;  %v5646_v17 = vpop.permute.xlu1 %2286  ;;  %v2508_v56 = vsel %vm2506_vm3, %v2457_v3, %v4678_v52  ;;  %v2407_v50 = vsel %vm2404_vm1, %v7237_v26, %v4712_v18  ;;  %v7238_v3 = vld [vmem:[#allocation47_spill] sm:$0xff] }
 0x423   : > { %7230 = vst [vmem:[#allocation220_spill] sm:$0xff] %v5644_v32  ;;  %v7235_v32 = vld [vmem:[#allocation41_spill] sm:$0xff]  ;;  %v2559_v37 = vsel %vm2557_vm4, %v2508_v56, %v4694_v29  ;;  %v2458_v29 = vsel %vm2455_vm2, %v2407_v50, %v4732_v4  ;;  %v7244_v50 = vld [vmem:[#allocation64_spill] sm:$0xff] }
 0x424   : > { %2018 = vrot.lane.b32.xlu0 %v4626_v11, %s3510_s28  ;;  %2166 = vrot.lane.b32.xlu1 %v7225_v30, %s3511_s29  ;;  %v2507_v5 = vsel %vm2506_vm3, %v2456_v0, %v7235_v32  ;;  %v2459_v0 = vsel %vm2455_vm2, %v2408_v16, %v4762_v45  ;;  %v7240_v45 = vld [vmem:[#allocation58_spill] sm:$0xff]  ;;  %v7242_v4 = vld [vmem:[#allocation49_spill] sm:$0xff] }
 0x425   : > { %v2558_v21 = vsel %vm2557_vm4, %v2507_v5, %v4676_v44  ;;  %v2610_v44 = vsel %vm2608_vm5, %v2559_v37, %v7239_v46  ;;  %v2510_v5 = vsel %vm2506_vm3, %v2459_v0, %v4782_v35  ;;  %v2509_v56 = vsel %vm2506_vm3, %v2458_v29, %v7240_v45  ;;  %v7246_v29 = vld [vmem:[#allocation65_spill] sm:$0xff]  ;;  %v7247_v45 = vld [vmem:[#allocation36_spill] sm:$0xff] }
 0x426   : > { %v5678_v32 = vpop.permute.xlu0 %1990  ;;  %v5680_v52 = vpop.permute.xlu1 %2138  ;;  %v2609_v61 = vsel %vm2608_vm5, %v2558_v21, %v7238_v3  ;;  %v2661_v18 = vsel %vm2659_vm6, %v2610_v44, %v4714_v12  ;;  %v2561_v16 = vsel %vm2557_vm4, %v2510_v5, %v4798_v38  ;;  %v7241_v21 = vld [vmem:[#allocation46_spill] sm:$0xff]  ;;  %v2560_v35 = vsel %vm2557_vm4, %v2509_v56, %v4772_v47  ;;  %v7243_v12 = vld [vmem:[#allocation25_spill] sm:$0xff] }
 0x427   : > { %v2660_v37 = vsel %vm2659_vm6, %v2609_v61, %v7242_v4  ;;  %v2409_v26 = vsel %vm2404_vm1, %v7243_v12, %v4820_v28  ;;  %v2611_v38 = vsel %vm2608_vm5, %v2560_v35, %v7244_v50  ;;  %v2762_v61 = vld [vmem:[%s6797_s3 + $0x8] sm:$0xff]  ;;  %v2612_v28 = vsel %vm2608_vm5, %v2561_v16, %v7246_v29  ;;  %v7249_v35 = vld [vmem:[#allocation67_spill] sm:$0xff] }
 0x428   : > { %1870 = vrot.lane.b32.xlu0 %v7241_v21, %s3506_s18  ;;  %2316 = vrot.lane.b32.xlu1 %v7225_v30, %s3507_s19  ;;  %v2460_v0 = vsel %vm2455_vm2, %v2409_v26, %v4840_v59  ;;  %v7245_v44 = vld [vmem:[#allocation50_spill] sm:$0xff]  ;;  %v2761_v59 = vld [vmem:[%s6797_s3] sm:$0xff]  ;;  %v2711_v56 = vsel %vm2710_vm7, %v2660_v37, %v7247_v45  ;;  %v2663_v12 = vsel %vm2659_vm6, %v2612_v28, %v7249_v35 }
 0x429   : > { %v2712_v47 = vsel %vm2710_vm7, %v2661_v18, %v7245_v44  ;;  %v2511_v5 = vsel %vm2506_vm3, %v2460_v0, %v4860_v33  ;;  %v7248_v18 = vld [vmem:[#allocation55_spill] sm:$0xff]  ;;  %v7250_v26 = vld [vmem:[#allocation29_spill] sm:$0xff]  ;;  %v2811_v0 = vmul.f32 %v2761_v59, %v2711_v56 }
 0x42a   : > { %v5711_v3 = vpop.permute.xlu0 %1842  ;;  %v5713_v46 = vpop.permute.xlu1 %2288  ;;  %v2562_v4 = vsel %vm2557_vm4, %v2511_v5, %v4876_v54  ;;  %v2662_v16 = vsel %vm2659_vm6, %v2611_v38, %v7248_v18  ;;  %v2812_v33 = vmul.f32 %v2762_v61, %v2712_v47  ;;  %v2410_v37 = vsel %vm2404_vm1, %v7250_v26, %v4842_v1  ;;  %v7251_v38 = vld [vmem:[#allocation35_spill] sm:$0xff]  ;;  %v7252_v1 = vld [vmem:[#allocation56_spill] sm:$0xff]  ;;  %v7253_v59 = vld [vmem:[#allocation53_spill] sm:$0xff] }
 0x42b   : > { %v2461_v44 = vsel %vm2455_vm2, %v2410_v37, %v4862_v40  ;;  %v2613_v29 = vsel %vm2608_vm5, %v2562_v4, %v4810_v34  ;;  %v2411_v61 = vsel %vm2404_vm1, %v7251_v38, %v4904_v39  ;;  %v2763_v47 = vld [vmem:[%s6797_s3 + $0x10] sm:$0xff]  ;;  %v2713_v28 = vsel %vm2710_vm7, %v2662_v16, %v7252_v1  ;;  %v2764_v34 = vld [vmem:[%s6797_s3 + $0x18] sm:$0xff] }
 0x42c   : > { %2020 = vrot.lane.b32.xlu0 %v7241_v21, %s3510_s28  ;;  %2168 = vrot.lane.b32.xlu1 %v4626_v11, %s3511_s29  ;;  %v2512_v5 = vsel %vm2506_vm3, %v2461_v44, %v4878_v63  ;;  %v2462_v40 = vsel %vm2455_vm2, %v2411_v61, %v4924_v62  ;;  %v7254_v39 = vld [vmem:[#allocation68_spill] sm:$0xff]  ;;  %v7255_v62 = vld [vmem:[#allocation43_spill] sm:$0xff]  ;;  %v2861_v18 = vadd.f32 %v2812_v33, %v2811_v0  ;;  %v7256_v16 = vld [vmem:[#allocation70_spill] sm:$0xff] }
 0x42d   : > { %v2714_v45 = vsel %vm2710_vm7, %v2663_v12, %v7254_v39  ;;  %v2563_v56 = vsel %vm2557_vm4, %v2512_v5, %v4906_v43  ;;  %v2513_v63 = vsel %vm2506_vm3, %v2462_v40, %v4940_v23  ;;  %v2412_v4 = vsel %vm2404_vm1, %v7255_v62, %v4954_v27  ;;  %v7257_v33 = vld [vmem:[#allocation52_spill] sm:$0xff]  ;;  %v7264_v62 = vld [vmem:[#allocation107_spill] sm:$0xff] }
 0x42e   : > { %v5742_v50 = vpop.permute.xlu0 %1992  ;;  %v5744_v54 = vpop.permute.xlu1 %2140  ;;  %v2664_v35 = vsel %vm2659_vm6, %v2613_v29, %v7256_v16  ;;  %v2564_v26 = vsel %vm2557_vm4, %v2513_v63, %v4968_v6  ;;  %v2463_v12 = vsel %vm2455_vm2, %v2412_v4, %v4982_v24  ;;  %v2813_v44 = vmul.f32 %v2763_v47, %v2713_v28  ;;  %v7260_v47 = vld [vmem:[#allocation84_spill] sm:$0xff]  ;;  %v7261_v28 = vld [vmem:[#allocation90_spill] sm:$0xff] }
 0x42f   : > { %v2615_v23 = vsel %vm2608_vm5, %v2564_v26, %v4980_v42  ;;  %v2514_v27 = vsel %vm2506_vm3, %v2463_v12, %v4998_v8  ;;  %v2413_v0 = vsel %vm2404_vm1, %v7257_v33, %v5004_v55  ;;  %v2814_v29 = vmul.f32 %v2764_v34, %v2714_v45  ;;  %v2765_v42 = vld [vmem:[%s6797_s3 + $0x20] sm:$0xff]  ;;  %v2767_v26 = vld [vmem:[%s6797_s3 + $0x30] sm:$0xff] }
 0x430   : > { %1872 = vrot.lane.b32.xlu0 %v7253_v59, %s3506_s18  ;;  %2318 = vrot.lane.b32.xlu1 %v4626_v11, %s3507_s19  ;;  %v2614_v6 = vsel %vm2608_vm5, %v2563_v56, %v4888_v58  ;;  %v2464_v24 = vsel %vm2455_vm2, %v2413_v0, %v5032_v41  ;;  %v7258_v8 = vld [vmem:[#allocation72_spill] sm:$0xff]  ;;  %v2666_v1 = vsel %vm2659_vm6, %v2615_v23, %v7260_v47  ;;  %v7263_v56 = vld [vmem:[#allocation82_spill] sm:$0xff]  ;;  %v7266_v12 = vld [vmem:[#allocation85_spill] sm:$0xff] }
 0x431   : > { %v2715_v55 = vsel %vm2710_vm7, %v2664_v35, %v7258_v8  ;;  %v2665_v38 = vsel %vm2659_vm6, %v2614_v6, %v4918_v2  ;;  %v2515_v58 = vsel %vm2506_vm3, %v2464_v24, %v5052_v25  ;;  %v7259_v41 = vld [vmem:[#allocation60_spill] sm:$0xff]  ;;  %v2565_v5 = vsel %vm2557_vm4, %v2514_v27, %v7261_v28  ;;  %v7265_v35 = vld [vmem:[#allocation62_spill] sm:$0xff]  ;;  %v7272_v28 = vld [vmem:[#allocation103_spill] sm:$0xff] }
 0x432   : > { %v5784_v37 = vpop.permute.xlu0 %1844  ;;  %v5786_v43 = vpop.permute.xlu1 %2290  ;;  %v2414_v61 = vsel %vm2404_vm1, %v7259_v41, %v5062_v13  ;;  %v2566_v40 = vsel %vm2557_vm4, %v2515_v58, %v5068_v10  ;;  %v7262_v34 = vld [vmem:[#allocation108_spill] sm:$0xff]  ;;  %v2862_v25 = vadd.f32 %v2861_v18, %v2813_v44  ;;  %v2766_v13 = vld [vmem:[%s6797_s3 + $0x28] sm:$0xff]  ;;  %v2716_v63 = vsel %vm2710_vm7, %v2665_v38, %v7263_v56  ;;  %v7271_v58 = vld [vmem:[#allocation99_spill] sm:$0xff] }
 0x433   : > { %v2465_v39 = vsel %vm2455_vm2, %v2414_v61, %v7262_v34  ;;  %v2617_v4 = vsel %vm2608_vm5, %v2566_v40, %v7264_v62  ;;  %v2815_v16 = vmul.f32 %v2765_v42, %v2715_v55  ;;  %v2717_v44 = vsel %vm2710_vm7, %v2666_v1, %v7266_v12  ;;  %v7267_v23 = vld [vmem:[#allocation92_spill] sm:$0xff]  ;;  %v7269_v6 = vld [vmem:[#allocation102_spill] sm:$0xff]  ;;  %v7270_v42 = vld [vmem:[#allocation5_spill] sm:$0xff] }
 0x434   : > { %2022 = vrot.lane.b32.xlu0 %v7253_v59, %s3510_s28  ;;  %2170 = vrot.lane.b32.xlu1 %v7241_v21, %s3511_s29  ;;  %v2516_v10 = vsel %vm2506_vm3, %v2465_v39, %v5110_v36  ;;  %v2863_v18 = vadd.f32 %v2862_v25, %v2814_v29  ;;  %v2616_v27 = vsel %vm2608_vm5, %v2565_v5, %v7267_v23  ;;  %v7268_v36 = vld [vmem:[#allocation96_spill] sm:$0xff]  ;;  %v7273_v40 = vld [vmem:[#allocation7_spill] sm:$0xff]  ;;  %v7276_v12 = vld [vmem:[#allocation69_spill] sm:$0xff] }
 0x435   : > { %v2816_v33 = vmul.f32 %v2766_v13, %v2716_v63  ;;  %v2667_v0 = vsel %vm2659_vm6, %v2616_v27, %v7268_v36  ;;  %v2668_v24 = vsel %vm2659_vm6, %v2617_v4, %v7269_v6  ;;  %v2567_v29 = vsel %vm2557_vm4, %v2516_v10, %v7270_v42  ;;  %v2768_v38 = vld [vmem:[%s6797_s3 + $0x38] sm:$0xff]  ;;  %v2769_v1 = vld [vmem:[%s6797_s3 + $0x40] sm:$0xff]  ;;  %v7274_v13 = vld [vmem:[#allocation114_spill] sm:$0xff] }
 0x436   : > { %v5823_v2 = vpop.permute.xlu0 %1994  ;;  %v5825_v45 = vpop.permute.xlu1 %2142  ;;  %v2718_v41 = vsel %vm2710_vm7, %v2667_v0, %v7271_v58  ;;  %v2864_v61 = vadd.f32 %v2863_v18, %v2815_v16  ;;  %v2817_v47 = vmul.f32 %v2767_v26, %v2717_v44  ;;  %v2719_v5 = vsel %vm2710_vm7, %v2668_v24, %v7272_v28  ;;  %v2770_v4 = vld [vmem:[%s6797_s3 + $0x48] sm:$0xff]  ;;  %v7275_v10 = vld [vmem:[#allocation116_spill] sm:$0xff]  ;;  %v7277_v36 = vld [vmem:[#allocation111_spill] sm:$0xff] }
 0x437   : > { %v2618_v34 = vsel %vm2608_vm5, %v2567_v29, %v7273_v40  ;;  %v2818_v25 = vmul.f32 %v2768_v38, %v2718_v41  ;;  %v2819_v26 = vmul.f32 %v2769_v1, %v2719_v5  ;;  %v2415_v0 = vsel %vm2404_vm1, %v4806_v14, %v7277_v36  ;;  %v7278_v6 = vld [vmem:[#allocation37_spill] sm:$0xff]  ;;  %v7279_v29 = vld [vmem:[#allocation115_spill] sm:$0xff]  ;;  %v7283_v28 = vld [vmem:[#allocation118_spill] sm:$0xff] }
 0x438   : > { %1874 = vrot.lane.b32.xlu0 %v7265_v35, %s3506_s18  ;;  %2320 = vrot.lane.b32.xlu1 %v7241_v21, %s3507_s19  ;;  %v2865_v39 = vadd.f32 %v2864_v61, %v2816_v33  ;;  %v2669_v56 = vsel %vm2659_vm6, %v2618_v34, %v7274_v13  ;;  %v2431_v24 = vsel %vm2404_vm1, %v7200_v31, %v7278_v6  ;;  %v7280_v58 = vld [vmem:[#allocation39_spill] sm:$0xff]  ;;  %v7285_v13 = vld [vmem:[#allocation122_spill] sm:$0xff]  ;;  %v7290_v36 = vld [vmem:[#allocation13_spill] sm:$0xff] }
 0x439   : > { %v2720_v16 = vsel %vm2710_vm7, %v2669_v56, %v7275_v10  ;;  %v2466_v38 = vsel %vm2455_vm2, %v2415_v0, %v7279_v29  ;;  %v2482_v41 = vsel %vm2455_vm2, %v2431_v24, %v7280_v58  ;;  %v7281_v61 = vld [vmem:[#allocation119_spill] sm:$0xff]  ;;  %v2416_v5 = vsel %vm2404_vm1, %v4838_v7, %v7283_v28  ;;  %v7295_v58 = vld [vmem:[#allocation136_spill] sm:$0xff] }
 0x43a   : > { %v5853_v8 = vpop.permute.xlu0 %1846  ;;  %v5855_v55 = vpop.permute.xlu1 %2292  ;;  %v2866_v18 = vadd.f32 %v2865_v39, %v2817_v47  ;;  %v2820_v23 = vmul.f32 %v2770_v4, %v2720_v16  ;;  %v2517_v14 = vsel %vm2506_vm3, %v2466_v38, %v7281_v61  ;;  %v7282_v47 = vld [vmem:[#allocation44_spill] sm:$0xff]  ;;  %v7284_v40 = vld [vmem:[#allocation123_spill] sm:$0xff]  ;;  %v2467_v56 = vsel %vm2455_vm2, %v2416_v5, %v7285_v13  ;;  %v7286_v4 = vld [vmem:[#allocation125_spill] sm:$0xff] }
 0x43b   : > { %v5910_v1 = vsel %vm2506_vm3, %v2482_v41, %v7282_v47  ;;  %v2568_v34 = vsel %vm2557_vm4, %v2517_v14, %v7284_v40  ;;  %v7287_v16 = vld [vmem:[#allocation127_spill] sm:$0xff]  ;;  %v2419_v41 = vsel %vm2404_vm1, %v4950_v22, %v7295_v58  ;;  %v2420_v61 = vsel %vm2404_vm1, %v4966_v20, %v5274_v19  ;;  %v7296_v20 = vld [vmem:[#allocation142_spill] sm:$0xff] }
 0x43c   : > { %2024 = vrot.lane.b32.xlu0 %v7265_v35, %s3510_s28  ;;  %2172 = vrot.lane.b32.xlu1 %v7253_v59, %s3511_s29  ;;  %v2867_v44 = vadd.f32 %v2866_v18, %v2818_v25  ;;  %v2619_v10 = vsel %vm2608_vm5, %v2568_v34, %v7286_v4  ;;  %v2417_v18 = vsel %vm2404_vm1, %v4886_v53, %v7287_v16  ;;  %v7291_v6 = vld [vmem:[#allocation131_spill] sm:$0xff]  ;;  %v7293_v53 = vld [vmem:[#allocation132_spill] sm:$0xff] }
 0x43d   : > { %v2468_v0 = vsel %vm2455_vm2, %v2417_v18, %v7290_v36  ;;  %v7294_v38 = vld [vmem:[#allocation135_spill] sm:$0xff]  ;;  %v2470_v14 = vsel %vm2455_vm2, %v2419_v41, %v5284_v15  ;;  %v2471_v47 = vsel %vm2455_vm2, %v2420_v61, %v5294_v49  ;;  %v2670_v5 = vsel %vm2659_vm6, %v2619_v10, %v5542_v60  ;;  %v7297_v49 = vld [vmem:[#allocation198_spill] sm:$0xff]  ;;  %v7301_v16 = vld [vmem:[#allocation200_spill] sm:$0xff] }
 0x43e   : > { %v5875_v63 = vpop.permute.xlu0 %1996  ;;  %v5877_v62 = vpop.permute.xlu1 %2144  ;;  %v2868_v42 = vadd.f32 %v2867_v44, %v2819_v26  ;;  %v7288_v26 = vld [vmem:[#allocation129_spill] sm:$0xff]  ;;  %v7289_v44 = vld [vmem:[#allocation126_spill] sm:$0xff]  ;;  %v2519_v29 = vsel %vm2506_vm3, %v2468_v0, %v7293_v53  ;;  %v2521_v22 = vsel %vm2506_vm3, %v2470_v14, %v5300_v48  ;;  %v2522_v19 = vsel %vm2506_vm3, %v2471_v47, %v7296_v20  ;;  %v7298_v13 = vld [vmem:[#allocation143_spill] sm:$0xff] }
 0x43f   : > { %v2418_v7 = vsel %vm2404_vm1, %v4902_v51, %v7288_v26  ;;  %v2721_v60 = vsel %vm2710_vm7, %v2670_v5, %v7297_v49  ;;  %v7300_v10 = vld [vmem:[#allocation18_spill] sm:$0xff]  ;;  %v7305_v36 = vld [vmem:[#allocation199_spill] sm:$0xff]  ;;  %v7309_v14 = vld [vmem:[#allocation204_spill] sm:$0xff] }
 0x440   : > { %1876 = vrot.lane.b32.xlu0 %v7276_v12, %s3506_s18  ;;  %2322 = vrot.lane.b32.xlu1 %v7253_v59, %s3507_s19  ;;  %v2869_v31 = vadd.f32 %v2868_v42, %v2820_v23  ;;  %v2518_v23 = vsel %vm2506_vm3, %v2467_v56, %v7289_v44  ;;  %v2469_v24 = vsel %vm2455_vm2, %v2418_v7, %v7291_v6  ;;  %v7292_v42 = vld [vmem:[#allocation73_spill] sm:$0xff]  ;;  %v7299_v56 = vld [vmem:[#allocation94_spill] sm:$0xff]  ;;  %v7304_v44 = vld [vmem:[#allocation147_spill] sm:$0xff] }
 0x441   : > { %v2520_v51 = vsel %vm2506_vm3, %v2469_v24, %v7294_v38  ;;  %v2569_v28 = vsel %vm2557_vm4, %v2518_v23, %v5532_v9  ;;  %v2771_v9 = vld [vmem:[%s6797_s3 + $0x50] sm:$0xff]  ;;  %v2421_v4 = vsel %vm2404_vm1, %v7299_v56, %v7298_v13  ;;  %v2570_v48 = vsel %vm2557_vm4, %v2519_v29, %v7300_v10  ;;  %v2772_v6 = vld [vmem:[%s6797_s3 + $0x58] sm:$0xff] }
 0x442   : > { %v5888_v27 = vpop.permute.xlu0 %1848  ;;  %v5890_v33 = vpop.permute.xlu1 %2294  ;;  %v2620_v15 = vsel %vm2608_vm5, %v2569_v28, %v5540_v57  ;;  %v7302_v57 = vld [vmem:[#allocation146_spill] sm:$0xff]  ;;  %v2472_v23 = vsel %vm2455_vm2, %v2421_v4, %v7304_v44  ;;  %v2621_v0 = vsel %vm2608_vm5, %v2570_v48, %v7305_v36  ;;  %v7308_v58 = vld [vmem:[#allocation151_spill] sm:$0xff]  ;;  %v2821_v61 = vmul.f32 %v2771_v9, %v2721_v60  ;;  %v7313_v4 = vld [vmem:[#allocation201_spill] sm:$0xff] }
 0x443   : > { %v2671_v18 = vsel %vm2659_vm6, %v2620_v15, %v7301_v16  ;;  %v7303_v26 = vld [vmem:[#allocation98_spill] sm:$0xff]  ;;  %v2523_v41 = vsel %vm2506_vm3, %v2472_v23, %v7308_v58  ;;  %v2672_v47 = vsel %vm2659_vm6, %v2621_v0, %v7309_v14  ;;  %v7311_v49 = vld [vmem:[#allocation155_spill] sm:$0xff]  ;;  %v2571_v10 = vsel %vm2557_vm4, %v2520_v51, %v7313_v4  ;;  %v2773_v9 = vld [vmem:[%s6797_s3 + $0x60] sm:$0xff] }
 0x444   : > { %2026 = vrot.lane.b32.xlu0 %v7276_v12, %s3510_s28  ;;  %2174 = vrot.lane.b32.xlu1 %v7265_v35, %s3511_s29  ;;  %v2422_v7 = vsel %vm2404_vm1, %v7303_v26, %v7302_v57  ;;  %v7306_v24 = vld [vmem:[#allocation202_spill] sm:$0xff]  ;;  %v7318_v23 = vld [vmem:[#allocation79_spill] sm:$0xff]  ;;  %v7322_v58 = vld [vmem:[#allocation208_spill] sm:$0xff] }
 0x445   : > { %v2722_v53 = vsel %vm2710_vm7, %v2671_v18, %v7306_v24  ;;  %v7307_v29 = vld [vmem:[#allocation150_spill] sm:$0xff]  ;;  %v7319_v51 = vld [vmem:[#allocation159_spill] sm:$0xff] }
 0x446   : > { %v5917_v39 = vpop.permute.xlu0 %1998  ;;  %v5919_v25 = vpop.permute.xlu1 %2146  ;;  %v2473_v38 = vsel %vm2455_vm2, %v2422_v7, %v7307_v29  ;;  %v7310_v20 = vld [vmem:[#allocation154_spill] sm:$0xff]  ;;  %v2822_v26 = vmul.f32 %v2772_v6, %v2722_v53  ;;  %v7317_v7 = vld [vmem:[#allocation203_spill] sm:$0xff]  ;;  %v7321_v29 = vld [vmem:[#allocation205_spill] sm:$0xff]  ;;  %v2870_v53 = vadd.f32 %v2869_v31, %v2821_v61 }
 0x447   : > { %v2524_v15 = vsel %vm2506_vm3, %v2473_v38, %v7310_v20  ;;  %v7312_v13 = vld [vmem:[#allocation106_spill] sm:$0xff]  ;;  %v2622_v44 = vsel %vm2608_vm5, %v2571_v10, %v7317_v7  ;;  %v2572_v38 = vsel %vm2557_vm4, %v2521_v22, %v7321_v29  ;;  %v7325_v22 = vld [vmem:[#allocation163_spill] sm:$0xff]  ;;  %v7327_v61 = vld [vmem:[#allocation209_spill] sm:$0xff] }
 0x448   : > { %1878 = vrot.lane.b32.xlu0 %v7292_v42, %s3506_s18  ;;  %2324 = vrot.lane.b32.xlu1 %v7265_v35, %s3507_s19  ;;  %v2423_v56 = vsel %vm2404_vm1, %v7312_v13, %v7311_v49  ;;  %v7314_v60 = vld [vmem:[#allocation206_spill] sm:$0xff]  ;;  %v2673_v6 = vsel %vm2659_vm6, %v2622_v44, %v7322_v58  ;;  %v7329_v7 = vld [vmem:[#allocation211_spill] sm:$0xff] }
 0x449   : > { %v2723_v48 = vsel %vm2710_vm7, %v2672_v47, %v7314_v60  ;;  %v7315_v16 = vld [vmem:[#allocation158_spill] sm:$0xff]  ;;  %v2474_v36 = vsel %vm2455_vm2, %v2423_v56, %v7319_v51  ;;  %v7323_v47 = vld [vmem:[#allocation207_spill] sm:$0xff] }
 0x44a   : > { %v5959_v40 = vpop.permute.xlu0 %1850  ;;  %v5961_v34 = vpop.permute.xlu1 %2296  ;;  %v7316_v18 = vld [vmem:[#allocation26_spill] sm:$0xff]  ;;  %v2823_v14 = vmul.f32 %v2773_v9, %v2723_v48  ;;  %v2623_v20 = vsel %vm2608_vm5, %v2572_v38, %v7323_v47  ;;  %v2525_v60 = vsel %vm2506_vm3, %v2474_v36, %v7325_v22  ;;  %v2573_v9 = vsel %vm2557_vm4, %v2522_v19, %v7327_v61  ;;  %v7328_v48 = vld [vmem:[#allocation212_spill] sm:$0xff]  ;;  %v7331_v19 = vld [vmem:[#allocation167_spill] sm:$0xff] }
 0x44b   : > { %v2424_v57 = vsel %vm2404_vm1, %v7316_v18, %v7315_v16  ;;  %v7320_v0 = vld [vmem:[#allocation162_spill] sm:$0xff]  ;;  %v2674_v18 = vsel %vm2659_vm6, %v2623_v20, %v7328_v48  ;;  %v2624_v44 = vsel %vm2608_vm5, %v2573_v9, %v7329_v7  ;;  %v7333_v38 = vld [vmem:[#allocation213_spill] sm:$0xff]  ;;  %v2776_v9 = vld [vmem:[%s6797_s3 + $0x78] sm:$0xff] }
 0x44c   : > { %2028 = vrot.lane.b32.xlu0 %v7292_v42, %s3510_s28  ;;  %2176 = vrot.lane.b32.xlu1 %v7276_v12, %s3511_s29  ;;  %v2475_v24 = vsel %vm2455_vm2, %v2424_v57, %v7320_v0  ;;  %v2774_v49 = vld [vmem:[%s6797_s3 + $0x68] sm:$0xff]  ;;  %v2871_v57 = vadd.f32 %v2870_v53, %v2822_v26  ;;  %v2775_v51 = vld [vmem:[%s6797_s3 + $0x70] sm:$0xff]  ;;  %v2574_v58 = vsel %vm2557_vm4, %v2523_v41, %v7333_v38 }
 0x44d   : > { %v7324_v13 = vld [vmem:[#allocation210_spill] sm:$0xff]  ;;  %v7336_v20 = vld [vmem:[#allocation9_spill] sm:$0xff] }
 0x44e   : > { %v6003_v28 = vpop.permute.xlu0 %2000  ;;  %v6005_v5 = vpop.permute.xlu1 %2148  ;;  %v2724_v56 = vsel %vm2710_vm7, %v2673_v6, %v7324_v13  ;;  %v7326_v16 = vld [vmem:[#allocation166_spill] sm:$0xff]  ;;  %v7334_v6 = vld [vmem:[#allocation216_spill] sm:$0xff]  ;;  %v2872_v22 = vadd.f32 %v2871_v57, %v2823_v14  ;;  %v7338_v48 = vld [vmem:[#allocation217_spill] sm:$0xff] }
 0x44f   : > { %v2526_v31 = vsel %vm2506_vm3, %v2475_v24, %v7326_v16  ;;  %v7330_v0 = vld [vmem:[#allocation214_spill] sm:$0xff]  ;;  %v2824_v29 = vmul.f32 %v2774_v49, %v2724_v56  ;;  %v2675_v53 = vsel %vm2659_vm6, %v2624_v44, %v7334_v6  ;;  %v7337_v16 = vld [vmem:[#allocation215_spill] sm:$0xff]  ;;  %v2916_v57 = vld [vmem:[%s6798_s4] sm:$0xff] }
 0x450   : > { %1880 = vrot.lane.b32.xlu0 %v7318_v23, %s3506_s18  ;;  %2326 = vrot.lane.b32.xlu1 %v7276_v12, %s3507_s19  ;;  %v2725_v36 = vsel %vm2710_vm7, %v2674_v18, %v7330_v0  ;;  %v7332_v24 = vld [vmem:[#allocation6_spill] sm:$0xff]  ;;  %v2625_v61 = vsel %vm2608_vm5, %v2574_v58, %v7337_v16  ;;  %v2726_v49 = vsel %vm2710_vm7, %v2675_v53, %v7338_v48  ;;  %v7340_v0 = vld [vmem:[#allocation219_spill] sm:$0xff] }
 0x451   : > { %v2425_v26 = vsel %vm2404_vm1, %v7332_v24, %v7331_v19  ;;  %v7335_v47 = vld [vmem:[#allocation170_spill] sm:$0xff]  ;;  %v2825_v18 = vmul.f32 %v2775_v51, %v2725_v36  ;;  %v2676_v14 = vsel %vm2659_vm6, %v2625_v61, %v7340_v0  ;;  %v2777_v51 = vld [vmem:[%s6797_s3 + $0x80] sm:$0xff]  ;;  %v2873_v6 = vadd.f32 %v2872_v22, %v2824_v29  ;;  %v7344_v48 = vld [vmem:[#allocation171_spill] sm:$0xff] }
 0x452   : > { %v6043_v4 = vpop.permute.xlu0 %1852  ;;  %v6045_v10 = vpop.permute.xlu1 %2298  ;;  %v2426_v13 = vsel %vm2404_vm1, %v7336_v20, %v7335_v47  ;;  %v7339_v7 = vld [vmem:[#allocation30_spill] sm:$0xff]  ;;  %v7342_v36 = vld [vmem:[#allocation80_spill] sm:$0xff]  ;;  %v2826_v53 = vmul.f32 %v2776_v9, %v2726_v49  ;;  %v3512_v61 = vmov 0.0|0.0   ;;  %v7346_v49 = vld [vmem:[#allocation175_spill] sm:$0xff] }
 0x453   : > { %v2575_v44 = vsel %vm2557_vm4, %v2524_v15, %v7339_v7  ;;  %v2917_v19 = vld [vmem:[%s6798_s4 + $0x8] sm:$0xff]  ;;  %v2727_v15 = vsel %vm2710_vm7, %v2676_v14, %v5646_v17  ;;  %v7343_v47 = vld [vmem:[#allocation220_spill] sm:$0xff]  ;;  %3316 = vmatprep.subr.bf16.mxu1 %v3512_v61  ;;  %v2476_v17 = vsel %vm2455_vm2, %v2425_v26, %v7344_v48  ;;  %v2874_v9 = vadd.f32 %v2873_v6, %v2825_v18  ;;  %v7352_v6 = vld [vmem:[#allocation183_spill] sm:$0xff] }
 0x454   : > { %2030 = vrot.lane.b32.xlu0 %v7318_v23, %s3510_s28  ;;  %2178 = vrot.lane.b32.xlu1 %v7292_v42, %s3511_s29  ;;  %v7341_v24 = vld [vmem:[#allocation218_spill] sm:$0xff]  ;;  %v3317_v58 = vpack.c.bf16 %v2917_v19, %v2916_v57  ;;  %v2576_v20 = vsel %vm2557_vm4, %v2525_v60, %v7343_v47  ;;  %v2827_v26 = vmul.f32 %v2777_v51, %v2727_v15 }
 0x455   : > { %v2626_v38 = vsel %vm2608_vm5, %v2575_v44, %v7341_v24  ;;  %v7345_v7 = vld [vmem:[#allocation174_spill] sm:$0xff]  ;;  %v2627_v0 = vsel %vm2608_vm5, %v2576_v20, %v5678_v32  ;;  %v2527_v14 = vsel %vm2506_vm3, %v2476_v17, %v7346_v49  ;;  %v2875_v19 = vadd.f32 %v2874_v9, %v2826_v53  ;;  %v2780_v20 = vld [vmem:[%s6797_s3 + $0x98] sm:$0xff] }
 0x456   : > { %v6083_v56 = vpop.permute.xlu0 %2002  ;;  %v6085_v41 = vpop.permute.xlu1 %2150  ;;  %v2677_v16 = vsel %vm2659_vm6, %v2626_v38, %v5680_v52  ;;  %v2477_v44 = vsel %vm2455_vm2, %v2426_v13, %v7345_v7  ;;  %v2778_v29 = vld [vmem:[%s6797_s3 + $0x88] sm:$0xff]  ;;  %3318 = vmatpush3.bf16.msra.mxu1 %v3317_v58  ;;  %v2577_v13 = vsel %vm2557_vm4, %v2526_v31, %v5711_v3  ;;  %v2678_v32 = vsel %vm2659_vm6, %v2627_v0, %v5744_v54  ;;  %v2779_v57 = vld [vmem:[%s6797_s3 + $0x90] sm:$0xff] }
 0x457   : > { %v2728_v60 = vsel %vm2710_vm7, %v2677_v16, %v5713_v46  ;;  %3319 = vmatprep.subr.bf16.mxu1 %v3512_v61  ;;  %v2628_v46 = vsel %vm2608_vm5, %v2577_v13, %v5742_v50  ;;  %v2729_v18 = vsel %vm2710_vm7, %v2678_v32, %v5786_v43  ;;  %v7347_v3 = vld [vmem:[#allocation179_spill] sm:$0xff]  ;;  %v7349_v38 = vld [vmem:[#allocation178_spill] sm:$0xff]  ;;  %v7351_v43 = vld [vmem:[#allocation32_spill] sm:$0xff]  ;;  %v2876_v7 = vadd.f32 %v2875_v19, %v2827_v26 }
 0x458   : > { %1882 = vrot.lane.b32.xlu0 %v7342_v36, %s3506_s18  ;;  %2328 = vrot.lane.b32.xlu1 %v7292_v42, %s3507_s19  ;;  %v7348_v54 = vld [vmem:[#allocation31_spill] sm:$0xff]  ;;  %v2828_v24 = vmul.f32 %v2778_v29, %v2728_v60  ;;  %v2679_v50 = vsel %vm2659_vm6, %v2628_v46, %v5825_v45  ;;  %v2528_v51 = vsel %vm2506_vm3, %v2477_v44, %v7349_v38  ;;  %v7350_v15 = vld [vmem:[#allocation182_spill] sm:$0xff] }
 0x459   : > { %v2427_v31 = vsel %vm2404_vm1, %v7348_v54, %v7347_v3  ;;  %v2428_v58 = vsel %vm2404_vm1, %v7351_v43, %v7350_v15  ;;  %v2730_v53 = vsel %vm2710_vm7, %v2679_v50, %v5855_v55  ;;  %v7353_v45 = vld [vmem:[#allocation186_spill] sm:$0xff]  ;;  %v2578_v44 = vsel %vm2557_vm4, %v2527_v14, %v5784_v37  ;;  %v7354_v29 = vld [vmem:[#allocation187_spill] sm:$0xff]  ;;  %v7361_v50 = vld [vmem:[#allocation16_spill] sm:$0xff] }
 0x45a   : > { %v6124_v52 = vpop.permute.xlu0 %1854  ;;  %v6126_v22 = vpop.permute.xlu1 %2300  ;;  %v2478_v47 = vsel %vm2455_vm2, %v2427_v31, %v7352_v6  ;;  %v2479_v17 = vsel %vm2455_vm2, %v2428_v58, %v7353_v45  ;;  %v2829_v0 = vmul.f32 %v2779_v57, %v2729_v18  ;;  %v2629_v9 = vsel %vm2608_vm5, %v2578_v44, %v5823_v2  ;;  %v7355_v55 = vld [vmem:[#allocation87_spill] sm:$0xff]  ;;  %v7356_v14 = vld [vmem:[#allocation190_spill] sm:$0xff]  ;;  %v2781_v18 = vld [vmem:[%s6797_s3 + $0xa0] sm:$0xff] }
 0x45b   : > { %v2529_v60 = vsel %vm2506_vm3, %v2478_v47, %v7354_v29  ;;  %v2579_v13 = vsel %vm2557_vm4, %v2528_v51, %v5853_v8  ;;  %v2877_v26 = vadd.f32 %v2876_v7, %v2828_v24  ;;  %v2830_v32 = vmul.f32 %v2780_v20, %v2730_v53  ;;  %v7357_v46 = vld [vmem:[#allocation191_spill] sm:$0xff]  ;;  %v7358_v57 = vld [vmem:[#allocation34_spill] sm:$0xff]  ;;  %v7363_v58 = vld [vmem:[#allocation196_spill] sm:$0xff] }
 0x45c   : > { %2032 = vrot.lane.b32.xlu0 %v7342_v36, %s3510_s28  ;;  %2180 = vrot.lane.b32.xlu1 %v7318_v23, %s3511_s29  ;;  %v2630_v37 = vsel %vm2608_vm5, %v2579_v13, %v5875_v63  ;;  %v2680_v49 = vsel %vm2659_vm6, %v2629_v9, %v5877_v62  ;;  %v2530_v2 = vsel %vm2506_vm3, %v2479_v17, %v7356_v14  ;;  %v7359_v62 = vld [vmem:[#allocation193_spill] sm:$0xff]  ;;  %v7360_v24 = vld [vmem:[#allocation194_spill] sm:$0xff]  ;;  %v7362_v43 = vld [vmem:[#allocation195_spill] sm:$0xff] }
 0x45d   : > { %v2429_v8 = vsel %vm2404_vm1, %v7358_v57, %v7357_v46  ;;  %v2731_v3 = vsel %vm2710_vm7, %v2680_v49, %v5890_v33  ;;  %v2681_v63 = vsel %vm2659_vm6, %v2630_v37, %v5919_v25  ;;  %v2430_v38 = vsel %vm2404_vm1, %v7361_v50, %v7360_v24  ;;  %v2782_v15 = vld [vmem:[%s6797_s3 + $0xa8] sm:$0xff]  ;;  %v2918_v9 = vld [vmem:[%s6798_s4 + $0x10] sm:$0xff]  ;;  %v2784_v14 = vld [vmem:[%s6797_s3 + $0xb8] sm:$0xff] }
 0x45e   : > { %v2005_v16 = vpop.permute.xlu0 %2004  ;;  %v2153_v48 = vpop.permute.xlu1 %2152  ;;  %v2480_v19 = vsel %vm2455_vm2, %v2429_v8, %v7359_v62  ;;  %v2878_v51 = vadd.f32 %v2877_v26, %v2829_v0  ;;  %v2732_v33 = vsel %vm2710_vm7, %v2681_v63, %v5961_v34  ;;  %v2481_v6 = vsel %vm2455_vm2, %v2430_v38, %v7363_v58  ;;  %v7364_v20 = vld [vmem:[#allocation197_spill] sm:$0xff]  ;;  %v7369_v50 = vld [vmem:[#allocation48_spill] sm:$0xff] }
 0x45f   : > { %v2531_v25 = vsel %vm2506_vm3, %v2480_v19, %v7362_v43  ;;  %v2580_v47 = vsel %vm2557_vm4, %v2529_v60, %v5888_v27  ;;  %v2532_v53 = vsel %vm2506_vm3, %v2481_v6, %v7364_v20  ;;  %v2831_v34 = vmul.f32 %v2781_v18, %v2731_v3  ;;  %v7367_v3 = vld [vmem:[#allocation20_spill] sm:$0xff]  ;;  %v7368_v62 = vld [vmem:[#allocation45_spill] sm:$0xff] }
 0x460   : > { %1884 = vrot.lane.b32.xlu0 %v7355_v55, %s3506_s18  ;;  %2330 = vrot.lane.b32.xlu1 %v7318_v23, %s3507_s19  ;;  %v2879_v45 = vadd.f32 %v2878_v51, %v2830_v32  ;;  %v2631_v17 = vsel %vm2608_vm5, %v2580_v47, %v5917_v39  ;;  %v2581_v7 = vsel %vm2557_vm4, %v2530_v2, %v5959_v40  ;;  %v2919_v39 = vld [vmem:[%s6798_s4 + $0x18] sm:$0xff]  ;;  %v2920_v47 = vld [vmem:[%s6798_s4 + $0x20] sm:$0xff] }
 0x461   : > { %v2832_v44 = vmul.f32 %v2782_v15, %v2732_v33  ;;  %v2682_v27 = vsel %vm2659_vm6, %v2631_v17, %v6005_v5  ;;  %v2632_v40 = vsel %vm2608_vm5, %v2581_v7, %v6003_v28  ;;  %v2783_v5 = vld [vmem:[%s6797_s3 + $0xb0] sm:$0xff]  ;;  %v3320_v26 = vpack.c.bf16 %v2919_v39, %v2918_v9  ;;  %v7365_v28 = vld [vmem:[#allocation89_spill] sm:$0xff] }
 0x462   : > { %v1857_v54 = vpop.permute.xlu0 %1856  ;;  %v2303_v31 = vpop.permute.xlu1 %2302  ;;  %v2582_v32 = vsel %vm2557_vm4, %v2531_v25, %v6043_v4  ;;  %v2683_v37 = vsel %vm2659_vm6, %v2632_v40, %v6085_v41  ;;  %v2583_v49 = vsel %vm2557_vm4, %v2532_v53, %v6124_v52  ;;  %v2880_v52 = vadd.f32 %v2879_v45, %v2831_v34  ;;  %v2921_v20 = vld [vmem:[%s6798_s4 + $0x28] sm:$0xff]  ;;  %v2787_v7 = vld [vmem:[%s6797_s3 + $0xd0] sm:$0xff] }
 0x463   : > { %v2584_v0 = vsel %vm2557_vm4, %v5910_v1, %v1857_v54  ;;  %v2733_v1 = vsel %vm2710_vm7, %v2682_v27, %v6045_v10  ;;  %v2633_v10 = vsel %vm2608_vm5, %v2582_v32, %v6083_v56  ;;  %v2734_v4 = vsel %vm2710_vm7, %v2683_v37, %v6126_v22  ;;  %3321 = vmatpush3.bf16.msra.mxu1 %v3320_v26  ;;  %v7366_v56 = vld [vmem:[#allocation40_spill] sm:$0xff]  ;;  %v7370_v34 = vld [vmem:[#allocation97_spill] sm:$0xff] }
 0x464   : > { %2034 = vrot.lane.b32.xlu0 %v7355_v55, %s3510_s28  ;;  %2182 = vrot.lane.b32.xlu1 %v7342_v36, %s3511_s29  ;;  %v2634_v41 = vsel %vm2608_vm5, %v2583_v49, %v2005_v16  ;;  %v2833_v2 = vmul.f32 %v2783_v5, %v2733_v1  ;;  %v2684_v46 = vsel %vm2659_vm6, %v2633_v10, %v2153_v48  ;;  %v2785_v22 = vld [vmem:[%s6797_s3 + $0xc0] sm:$0xff] }
 0x465   : > { %3322 = vmatprep.subr.bf16.mxu1 %v3512_v61  ;;  %v2432_v63 = vsel %vm2404_vm1, %v7367_v3, %v7366_v56  ;;  %v2735_v16 = vsel %vm2710_vm7, %v2684_v46, %v2303_v31  ;;  %v2881_v19 = vadd.f32 %v2880_v52, %v2832_v44  ;;  %v2834_v24 = vmul.f32 %v2784_v14, %v2734_v4  ;;  %v2786_v31 = vld [vmem:[%s6797_s3 + $0xc8] sm:$0xff]  ;;  %v7375_v52 = vld [vmem:[#allocation100_spill] sm:$0xff] }
 0x466   : > { %v2007_v29 = vpop.permute.xlu0 %2006  ;;  %v2155_v60 = vpop.permute.xlu1 %2154  ;;  %v2483_v48 = vsel %vm2455_vm2, %v2432_v63, %v7368_v62  ;;  %v2835_v15 = vmul.f32 %v2785_v22, %v2735_v16  ;;  %v3323_v17 = vpack.c.bf16 %v2921_v20, %v2920_v47  ;;  %v7373_v40 = vld [vmem:[#allocation57_spill] sm:$0xff]  ;;  %v7378_v63 = vld [vmem:[#allocation63_spill] sm:$0xff]  ;;  %v7382_v20 = vld [vmem:[#allocation28_spill] sm:$0xff] }
 0x467   : > { %v2635_v13 = vsel %vm2608_vm5, %v2584_v0, %v2007_v29  ;;  %v2685_v57 = vsel %vm2659_vm6, %v2634_v41, %v2155_v60  ;;  %v2534_v38 = vsel %vm2506_vm3, %v2483_v48, %v7369_v50  ;;  %v2882_v51 = vadd.f32 %v2881_v19, %v2833_v2  ;;  %v7371_v29 = vld [vmem:[#allocation54_spill] sm:$0xff]  ;;  %v7374_v26 = vld [vmem:[#allocation61_spill] sm:$0xff]  ;;  %v2788_v2 = vld [vmem:[%s6797_s3 + $0xd8] sm:$0xff] }
 0x468   : > { %1886 = vrot.lane.b32.xlu0 %v7365_v28, %s3506_s18  ;;  %2332 = vrot.lane.b32.xlu1 %v7342_v36, %s3507_s19  ;;  %v7372_v60 = vld [vmem:[#allocation22_spill] sm:$0xff]  ;;  %v7381_v47 = vld [vmem:[#allocation71_spill] sm:$0xff] }
 0x469   : > { %v2883_v53 = vadd.f32 %v2882_v51, %v2834_v24  ;;  %3324 = vmatpush3.bf16.msra.mxu1 %v3323_v17  ;;  %v2433_v9 = vsel %vm2404_vm1, %v7372_v60, %v7371_v29  ;;  %v7383_v17 = vld [vmem:[#allocation74_spill] sm:$0xff] }
 0x46a   : > { %v1859_v8 = vpop.permute.xlu0 %1858  ;;  %v2305_v18 = vpop.permute.xlu1 %2304  ;;  %3325 = vmatprep.subr.bf16.mxu1 %v3512_v61  ;;  %v2484_v5 = vsel %vm2455_vm2, %v2433_v9, %v7373_v40 }
 0x46b   : > { %v2736_v54 = vsel %vm2710_vm7, %v2685_v57, %v2305_v18  ;;  %v2585_v33 = vsel %vm2557_vm4, %v2534_v38, %v1859_v8  ;;  %v2884_v44 = vadd.f32 %v2883_v53, %v2835_v15  ;;  %v2535_v32 = vsel %vm2506_vm3, %v2484_v5, %v7374_v26  ;;  %v7376_v8 = vld [vmem:[#allocation59_spill] sm:$0xff]  ;;  %v7377_v18 = vld [vmem:[#allocation24_spill] sm:$0xff] }
 0x46c   : > { %2036 = vrot.lane.b32.xlu0 %v7365_v28, %s3510_s28  ;;  %2184 = vrot.lane.b32.xlu1 %v7355_v55, %s3511_s29  ;;  %v2836_v45 = vmul.f32 %v2786_v31, %v2736_v54  ;;  %v2434_v56 = vsel %vm2404_vm1, %v7377_v18, %v7376_v8  ;;  %v7379_v54 = vld [vmem:[#allocation66_spill] sm:$0xff]  ;;  %v2923_v31 = vld [vmem:[%s6798_s4 + $0x38] sm:$0xff]  ;;  %v2435_v53 = vsel %vm2404_vm1, %v7382_v20, %v7381_v47 }
 0x46d   : > { %v2485_v22 = vsel %vm2455_vm2, %v2434_v56, %v7378_v63  ;;  %v2922_v38 = vld [vmem:[%s6798_s4 + $0x30] sm:$0xff] }
 0x46e   : > { %v2009_v43 = vpop.permute.xlu0 %2008  ;;  %v2157_v25 = vpop.permute.xlu1 %2156  ;;  %v2885_v1 = vadd.f32 %v2884_v44, %v2836_v45  ;;  %v2536_v62 = vsel %vm2506_vm3, %v2485_v22, %v7379_v54  ;;  %v7385_v26 = vld [vmem:[#allocation27_spill] sm:$0xff]  ;;  %v7388_v8 = vld [vmem:[#allocation78_spill] sm:$0xff]  ;;  %v7389_v54 = vld [vmem:[#allocation8_spill] sm:$0xff] }
 0x46f   : > { %v2636_v58 = vsel %vm2608_vm5, %v2585_v33, %v2009_v43  ;;  %v2686_v6 = vsel %vm2659_vm6, %v2635_v13, %v2157_v25  ;;  %v3326_v33 = vpack.c.bf16 %v2923_v31, %v2922_v38  ;;  %v7380_v43 = vld [vmem:[#allocation109_spill] sm:$0xff]  ;;  %v7391_v31 = vld [vmem:[#allocation83_spill] sm:$0xff] }
 0x470   : > { %1888 = vrot.lane.b32.xlu0 %v7370_v34, %s3506_s18  ;;  %2334 = vrot.lane.b32.xlu1 %v7355_v55, %s3507_s19  ;;  %v2789_v25 = vld [vmem:[%s6797_s3 + $0xe0] sm:$0xff]  ;;  %v2926_v20 = vld [vmem:[%s6798_s4 + $0x50] sm:$0xff] }
 0x471   : > { %3327 = vmatpush3.bf16.msra.mxu1 %v3326_v33  ;;  %v7392_v33 = vld [vmem:[#allocation86_spill] sm:$0xff] }
 0x472   : > { %v1861_v27 = vpop.permute.xlu0 %1860  ;;  %v2307_v0 = vpop.permute.xlu1 %2306  ;;  %3328 = vmatprep.subr.bf16.mxu1 %v3512_v61 }
 0x473   : > { %v2737_v39 = vsel %vm2710_vm7, %v2686_v6, %v2307_v0  ;;  %v2586_v37 = vsel %vm2557_vm4, %v2535_v32, %v1861_v27  ;;  %v7384_v27 = vld [vmem:[#allocation76_spill] sm:$0xff] }
 0x474   : > { %v2837_v13 = vmul.f32 %v2787_v7, %v2737_v39  ;;  %2038 = vrot.lane.b32.xlu0 %v7370_v34, %s3510_s28  ;;  %2186 = vrot.lane.b32.xlu1 %v7365_v28, %s3511_s29  ;;  %v2486_v7 = vsel %vm2455_vm2, %v2435_v53, %v7383_v17  ;;  %v2927_v53 = vld [vmem:[%s6798_s4 + $0x58] sm:$0xff] }
 0x475   : > { %v2537_v0 = vsel %vm2506_vm3, %v2486_v7, %v7384_v27  ;;  %v3332_v7 = vpack.c.bf16 %v2927_v53, %v2926_v20  ;;  %v2792_v27 = vld [vmem:[%s6797_s3 + $0xf8] sm:$0xff] }
 0x476   : > { %v2886_v49 = vadd.f32 %v2885_v1, %v2837_v13  ;;  %v2011_v10 = vpop.permute.xlu0 %2010  ;;  %v2159_v14 = vpop.permute.xlu1 %2158  ;;  %v2924_v1 = vld [vmem:[%s6798_s4 + $0x40] sm:$0xff]  ;;  %v2925_v13 = vld [vmem:[%s6798_s4 + $0x48] sm:$0xff] }
 0x477   : > { %v2637_v4 = vsel %vm2608_vm5, %v2586_v37, %v2011_v10  ;;  %v2687_v41 = vsel %vm2659_vm6, %v2636_v58, %v2159_v14  ;;  %v3329_v32 = vpack.c.bf16 %v2925_v13, %v2924_v1  ;;  %v2790_v37 = vld [vmem:[%s6797_s3 + $0xe8] sm:$0xff]  ;;  %v7386_v14 = vld [vmem:[#allocation75_spill] sm:$0xff] }
 0x478   : > { %1890 = vrot.lane.b32.xlu0 %v7375_v52, %s3506_s18  ;;  %2336 = vrot.lane.b32.xlu1 %v7365_v28, %s3507_s19  ;;  %v7396_v13 = vld [vmem:[#allocation93_spill] sm:$0xff] }
 0x479   : > { %3330 = vmatpush3.bf16.msra.mxu1 %v3329_v32 }
 0x47a   : > { %v1863_v46 = vpop.permute.xlu0 %1862  ;;  %v2309_v57 = vpop.permute.xlu1 %2308  ;;  %3331 = vmatprep.subr.bf16.mxu1 %v3512_v61 }
 0x47b   : > { %v2738_v3 = vsel %vm2710_vm7, %v2687_v41, %v2309_v57  ;;  %v2587_v48 = vsel %vm2557_vm4, %v2536_v62, %v1863_v46  ;;  %v2791_v62 = vld [vmem:[%s6797_s3 + $0xf0] sm:$0xff] }
 0x47c   : > { %v2838_v16 = vmul.f32 %v2788_v2, %v2738_v3  ;;  %2040 = vrot.lane.b32.xlu0 %v7375_v52, %s3510_s28  ;;  %2188 = vrot.lane.b32.xlu1 %v7370_v34, %s3511_s29  ;;  %v7387_v2 = vld [vmem:[#allocation77_spill] sm:$0xff] }
 0x47d   : > { %3333 = vmatpush3.bf16.msra.mxu1 %v3332_v7 }
 0x47e   : > { %v2887_v19 = vadd.f32 %v2886_v49, %v2838_v16  ;;  %v2013_v24 = vpop.permute.xlu0 %2012  ;;  %v2161_v50 = vpop.permute.xlu1 %2160  ;;  %3334 = vmatprep.subr.bf16.mxu1 %v3512_v61 }
 0x47f   : > { %v2638_v51 = vsel %vm2608_vm5, %v2587_v48, %v2013_v24  ;;  %v2688_v15 = vsel %vm2659_vm6, %v2637_v4, %v2161_v50  ;;  %v2436_v4 = vsel %vm2404_vm1, %v7225_v30, %v7386_v14  ;;  %v7390_v24 = vld [vmem:[#allocation81_spill] sm:$0xff] }
 0x480   : > { %1892 = vrot.lane.b32.xlu0 %v7380_v43, %s3506_s18  ;;  %2338 = vrot.lane.b32.xlu1 %v7370_v34, %s3507_s19  ;;  %v2487_v46 = vsel %vm2455_vm2, %v2436_v4, %v7387_v2  ;;  %v2437_v50 = vsel %vm2404_vm1, %v4626_v11, %v7390_v24  ;;  %v2929_v2 = vld [vmem:[%s6798_s4 + $0x68] sm:$0xff] }
 0x481   : > { %v2538_v18 = vsel %vm2506_vm3, %v2487_v46, %v7388_v8  ;;  %v7397_v46 = vld [vmem:[#allocation12_spill] sm:$0xff] }
 0x482   : > { %v1865_v58 = vpop.permute.xlu0 %1864  ;;  %v2311_v6 = vpop.permute.xlu1 %2310  ;;  %v2793_v8 = vld [vmem:[%s6797_s3 + $0x100] sm:$0xff] }
 0x483   : > { %v2739_v45 = vsel %vm2710_vm7, %v2688_v15, %v2311_v6  ;;  %v2588_v29 = vsel %vm2557_vm4, %v2537_v0, %v1865_v58 }
 0x484   : > { %v2839_v44 = vmul.f32 %v2789_v25, %v2739_v45  ;;  %2042 = vrot.lane.b32.xlu0 %v7380_v43, %s3510_s28  ;;  %2190 = vrot.lane.b32.xlu1 %v7375_v52, %s3511_s29 }
 0x486   : > { %v2888_v60 = vadd.f32 %v2887_v19, %v2839_v44  ;;  %v2015_v9 = vpop.permute.xlu0 %2014  ;;  %v2163_v39 = vpop.permute.xlu1 %2162  ;;  %v7393_v44 = vld [vmem:[#allocation11_spill] sm:$0xff] }
 0x487   : > { %v2639_v40 = vsel %vm2608_vm5, %v2588_v29, %v2015_v9  ;;  %v2689_v5 = vsel %vm2659_vm6, %v2638_v51, %v2163_v39  ;;  %v2488_v51 = vsel %vm2455_vm2, %v2437_v50, %v7391_v31 }
 0x488   : > { %1894 = vrot.lane.b32.xlu0 %v7385_v26, %s3506_s18  ;;  %2340 = vrot.lane.b32.xlu1 %v7375_v52, %s3507_s19  ;;  %v2539_v25 = vsel %vm2506_vm3, %v2488_v51, %v7392_v33  ;;  %v7401_v51 = vld [vmem:[#allocation33_spill] sm:$0xff] }
 0x48a   : > { %v1867_v49 = vpop.permute.xlu0 %1866  ;;  %v2313_v10 = vpop.permute.xlu1 %2312 }
 0x48b   : > { %v2740_v41 = vsel %vm2710_vm7, %v2689_v5, %v2313_v10  ;;  %v2589_v56 = vsel %vm2557_vm4, %v2538_v18, %v1867_v49 }
 0x48c   : > { %v2840_v57 = vmul.f32 %v2790_v37, %v2740_v41  ;;  %2044 = vrot.lane.b32.xlu0 %v7385_v26, %s3510_s28  ;;  %2192 = vrot.lane.b32.xlu1 %v7380_v43, %s3511_s29  ;;  %v2928_v41 = vld [vmem:[%s6798_s4 + $0x60] sm:$0xff] }
 0x48e   : > { %v2889_v30 = vadd.f32 %v2888_v60, %v2840_v57  ;;  %v2017_v3 = vpop.permute.xlu0 %2016  ;;  %v2165_v63 = vpop.permute.xlu1 %2164  ;;  %v7394_v60 = vld [vmem:[#allocation88_spill] sm:$0xff]  ;;  %v3335_v57 = vpack.c.bf16 %v2929_v2, %v2928_v41 }
 0x48f   : > { %v2640_v22 = vsel %vm2608_vm5, %v2589_v56, %v2017_v3  ;;  %v2690_v16 = vsel %vm2659_vm6, %v2639_v40, %v2165_v63  ;;  %v2438_v9 = vsel %vm2404_vm1, %v7241_v21, %v7394_v60  ;;  %v7395_v40 = vld [vmem:[#allocation91_spill] sm:$0xff] }
 0x490   : > { %1896 = vrot.lane.b32.xlu0 %v7389_v54, %s3506_s18  ;;  %2342 = vrot.lane.b32.xlu1 %v7380_v43, %s3507_s19  ;;  %v2489_v5 = vsel %vm2455_vm2, %v2438_v9, %v7395_v40  ;;  %v2795_v9 = vld [vmem:[%s6797_s3 + $0x110] sm:$0xff] }
 0x491   : > { %v2540_v32 = vsel %vm2506_vm3, %v2489_v5, %v7396_v13  ;;  %3336 = vmatpush3.bf16.msra.mxu1 %v3335_v57  ;;  %v2930_v5 = vld [vmem:[%s6798_s4 + $0x70] sm:$0xff]  ;;  %v7405_v13 = vld [vmem:[#allocation113_spill] sm:$0xff] }
 0x492   : > { %v1869_v48 = vpop.permute.xlu0 %1868  ;;  %v2315_v19 = vpop.permute.xlu1 %2314  ;;  %3337 = vmatprep.subr.bf16.mxu1 %v3512_v61 }
 0x493   : > { %v2741_v38 = vsel %vm2710_vm7, %v2690_v16, %v2315_v19  ;;  %v2590_v58 = vsel %vm2557_vm4, %v2539_v25, %v1869_v48  ;;  %v7400_v48 = vld [vmem:[#allocation104_spill] sm:$0xff] }
 0x494   : > { %v2841_v15 = vmul.f32 %v2791_v62, %v2741_v38  ;;  %2046 = vrot.lane.b32.xlu0 %v7389_v54, %s3510_s28  ;;  %2194 = vrot.lane.b32.xlu1 %v7385_v26, %s3511_s29 }
 0x496   : > { %v2890_v6 = vadd.f32 %v2889_v30, %v2841_v15  ;;  %v2019_v47 = vpop.permute.xlu0 %2018  ;;  %v2167_v11 = vpop.permute.xlu1 %2166  ;;  %v7398_v30 = vld [vmem:[#allocation95_spill] sm:$0xff]  ;;  %v2794_v15 = vld [vmem:[%s6797_s3 + $0x108] sm:$0xff] }
 0x497   : > { %v2641_v45 = vsel %vm2608_vm5, %v2590_v58, %v2019_v47  ;;  %v2691_v17 = vsel %vm2659_vm6, %v2640_v22, %v2167_v11  ;;  %v2439_v3 = vsel %vm2404_vm1, %v7253_v59, %v7398_v30  ;;  %v7399_v22 = vld [vmem:[#allocation101_spill] sm:$0xff]  ;;  %v7403_v11 = vld [vmem:[#allocation110_spill] sm:$0xff]  ;;  %v2796_v30 = vld [vmem:[%s6797_s3 + $0x118] sm:$0xff] }
 0x498   : > { %1898 = vrot.lane.b32.xlu0 %v7393_v44, %s3506_s18  ;;  %2344 = vrot.lane.b32.xlu1 %v7385_v26, %s3507_s19  ;;  %v2490_v16 = vsel %vm2455_vm2, %v2439_v3, %v7399_v22  ;;  %v7402_v58 = vld [vmem:[#allocation105_spill] sm:$0xff]  ;;  %v7408_v22 = vld [vmem:[#allocation120_spill] sm:$0xff] }
 0x499   : > { %v2541_v19 = vsel %vm2506_vm3, %v2490_v16, %v7400_v48  ;;  %v2442_v16 = vsel %vm2404_vm1, %v7292_v42, %v7408_v22  ;;  %v7409_v48 = vld [vmem:[#allocation124_spill] sm:$0xff] }
 0x49a   : > { %v1871_v0 = vpop.permute.xlu0 %1870  ;;  %v2317_v29 = vpop.permute.xlu1 %2316  ;;  %v2797_v42 = vld [vmem:[%s6797_s3 + $0x120] sm:$0xff] }
 0x49b   : > { %v2742_v39 = vsel %vm2710_vm7, %v2691_v17, %v2317_v29  ;;  %v2591_v37 = vsel %vm2557_vm4, %v2540_v32, %v1871_v0  ;;  %v2441_v32 = vsel %vm2404_vm1, %v7276_v12, %v7405_v13 }
 0x49c   : > { %v2842_v1 = vmul.f32 %v2792_v27, %v2742_v39  ;;  %2048 = vrot.lane.b32.xlu0 %v7393_v44, %s3510_s28  ;;  %2196 = vrot.lane.b32.xlu1 %v7389_v54, %s3511_s29 }
 0x49e   : > { %v2891_v49 = vadd.f32 %v2890_v6, %v2842_v1  ;;  %v2021_v10 = vpop.permute.xlu0 %2020  ;;  %v2169_v21 = vpop.permute.xlu1 %2168  ;;  %v2440_v6 = vsel %vm2404_vm1, %v7265_v35, %v7402_v58  ;;  %v2931_v1 = vld [vmem:[%s6798_s4 + $0x78] sm:$0xff] }
 0x49f   : > { %v2642_v14 = vsel %vm2608_vm5, %v2591_v37, %v2021_v10  ;;  %v2692_v4 = vsel %vm2659_vm6, %v2641_v45, %v2169_v21  ;;  %v2491_v20 = vsel %vm2455_vm2, %v2440_v6, %v7403_v11  ;;  %v7404_v45 = vld [vmem:[#allocation112_spill] sm:$0xff]  ;;  %v7406_v10 = vld [vmem:[#allocation117_spill] sm:$0xff] }
 0x4a0   : > { %1900 = vrot.lane.b32.xlu0 %v7397_v46, %s3506_s18  ;;  %2346 = vrot.lane.b32.xlu1 %v7389_v54, %s3507_s19  ;;  %v2542_v17 = vsel %vm2506_vm3, %v2491_v20, %v7404_v45  ;;  %v2492_v21 = vsel %vm2455_vm2, %v2441_v32, %v7406_v10 }
 0x4a2   : > { %v1873_v18 = vpop.permute.xlu0 %1872  ;;  %v2319_v56 = vpop.permute.xlu1 %2318 }
 0x4a3   : > { %v2743_v63 = vsel %vm2710_vm7, %v2692_v4, %v2319_v56  ;;  %v2592_v24 = vsel %vm2557_vm4, %v2541_v19, %v1873_v18  ;;  %v7407_v4 = vld [vmem:[#allocation121_spill] sm:$0xff]  ;;  %v2493_v19 = vsel %vm2455_vm2, %v2442_v16, %v7409_v48  ;;  %v2800_v48 = vld [vmem:[%s6797_s3 + $0x138] sm:$0xff] }
 0x4a4   : > { %v2843_v62 = vmul.f32 %v2793_v8, %v2743_v63  ;;  %2050 = vrot.lane.b32.xlu0 %v7397_v46, %s3510_s28  ;;  %2198 = vrot.lane.b32.xlu1 %v7393_v44, %s3511_s29  ;;  %v2543_v41 = vsel %vm2506_vm3, %v2492_v21, %v7407_v4  ;;  %v2799_v21 = vld [vmem:[%s6797_s3 + $0x130] sm:$0xff] }
 0x4a6   : > { %v2892_v59 = vadd.f32 %v2891_v49, %v2843_v62  ;;  %v2023_v50 = vpop.permute.xlu0 %2022  ;;  %v2171_v38 = vpop.permute.xlu1 %2170  ;;  %v3338_v49 = vpack.c.bf16 %v2931_v1, %v2930_v5 }
 0x4a7   : > { %v2643_v61 = vsel %vm2608_vm5, %v2592_v24, %v2023_v50  ;;  %v2693_v31 = vsel %vm2659_vm6, %v2642_v14, %v2171_v38 }
 0x4a8   : > { %1902 = vrot.lane.b32.xlu0 %v7401_v51, %s3506_s18  ;;  %2348 = vrot.lane.b32.xlu1 %v7393_v44, %s3507_s19 }
 0x4a9   : > { %3339 = vmatpush3.bf16.msra.mxu1 %v3338_v49 }
 0x4aa   : > { %v1875_v33 = vpop.permute.xlu0 %1874  ;;  %v2321_v25 = vpop.permute.xlu1 %2320 }
 0x4ab   : > { %v2744_v47 = vsel %vm2710_vm7, %v2693_v31, %v2321_v25  ;;  %v2593_v7 = vsel %vm2557_vm4, %v2542_v17, %v1875_v33 }
 0x4ac   : > { %v2844_v53 = vmul.f32 %v2794_v15, %v2744_v47  ;;  %2052 = vrot.lane.b32.xlu0 %v7401_v51, %s3510_s28  ;;  %2200 = vrot.lane.b32.xlu1 %v7397_v46, %s3511_s29  ;;  %v7411_v47 = vld [vmem:[#allocation10_spill] sm:$0xff] }
 0x4ad   : > { %v2443_v11 = vsel %vm2404_vm1, %v7318_v23, %v7411_v47  ;;  %v2798_v23 = vld [vmem:[%s6797_s3 + $0x128] sm:$0xff] }
 0x4ae   : > { %v2893_v27 = vadd.f32 %v2892_v59, %v2844_v53  ;;  %v2025_v0 = vpop.permute.xlu0 %2024  ;;  %v2173_v35 = vpop.permute.xlu1 %2172  ;;  %v7410_v59 = vld [vmem:[#allocation128_spill] sm:$0xff]  ;;  %v7412_v53 = vld [vmem:[#allocation15_spill] sm:$0xff] }
 0x4af   : > { %v2644_v29 = vsel %vm2608_vm5, %v2593_v7, %v2025_v0  ;;  %v2694_v60 = vsel %vm2659_vm6, %v2643_v61, %v2173_v35  ;;  %v2544_v50 = vsel %vm2506_vm3, %v2493_v19, %v7410_v59  ;;  %v2494_v45 = vsel %vm2455_vm2, %v2443_v11, %v7412_v53  ;;  %v7413_v7 = vld [vmem:[#allocation134_spill] sm:$0xff] }
 0x4b0   : > { %2202 = vrot.lane.b32.xlu0 %v7401_v51, %s3511_s29  ;;  %2350 = vrot.lane.b32.xlu1 %v7397_v46, %s3507_s19  ;;  %s242_s29 = sand.u32 1, %s3493_s22  }
 0x4b1   : > { %s243_s12 = scalar_lea.vmem [#allocation2], %s242_s29  ;;  %s3006_s18 = scalar_lea.sflag [#allocation3], %s242_s29 }
 0x4b2   : > { %v1877_v39 = vpop.permute.xlu0 %1876  ;;  %v2323_v40 = vpop.permute.xlu1 %2322  ;;  %s3018_s13 = sshll.u32 %s243_s12, 4  ;;  %s6754_s13 = int_to_ptr.vmem [resolvable:$true] %s3018_s13 }
 0x4b3   : > { %v2745_v37 = vsel %vm2710_vm7, %v2694_v60, %v2323_v40  ;;  %v2594_v2 = vsel %vm2557_vm4, %v2543_v41, %v1877_v39  ;;  %s3439_s28 = scalar_lea.vmem %s6754_s13, 16  ;;  %p3446_p0 = scmp.lt.s32.totalorder %s6754_s13, %s3444_s17 }
 0x4b4   : > { %v2845_v14 = vmul.f32 %v2795_v9, %v2745_v37  ;;  %2352 = vrot.lane.b32.xlu1 %v7401_v51, %s3507_s19  ;;  %p3440_p11 = scmp.ne.s32.totalorder %s6754_s13, %s3439_s28  ;;  %p3447_p1 = scmp.lt.s32.totalorder %s3445_s20, %s3439_s28 }
 0x4b6   : > { %v2894_v57 = vadd.f32 %v2893_v27, %v2845_v14  ;;  %v2027_v8 = vpop.permute.xlu0 %2026  ;;  %v2175_v18 = vpop.permute.xlu1 %2174  ;;  %v2545_v27 = vsel %vm2506_vm3, %v2494_v45, %v7413_v7  ;;  %p3441_p12 = pnand %p3440_p11, %p3587_p5  ;;  %p3448_p2 = por %p3447_p1, %p3446_p0 }
 0x4b7   : > { %v2645_v12 = vsel %vm2608_vm5, %v2594_v2, %v2027_v8  ;;  %v2695_v56 = vsel %vm2659_vm6, %v2644_v29, %v2175_v18  ;;  %v7415_v18 = vld [vmem:[#allocation133_spill] sm:$0xff] }
 0x4b8   : > { %p3442_p13 = pneg %p3441_p12 }
 0x4ba   : > { %v1879_v3 = vpop.permute.xlu0 %1878  ;;  %v2325_v63 = vpop.permute.xlu1 %2324  ;;  %p3449_p3 = pnand %p3448_p2, %p3442_p13 }
 0x4bb   : > { %v2746_v62 = vsel %vm2710_vm7, %v2695_v56, %v2325_v63  ;;  %v2595_v38 = vsel %vm2557_vm4, %v2544_v50, %v1879_v3  ;;  %v7416_v63 = vld [vmem:[#allocation137_spill] sm:$0xff] }
 0x4bc   : > { %v2846_v24 = vmul.f32 %v2796_v30, %v2746_v62 }
 0x4be   : > { %v2895_v61 = vadd.f32 %v2894_v57, %v2846_v24  ;;  %v2029_v31 = vpop.permute.xlu0 %2028  ;;  %v2177_v15 = vpop.permute.xlu1 %2176  ;;  %v7414_v57 = vld [vmem:[#allocation130_spill] sm:$0xff] }
 0x4bf   : > { %v2646_v33 = vsel %vm2608_vm5, %v2595_v38, %v2029_v31  ;;  %v2696_v25 = vsel %vm2659_vm6, %v2645_v12, %v2177_v15  ;;  %v2444_v8 = vsel %vm2404_vm1, %v7342_v36, %v7414_v57 }
 0x4c0   : > { %v2495_v12 = vsel %vm2455_vm2, %v2444_v8, %v7415_v18 }
 0x4c1   : > { %v2546_v22 = vsel %vm2506_vm3, %v2495_v12, %v7416_v63  ;;  %v7423_v12 = vld [vmem:[#allocation145_spill] sm:$0xff] }
 0x4c2   : > { %v1881_v58 = vpop.permute.xlu0 %1880  ;;  %v2327_v6 = vpop.permute.xlu1 %2326 }
 0x4c3   : > { %v2747_v20 = vsel %vm2710_vm7, %v2696_v25, %v2327_v6  ;;  %v2596_v0 = vsel %vm2557_vm4, %v2545_v27, %v1881_v58 }
 0x4c4   : > { %v2847_v17 = vmul.f32 %v2797_v42, %v2747_v20 }
 0x4c6   : > { %v2896_v35 = vadd.f32 %v2895_v61, %v2847_v17  ;;  %v2031_v29 = vpop.permute.xlu0 %2030  ;;  %v2179_v60 = vpop.permute.xlu1 %2178 }
 0x4c7   : > { %v2647_v9 = vsel %vm2608_vm5, %v2596_v0, %v2031_v29  ;;  %v2697_v39 = vsel %vm2659_vm6, %v2646_v33, %v2179_v60 }
 0x4ca   : > { %v1883_v40 = vpop.permute.xlu0 %1882  ;;  %v2329_v5 = vpop.permute.xlu1 %2328 }
 0x4cb   : > { %v2748_v1 = vsel %vm2710_vm7, %v2697_v39, %v2329_v5  ;;  %v2597_v16 = vsel %vm2557_vm4, %v2546_v22, %v1883_v40  ;;  %v7417_v5 = vld [vmem:[#allocation14_spill] sm:$0xff]  ;;  %v7425_v22 = vld [vmem:[#allocation149_spill] sm:$0xff] }
 0x4cc   : > { %v2848_v13 = vmul.f32 %v2798_v23, %v2748_v1  ;;  %v2445_v1 = vsel %vm2404_vm1, %v7355_v55, %v7417_v5  ;;  %v7422_v55 = vld [vmem:[#allocation144_spill] sm:$0xff] }
 0x4ce   : > { %v2897_v32 = vadd.f32 %v2896_v35, %v2848_v13  ;;  %v2033_v37 = vpop.permute.xlu0 %2032  ;;  %v2181_v49 = vpop.permute.xlu1 %2180  ;;  %v7418_v13 = vld [vmem:[#allocation139_spill] sm:$0xff] }
 0x4cf   : > { %v2698_v10 = vsel %vm2659_vm6, %v2647_v9, %v2181_v49  ;;  %v2648_v62 = vsel %vm2608_vm5, %v2597_v16, %v2033_v37  ;;  %v7419_v37 = vld [vmem:[#allocation138_spill] sm:$0xff] }
 0x4d0   : > { %v2446_v49 = vsel %vm2404_vm1, %v7365_v28, %v7419_v37  ;;  %v7430_v37 = vld [vmem:[#allocation160_spill] sm:$0xff] }
 0x4d2   : > { %v1885_v14 = vpop.permute.xlu0 %1884  ;;  %v2331_v4 = vpop.permute.xlu1 %2330 }
 0x4d3   : > { %v2749_v41 = vsel %vm2710_vm7, %v2698_v10, %v2331_v4  ;;  %v7420_v10 = vld [vmem:[#allocation141_spill] sm:$0xff]  ;;  %v7421_v4 = vld [vmem:[#allocation140_spill] sm:$0xff] }
 0x4d4   : > { %v2849_v2 = vmul.f32 %v2799_v21, %v2749_v41  ;;  %v2497_v41 = vsel %vm2455_vm2, %v2446_v49, %v7421_v4  ;;  %v2450_v49 = vsel %vm2404_vm1, %v7385_v26, %v7430_v37  ;;  %v7432_v4 = vld [vmem:[#allocation164_spill] sm:$0xff]  ;;  %v7433_v26 = vld [vmem:[#allocation165_spill] sm:$0xff] }
 0x4d5   : > { %v2548_v18 = vsel %vm2506_vm3, %v2497_v41, %v7422_v55 }
 0x4d6   : > { %v2898_v56 = vadd.f32 %v2897_v32, %v2849_v2  ;;  %v2035_v30 = vpop.permute.xlu0 %2034  ;;  %v2183_v3 = vpop.permute.xlu1 %2182  ;;  %v2496_v32 = vsel %vm2455_vm2, %v2445_v1, %v7418_v13 }
 0x4d7   : > { %v2699_v19 = vsel %vm2659_vm6, %v2648_v62, %v2183_v3  ;;  %v2547_v21 = vsel %vm2506_vm3, %v2496_v32, %v7420_v10  ;;  %v7424_v3 = vld [vmem:[#allocation148_spill] sm:$0xff]  ;;  %v7431_v10 = vld [vmem:[#allocation161_spill] sm:$0xff] }
 0x4d8   : > { %v2598_v2 = vsel %vm2557_vm4, %v2547_v21, %v1885_v14  ;;  %v2448_v63 = vsel %vm2404_vm1, %v7375_v52, %v7424_v3  ;;  %v7435_v3 = vld [vmem:[#allocation169_spill] sm:$0xff] }
 0x4d9   : > { %v2649_v28 = vsel %vm2608_vm5, %v2598_v2, %v2035_v30  ;;  %v2801_v30 = vld [vmem:[%s6797_s3 + $0x140] sm:$0xff] }
 0x4da   : > { %v1887_v36 = vpop.permute.xlu0 %1886  ;;  %v2333_v24 = vpop.permute.xlu1 %2332 }
 0x4db   : > { %v2750_v59 = vsel %vm2710_vm7, %v2699_v19, %v2333_v24  ;;  %v2599_v16 = vsel %vm2557_vm4, %v2548_v18, %v1887_v36  ;;  %v7427_v24 = vld [vmem:[#allocation153_spill] sm:$0xff] }
 0x4dc   : > { %v2850_v50 = vmul.f32 %v2800_v48, %v2750_v59  ;;  %v7426_v48 = vld [vmem:[#allocation152_spill] sm:$0xff]  ;;  %v7429_v36 = vld [vmem:[#allocation157_spill] sm:$0xff] }
 0x4dd   : > { %v2499_v19 = vsel %vm2455_vm2, %v2448_v63, %v7426_v48  ;;  %v7437_v48 = vld [vmem:[#allocation173_spill] sm:$0xff] }
 0x4de   : > { %v6568_v38 = vadd.f32 %v2898_v56, %v2850_v50  ;;  %v2037_v61 = vpop.permute.xlu0 %2036  ;;  %v2185_v31 = vpop.permute.xlu1 %2184  ;;  %v2447_v56 = vsel %vm2404_vm1, %v7370_v34, %v7423_v12  ;;  %v7428_v50 = vld [vmem:[#allocation156_spill] sm:$0xff] }
 0x4df   : > { %v2498_v14 = vsel %vm2455_vm2, %v2447_v56, %v7425_v22  ;;  %v2700_v62 = vsel %vm2659_vm6, %v2649_v28, %v2185_v31  ;;  %v2650_v34 = vsel %vm2608_vm5, %v2599_v16, %v2037_v61  ;;  %v2550_v5 = vsel %vm2506_vm3, %v2499_v19, %v7428_v50  ;;  %v7434_v12 = vld [vmem:[#allocation168_spill] sm:$0xff] }
 0x4e0   : > { %v2549_v59 = vsel %vm2506_vm3, %v2498_v14, %v7427_v24  ;;  %v2449_v31 = vsel %vm2404_vm1, %v7380_v43, %v7429_v36  ;;  %v2802_v43 = vld [vmem:[%s6797_s3 + $0x148] sm:$0xff] }
 0x4e2   : > { %v1889_v15 = vpop.permute.xlu0 %1888  ;;  %v2335_v33 = vpop.permute.xlu1 %2334 }
 0x4e3   : > { %v2751_v52 = vsel %vm2710_vm7, %v2700_v62, %v2335_v33  ;;  %v2600_v1 = vsel %vm2557_vm4, %v2549_v59, %v1889_v15  ;;  %v2500_v33 = vsel %vm2455_vm2, %v2449_v31, %v7431_v10  ;;  %v7436_v62 = vld [vmem:[#allocation172_spill] sm:$0xff] }
 0x4e4   : > { %v2851_v41 = vmul.f32 %v2801_v30, %v2751_v52  ;;  %v2551_v18 = vsel %vm2506_vm3, %v2500_v33, %v7433_v26  ;;  %v7439_v52 = vld [vmem:[#allocation177_spill] sm:$0xff] }
 0x4e5   : > { %v7443_v26 = vld [vmem:[#allocation189_spill] sm:$0xff] }
 0x4e6   : > { %v2039_v25 = vpop.permute.xlu0 %2038  ;;  %v2187_v42 = vpop.permute.xlu1 %2186 }
 0x4e7   : > { %v2701_v13 = vsel %vm2659_vm6, %v2650_v34, %v2187_v42  ;;  %v2651_v21 = vsel %vm2608_vm5, %v2600_v1, %v2039_v25  ;;  %v2501_v42 = vsel %vm2455_vm2, %v2450_v49, %v7432_v4  ;;  %v7442_v4 = vld [vmem:[#allocation185_spill] sm:$0xff] }
 0x4e8   : > { %v2552_v25 = vsel %vm2506_vm3, %v2501_v42, %v7434_v12 }
 0x4ea   : > { %v1891_v58 = vpop.permute.xlu0 %1890  ;;  %v2337_v6 = vpop.permute.xlu1 %2336 }
 0x4eb   : > { %v2752_v15 = vsel %vm2710_vm7, %v2701_v13, %v2337_v6  ;;  %v2601_v2 = vsel %vm2557_vm4, %v2550_v5, %v1891_v58  ;;  %v2803_v6 = vld [vmem:[%s6797_s3 + $0x150] sm:$0xff]  ;;  %v2451_v58 = vsel %vm2404_vm1, %v7389_v54, %v7435_v3  ;;  %v2804_v54 = vld [vmem:[%s6797_s3 + $0x158] sm:$0xff]  ;;  %v2809_v3 = vld [vmem:[%s6797_s3 + $0x180] sm:$0xff] }
 0x4ec   : > { %v2852_v63 = vmul.f32 %v2802_v43, %v2752_v15  ;;  %v2502_v19 = vsel %vm2455_vm2, %v2451_v58, %v7437_v48  ;;  %v7440_v13 = vld [vmem:[#allocation180_spill] sm:$0xff]  ;;  %v2807_v15 = vld [vmem:[%s6797_s3 + $0x170] sm:$0xff] }
 0x4ed   : > { %v7445_v58 = vld [vmem:[#allocation188_spill] sm:$0xff] }
 0x4ee   : > { %v2041_v47 = vpop.permute.xlu0 %2040  ;;  %v2189_v11 = vpop.permute.xlu1 %2188 }
 0x4ef   : > { %v2702_v55 = vsel %vm2659_vm6, %v2651_v21, %v2189_v11  ;;  %v2652_v56 = vsel %vm2608_vm5, %v2601_v2, %v2041_v47  ;;  %v2452_v47 = vsel %vm2404_vm1, %v7393_v44, %v7436_v62  ;;  %v7438_v44 = vld [vmem:[#allocation176_spill] sm:$0xff]  ;;  %v7441_v21 = vld [vmem:[#allocation181_spill] sm:$0xff] }
 0x4f0   : > { %v2503_v30 = vsel %vm2455_vm2, %v2452_v47, %v7438_v44  ;;  %v2453_v43 = vsel %vm2404_vm1, %v7397_v46, %v7441_v21 }
 0x4f1   : > { %v2504_v42 = vsel %vm2455_vm2, %v2453_v43, %v7442_v4 }
 0x4f2   : > { %v1893_v20 = vpop.permute.xlu0 %1892  ;;  %v2339_v53 = vpop.permute.xlu1 %2338  ;;  %v2555_v46 = vsel %vm2506_vm3, %v2504_v42, %v7443_v26 }
 0x4f3   : > { %v2753_v28 = vsel %vm2710_vm7, %v2702_v55, %v2339_v53  ;;  %v2602_v11 = vsel %vm2557_vm4, %v2551_v18, %v1893_v20  ;;  %v2900_v20 = vadd.f32 %v6568_v38, %v2851_v41 }
 0x4f5   : > { %v2901_v5 = vadd.f32 %v2900_v20, %v2852_v63 }
 0x4f6   : > { %v2043_v45 = vpop.permute.xlu0 %2042  ;;  %v2191_v17 = vpop.permute.xlu1 %2190 }
 0x4f7   : > { %v2703_v22 = vsel %vm2659_vm6, %v2652_v56, %v2191_v17  ;;  %v2653_v53 = vsel %vm2608_vm5, %v2602_v11, %v2043_v45  ;;  %v2853_v17 = vmul.f32 %v2803_v6, %v2753_v28  ;;  %v2553_v45 = vsel %vm2506_vm3, %v2502_v19, %v7439_v52  ;;  %v7444_v56 = vld [vmem:[#allocation184_spill] sm:$0xff] }
 0x4f8   : > { %v2454_v6 = vsel %vm2404_vm1, %v7401_v51, %v7444_v56 }
 0x4f9   : > { %v2902_v10 = vadd.f32 %v2901_v5, %v2853_v17  ;;  %v2505_v63 = vsel %vm2455_vm2, %v2454_v6, %v7445_v58 }
 0x4fa   : > { %v6570_v7 = vpop.permute.xlu0 %1894  ;;  %v2341_v27 = vpop.permute.xlu1 %2340 }
 0x4fb   : > { %v2754_v24 = vsel %vm2710_vm7, %v2703_v22, %v2341_v27  ;;  %v2603_v59 = vsel %vm2557_vm4, %v2552_v25, %v6570_v7  ;;  %v2805_v27 = vld [vmem:[%s6797_s3 + $0x160] sm:$0xff] }
 0x4fc   : > { %v2854_v7 = vmul.f32 %v2804_v54, %v2754_v24  ;;  %v2810_v24 = vld [vmem:[%s6797_s3 + $0x188] sm:$0xff] }
 0x4fe   : > { %v6572_v0 = vpop.permute.xlu0 %2044  ;;  %v2193_v35 = vpop.permute.xlu1 %2192 }
 0x4ff   : > { %v2704_v34 = vsel %vm2659_vm6, %v2653_v53, %v2193_v35  ;;  %v2654_v50 = vsel %vm2608_vm5, %v2603_v59, %v6572_v0  ;;  %v2554_v0 = vsel %vm2506_vm3, %v2503_v30, %v7440_v13 }
 0x502   : > { %v6574_v29 = vpop.permute.xlu0 %1896  ;;  %v6576_v60 = vpop.permute.xlu1 %2342 }
 0x503   : > { %v2755_v38 = vsel %vm2710_vm7, %v2704_v34, %v6576_v60  ;;  %v2604_v35 = vsel %vm2557_vm4, %v2553_v45, %v6574_v29  ;;  %v2806_v60 = vld [vmem:[%s6797_s3 + $0x168] sm:$0xff] }
 0x504   : > { %v2855_v29 = vmul.f32 %v2805_v27, %v2755_v38 }
 0x506   : > { %v6578_v9 = vpop.permute.xlu0 %2046  ;;  %v6580_v39 = vpop.permute.xlu1 %2194 }
 0x507   : > { %v2705_v36 = vsel %vm2659_vm6, %v2654_v50, %v6580_v39  ;;  %v2655_v37 = vsel %vm2608_vm5, %v2604_v35, %v6578_v9  ;;  %v2932_v35 = vld [vmem:[%s6799_s5] sm:$0x1] }
 0x50a   : > { %v6582_v23 = vpop.permute.xlu0 %1898  ;;  %v6584_v40 = vpop.permute.xlu1 %2344 }
 0x50b   : > { %v2756_v49 = vsel %vm2710_vm7, %v2705_v36, %v6584_v40  ;;  %v2605_v39 = vsel %vm2557_vm4, %v2554_v0, %v6582_v23  ;;  %v2903_v23 = vadd.f32 %v2902_v10, %v2854_v7 }
 0x50c   : > { %v2856_v41 = vmul.f32 %v2806_v60, %v2756_v49 }
 0x50d   : > { %v2904_v12 = vadd.f32 %v2903_v23, %v2855_v29 }
 0x50e   : > { %v6599_v57 = vpop.permute.xlu0 %2048  ;;  %v6601_v8 = vpop.permute.xlu1 %2196 }
 0x50f   : > { %v2706_v33 = vsel %vm2659_vm6, %v2655_v37, %v6601_v8  ;;  %v2656_v9 = vsel %vm2608_vm5, %v2605_v39, %v6599_v57  ;;  %v2808_v57 = vld [vmem:[%s6797_s3 + $0x178] sm:$0xff]  ;;  %v2905_v11 = vadd.f32 %v2904_v12, %v2856_v41 }
 0x512   : > { %v6632_v32 = vpop.permute.xlu0 %1900  ;;  %v2347_v61 = vpop.permute.xlu1 %2346 }
 0x513   : > { %v2757_v40 = vsel %vm2710_vm7, %v2706_v33, %v2347_v61  ;;  %v2606_v61 = vsel %vm2557_vm4, %v2555_v46, %v6632_v32  ;;  %v7446_v32 = vld [vmem:[#allocation192_spill] sm:$0xff] }
 0x514   : > { %v2857_v25 = vmul.f32 %v2807_v15, %v2757_v40  ;;  %v2556_v47 = vsel %vm2506_vm3, %v2505_v63, %v7446_v32 }
 0x516   : > { %v2051_v14 = vpop.permute.xlu0 %2050  ;;  %v2199_v16 = vpop.permute.xlu1 %2198  ;;  %v2906_v19 = vadd.f32 %v2905_v11, %v2857_v25 }
 0x517   : > { %v2707_v8 = vsel %vm2659_vm6, %v2656_v9, %v2199_v16  ;;  %v2657_v28 = vsel %vm2608_vm5, %v2606_v61, %v2051_v14 }
 0x51a   : > { %v1903_v31 = vpop.permute.xlu0 %1902  ;;  %v2349_v1 = vpop.permute.xlu1 %2348 }
 0x51b   : > { %v2758_v18 = vsel %vm2710_vm7, %v2707_v8, %v2349_v1  ;;  %v2607_v14 = vsel %vm2557_vm4, %v2556_v47, %v1903_v31 }
 0x51c   : > { %v2858_v22 = vmul.f32 %v2808_v57, %v2758_v18 }
 0x51e   : > { %v2053_v2 = vpop.permute.xlu0 %2052  ;;  %v2201_v55 = vpop.permute.xlu1 %2200  ;;  %v2907_v20 = vadd.f32 %v2906_v19, %v2858_v22 }
 0x51f   : > { %v2708_v16 = vsel %vm2659_vm6, %v2657_v28, %v2201_v55  ;;  %v2658_v54 = vsel %vm2608_vm5, %v2607_v14, %v2053_v2 }
 0x522   : > { %v2351_v62 = vpop.permute.xlu1 %2350  ;;  %v2203_v48 = vpop.permute.xlu0 %2202 }
 0x523   : > { %v2759_v51 = vsel %vm2710_vm7, %v2708_v16, %v2351_v62  ;;  %v2709_v17 = vsel %vm2659_vm6, %v2658_v54, %v2203_v48 }
 0x524   : > { %v2859_v53 = vmul.f32 %v2809_v3, %v2759_v51 }
 0x526   : > { %v2353_v59 = vpop.permute.xlu1 %2352  ;;  %v2908_v44 = vadd.f32 %v2907_v20, %v2859_v53 }
 0x527   : > { %v2760_v34 = vsel %vm2710_vm7, %v2709_v17, %v2353_v59 }
 0x528   : > { %v2860_v30 = vmul.f32 %v2810_v24, %v2760_v34 }
 0x52a   : > { %v2909_v52 = vadd.f32 %v2908_v44, %v2860_v30 }
 0x52c   : > { %v2910_v45 = vrot.slane %v2909_v52, 4 }
 0x52e   : > { %v2911_v50 = vadd.f32 %v2910_v45, %v2909_v52 }
 0x530   : > { %v2912_v27 = vrot.slane %v2911_v50, 2 }
 0x532   : > { %v2913_v38 = vadd.f32 %v2912_v27, %v2911_v50 }
 0x534   : > { %v2914_v5 = vrot.slane %v2913_v38, 1 }
 0x536   : > { %v2915_v7 = vadd.f32 %v2914_v5, %v2913_v38 }
 0x538   : > { %3314 = vmatmul.mubr.f32.vlgmr.msra.gmra.mrb[48].mxu1 %v2915_v7 }
 0x60b   : > { %v2999_v36 = vpop.f32.mrb[48].mxu1 }
 0x60c   : > { %v3000_v31 = vadd.f32 %v2999_v36, %v2932_v35  ;;  %v3315_v1 = vpop.f32.mrb[49].mxu1 }
 0x60e   : > { %3004 = vst.msk [vmem:[%s243_s12] sm:$0x1] %vm3003_vm8, %v3000_v31 }
 0x60f   : > { %3452 = shalt.err (!%p3449_p3)
}
 0x610   : > { %s3453_s26 = scalar_lea.hbm %s6752_s16, 16  ;;  %s3457_s10 = scalar_lea.hbm %s6800_s6, 32 }
 0x611   : > { %p3454_p4 = scmp.ne.s32.totalorder %s6752_s16, %s3453_s26  ;;  %p3458_p9 = scmp.lt.u32.totalorder %s6752_s16, %s6800_s6 }
 0x612   : > { %p3459_p10 = scmp.lt.u32.totalorder %s3457_s10, %s3453_s26  ;;  %p3461_p12 = scmp.lt.u32.totalorder %s3453_s26, %s6752_s16 }
 0x613   : > { %p3455_p7 = pnand %p3454_p4, %p3587_p5 }
 0x614   : > { %p3460_p11 = por %p3459_p10, %p3458_p9 }
 0x615   : > { %p3456_p8 = pneg %p3455_p7 }
 0x616   : > { %p3462_p13 = por %p3461_p12, %p3460_p11 }
 0x618   : > { %p3463_p0 = pnand %p3462_p13, %p3456_p8 }
 0x61a   : > { %3466 = shalt.err (!%p3463_p0)
}
 0x61b   : > { %3357 = dma.vmem_to_hbm [thread:$0]  (%p3587_p5), %s6754_s13, 16, %s6752_s16, %s3006_s18  }
 0x61c PF: > { %p3363_p1 = scmp.ge.s32.totalorder %s3501_s24, 2  ;;  %s3030_s12 = sand.u32 1, %s3489_s21  }
 0x61d   : > { %s3031_s14 = scalar_lea.sflag [#allocation3], %s3030_s12 }
 0x61e   : > { %p3360_p2 = pnand %p3363_p1, %p3591_p6 }
 0x620   : > { %3484 = dma.done.wait (!%p3360_p2), %s3031_s14, 16  }
 0x621   : > { %3486 = vsyncadd (!%p3360_p2), %s3031_s14, 4294967280  ;;  %p16_p3 = scmp.ge.s32.totalorder %s3574_s27, 4   ;;  %s7447_s21 = smov %s3493_s22 }
 0x622   : > { %s7448_s22 = smov %s3497_s23  ;;  %s7449_s23 = smov %s3585_s30 }
 0x623   : > { %s7450_s24 = smov %s3574_s27  ;;  %18 = sbr.rel (!%p16_p3) target bundleno = 3 (0x3), region = 79 }
 0x62a   :  { %3035 = vsyncpa [#allocation3], 1 }
 0x62b   :  { %3037 = vsyncpa [#allocation3 + $0x1], 1 }

</bundles_post_ra>
